<compile_context>
chip_gen: v7x
topology: tpu7x:2x2x1
jax: 0.10.0
libtpu: 0.0.40
codegen_flags: <defaults>
</compile_context>

<pallas_src>
import jax
import jax.numpy as jnp
from jax import lax
from jax.experimental import pallas as pl
from jax.experimental.pallas import tpu as pltpu


# --------------------------------------------------------------------------- #
# small helpers
# --------------------------------------------------------------------------- #

def _fold_bn(p, eps=1e-5):
    """BatchNorm2d (eval mode) -> per-channel (scale, shift)."""
    scale = p["gamma"] * lax.rsqrt(p["var"] + eps)
    shift = p["beta"] - p["mean"] * scale
    return scale, shift


def _pick_tile(n, target, mult=8):
    """Largest divisor of n that is <= target and a multiple of `mult`
    (falls back to n itself, which is always legal as a full-extent block)."""
    for t in range(min(n, target), 0, -1):
        if n % t == 0 and t % mult == 0:
            return t
    return n


def _pick_row_tile(hs, ws, target_m=512):
    """Output-row tile so that M = tr*ws is large (~target_m) and a multiple of
    16 (preferred) or 8; falls back to the full extent (always legal)."""
    cap = max(1, min(hs, max(1, target_m // max(ws, 1))))
    for mult in (16, 8):
        for tr in range(cap, 0, -1):
            if hs % tr == 0 and (tr * ws) % mult == 0:
                return tr
    return hs


def _nbytes(shape, dtype):
    n = 1
    for s in shape:
        n *= int(s)
    return n * jnp.dtype(dtype).itemsize


# --------------------------------------------------------------------------- #
# 3x3 conv kernel (taps assembled in VMEM, one K=9*Cin MXU matmul, fused epilogue)
# --------------------------------------------------------------------------- #

def _make_conv3x3_kernel(*, stride, tr, ws, epilogue, has_residual,
                         emit_pool_sums):
    """epilogue: 'prelu' -> extra input  alpha (1, Cout)         [conv1]
                 'bn'    -> extra inputs scale, shift (1, Cout)  [conv2]
       has_residual:   extra (1, M, Cout) input added after the epilogue.
       emit_pool_sums: second output (1, 8, Cout) accumulating channel sums
                       (row 0) across the row-tile axis (for SE pooling)."""
    n_x = 1 if stride == 1 else 2
    n_epi = 1 if epilogue == "prelu" else 2

    def kernel(*refs):
        i = 0
        x_refs = refs[i:i + n_x]; i += n_x
        w_ref = refs[i]; i += 1
        epi = refs[i:i + n_epi]; i += n_epi
        res_ref = None
        if has_residual:
            res_ref = refs[i]; i += 1
        o_ref = refs[i]; i += 1
        sums_ref = None
        if emit_pool_sums:
            sums_ref = refs[i]; i += 1
        patches = refs[i]                                   # (tr, ws, 9*C) VMEM

        c = x_refs[0].shape[-1]
        m = tr * ws
        rt = pl.program_id(1)
        r0 = rt * tr

        if stride == 1:
            # padded rows r0+dy .. r0+dy+tr, padded cols dx .. dx+ws
            for dy in range(3):
                rows = x_refs[0][0, pl.ds(r0 + dy, tr), :, :]      # (tr, Wp, C)
                for dx in range(3):
                    t = dy * 3 + dx
                    patches[:, :, t * c:(t + 1) * c] = rows[:, dx:dx + ws, :]
        else:
            # column-phase inputs: phase p holds padded columns p, p+2, ...
            halves = []
            for xr in x_refs:
                blk = xr[0, pl.ds(2 * r0, 2 * tr + 2), :, :]       # (2tr+2, Wph, C)
                halves.append(blk.reshape(tr + 1, 2, blk.shape[1], c))
            for dy in range(3):
                for dx in range(3):
                    t = dy * 3 + dx
                    rows = halves[dx % 2][dy // 2:dy // 2 + tr, dy % 2]
                    c0 = dx // 2
                    patches[:, :, t * c:(t + 1) * c] = rows[:, c0:c0 + ws, :]

        lhs = patches[...].reshape(m, 9 * c)
        acc = jnp.dot(lhs, w_ref[...], preferred_element_type=jnp.float32)

        if epilogue == "prelu":
            alpha = epi[0][...]
            y = jnp.where(acc > 0, acc, alpha * acc)
        else:
            y = acc * epi[0][...] + epi[1][...]

        if emit_pool_sums:
            @pl.when(rt == 0)
            def _():
                sums_ref[...] = jnp.zeros_like(sums_ref)
            sums_ref[0, 0:1, :] = (sums_ref[0, 0:1, :]
                                   + jnp.sum(y, axis=0, keepdims=True))

        if res_ref is not None:
            y = y + res_ref[0].astype(jnp.float32)
        o_ref[0] = y.astype(o_ref.dtype)

    return kernel


def _conv3x3(x_nhwc, w_r, *, stride, epilogue, epilogue_args,
             residual=None, out_dtype=jnp.float32, emit_pool_sums=False,
             compute_dtype=jnp.bfloat16):
    """3x3 conv, padding=1, stride in {1,2}, fused epilogue.

    x_nhwc : (N, H, W, C) un-padded activation (any float dtype).
    w_r    : (9*C, Cout) weights, rows ordered (ky, kx, cin).
    Returns (N, Hs*Ws, Cout); plus (N, 8, Cout) channel sums (row 0) if
    emit_pool_sums.
    """
    assert stride in (1, 2), "only stride 1 / 2 supported"
    n, h, w, c = x_nhwc.shape
    cout = w_r.shape[1]
    hs = (h - 1) // stride + 1
    ws = (w - 1) // stride + 1

    # Single padded bf16 copy in HBM (upstream affine/cast producers fuse into
    # it).  The kernel keeps the whole padded image resident in VMEM per batch
    # element (constant block index over the row-tile axis).
    if stride == 1:
        xp = jnp.pad(x_nhwc, ((0, 0), (1, 1), (1, 1), (0, 0))).astype(compute_dtype)
        x_inputs = [xp]
    else:
        hp = 2 * hs + 2                   # extra bottom zero row when H is odd
        xp = jnp.pad(x_nhwc, ((0, 0), (1, hp - h - 1), (1, 1), (0, 0)))
        xp = xp.astype(compute_dtype)
        x_inputs = [xp[:, :, 0::2, :], xp[:, :, 1::2, :]]   # column phases

    tr = _pick_row_tile(hs, ws)
    n_rt = hs // tr
    m = tr * ws

    w_r = w_r.astype(compute_dtype)
    epi = [jnp.asarray(a, jnp.float32).reshape(1, cout) for a in epilogue_args]

    in_specs = [pl.BlockSpec((1,) + a.shape[1:], lambda b, r: (b, 0, 0, 0))
                for a in x_inputs]
    in_specs.append(pl.BlockSpec(w_r.shape, lambda b, r: (0, 0)))
    in_specs += [pl.BlockSpec((1, cout), lambda b, r: (0, 0)) for _ in epi]
    inputs = list(x_inputs) + [w_r] + epi
    if residual is not None:
        residual = residual.astype(compute_dtype)            # (n, hs*ws, cout)
        in_specs.append(pl.BlockSpec((1, m, cout), lambda b, r: (b, r, 0)))
        inputs.append(residual)

    out_block = pl.BlockSpec((1, m, cout), lambda b, r: (b, r, 0))
    if emit_pool_sums:
        out_shape = (jax.ShapeDtypeStruct((n, hs * ws, cout), out_dtype),
                     jax.ShapeDtypeStruct((n, 8, cout), jnp.float32))
        out_specs = (out_block,
                     pl.BlockSpec((1, 8, cout), lambda b, r: (b, 0, 0)))
    else:
        out_shape = jax.ShapeDtypeStruct((n, hs * ws, cout), out_dtype)
        out_specs = out_block

    kernel = _make_conv3x3_kernel(stride=stride, tr=tr, ws=ws, epilogue=epilogue,
                                  has_residual=residual is not None,
                                  emit_pool_sums=emit_pool_sums)

    # explicit VMEM budget (double-buffered blocks + scratch) with headroom
    blk_bytes = 2 * sum(_nbytes((1,) + a.shape[1:], a.dtype) for a in x_inputs)
    blk_bytes += 2 * _nbytes(w_r.shape, w_r.dtype)
    blk_bytes += 2 * sum(_nbytes(a.shape, a.dtype) for a in epi)
    blk_bytes += 2 * _nbytes((1, m, cout), out_dtype)
    if residual is not None:
        blk_bytes += 2 * _nbytes((1, m, cout), residual.dtype)
    if emit_pool_sums:
        blk_bytes += 2 * _nbytes((1, 8, cout), jnp.float32)
    blk_bytes += _nbytes((tr, ws, 9 * c), compute_dtype)
    vmem_limit = min(64 * 1024 * 1024,
                     max(32 * 1024 * 1024, int(1.5 * blk_bytes)))

    flops = 2 * n * hs * ws * 9 * c * cout
    bytes_accessed = sum(_nbytes(a.shape, a.dtype) for a in inputs)
    bytes_accessed += n * hs * ws * cout * jnp.dtype(out_dtype).itemsize

    return pl.pallas_call(
        kernel,
        out_shape=out_shape,
        grid=(n, n_rt),
        in_specs=in_specs,
        out_specs=out_specs,
        scratch_shapes=[pltpu.VMEM((tr, ws, 9 * c), compute_dtype)],
        compiler_params=pltpu.CompilerParams(
            dimension_semantics=("parallel",
                                 "arbitrary" if emit_pool_sums else "parallel"),
            vmem_limit_bytes=vmem_limit),
        cost_estimate=pl.CostEstimate(flops=flops, transcendentals=0,
                                      bytes_accessed=bytes_accessed),
    )(*inputs)


# --------------------------------------------------------------------------- #
# 1x1 projection shortcut (+BN) and SE(+residual add) kernels
# --------------------------------------------------------------------------- #

def _conv1x1_bn_kernel(x_ref, w_ref, scale_ref, shift_ref, o_ref):
    y = jnp.dot(x_ref[...], w_ref[...], preferred_element_type=jnp.float32)
    o_ref[...] = (y * scale_ref[...] + shift_ref[...]).astype(o_ref.dtype)


def _conv1x1_bn(x2d, w, scale, shift, out_dtype=jnp.bfloat16,
                compute_dtype=jnp.bfloat16):
    m, cin = x2d.shape
    cout = w.shape[1]
    tm = _pick_tile(m, 1024)
    x2d = x2d.astype(compute_dtype)
    w = w.astype(compute_dtype)
    scale = scale.astype(jnp.float32).reshape(1, cout)
    shift = shift.astype(jnp.float32).reshape(1, cout)
    return pl.pallas_call(
        _conv1x1_bn_kernel,
        out_shape=jax.ShapeDtypeStruct((m, cout), out_dtype),
        grid=(m // tm,),
        in_specs=[pl.BlockSpec((tm, cin), lambda i: (i, 0)),
                  pl.BlockSpec((cin, cout), lambda i: (0, 0)),
                  pl.BlockSpec((1, cout), lambda i: (0, 0)),
                  pl.BlockSpec((1, cout), lambda i: (0, 0))],
        out_specs=pl.BlockSpec((tm, cout), lambda i: (i, 0)),
        compiler_params=pltpu.CompilerParams(
            dimension_semantics=("parallel",)),
    )(x2d, w, scale, shift)


def _se_apply_add(pool_sums, se_w1, se_w2, y, sc, *, hw):
    """SE (avg-pool -> fc1 -> relu -> fc2 -> sigmoid -> scale) fused with the
    residual add, tiled over flattened spatial positions.  pool_sums holds the
    per-batch channel sums (row 0), produced by the conv2 kernel."""
    n, m, c = y.shape
    cr = se_w1.shape[1]
    tm = _pick_tile(m, 2048)
    inv_hw = 1.0 / float(hw)

    def kernel(sums_ref, w1_ref, w2_ref, y_ref, sc_ref, o_ref):
        pooled = sums_ref[0, 0:1, :] * inv_hw                       # (1, C) f32
        z = jnp.maximum(
            jnp.dot(pooled, w1_ref[...], preferred_element_type=jnp.float32),
            0.0)
        s = jax.nn.sigmoid(
            jnp.dot(z, w2_ref[...], preferred_element_type=jnp.float32))
        o_ref[0] = (y_ref[0].astype(jnp.float32) * s
                    + sc_ref[0].astype(jnp.float32))

    return pl.pallas_call(
        kernel,
        out_shape=jax.ShapeDtypeStruct((n, m, c), jnp.float32),
        grid=(n, m // tm),
        in_specs=[pl.BlockSpec((1, 8, c), lambda b, r: (b, 0, 0)),
                  pl.BlockSpec((c, cr), lambda b, r: (0, 0)),
                  pl.BlockSpec((cr, c), lambda b, r: (0, 0)),
                  pl.BlockSpec((1, tm, c), lambda b, r: (b, r, 0)),
                  pl.BlockSpec((1, tm, c), lambda b, r: (b, r, 0))],
        out_specs=pl.BlockSpec((1, tm, c), lambda b, r: (b, r, 0)),
        compiler_params=pltpu.CompilerParams(
            dimension_semantics=("parallel", "parallel")),
    )(pool_sums, se_w1.astype(jnp.float32), se_w2.astype(jnp.float32), y, sc)


# --------------------------------------------------------------------------- #
# IBottleneck forward (channels-last)
# --------------------------------------------------------------------------- #

def ibottleneck_forward(x_nhwc, params, *, stride, use_se):
    n, h, w, cin = x_nhwc.shape
    w1 = params["conv1_w"]                          # (3, 3, Cin, Cout) HWIO
    cout = w1.shape[-1]
    hs = (h - 1) // stride + 1
    ws = (w - 1) // stride + 1
    bf16, f32 = jnp.bfloat16, jnp.float32

    # ---- res branch: BN1 -> conv3x3 s=1 -> PReLU --------------------------- #
    # BN1 (eval-mode affine) is applied to the activation; XLA fuses it into the
    # single padded bf16 copy _conv3x3 creates anyway, so the conv contraction
    # dim stays exactly 9*Cin (lane aligned) and no extra HBM pass is made.
    s1, b1 = _fold_bn(params["bn1"])
    x_bn = x_nhwc * s1.reshape(1, 1, 1, -1) + b1.reshape(1, 1, 1, -1)
    w1_r = w1.reshape(9 * cin, cout)
    h2 = _conv3x3(x_bn, w1_r, stride=1, epilogue="prelu",
                  epilogue_args=[params["prelu_alpha"]],
                  out_dtype=bf16)                                # (N, H*W, Cout)

    # ---- shortcut branch ---------------------------------------------------- #
    if "conv_sc_w" in params:      # projection shortcut (1x1 conv + BN)
        xs = x_nhwc[:, ::stride, ::stride, :].reshape(n * hs * ws, cin)
        ssc, bsc = _fold_bn(params["bn_sc"])
        sc = _conv1x1_bn(xs, params["conv_sc_w"], ssc, bsc)      # bf16
        sc = sc.reshape(n, hs * ws, cout)
    else:                          # MaxPool2d(kernel_size=1, stride) == strided identity
        sc = x_nhwc[:, ::stride, ::stride, :].reshape(n, hs * ws, cout).astype(bf16)

    # ---- res branch: conv3x3 (stride) + BN2 [+ SE] [+ residual] ------------- #
    s2, b2 = _fold_bn(params["bn2"])
    w2_r = params["conv2_w"].reshape(9 * cout, cout)
    h2_img = h2.reshape(n, h, w, cout)

    if use_se:
        # conv2 also emits the per-batch channel sums needed by SE's global
        # average pool, so the activation is never re-read for pooling.
        h3, pool_sums = _conv3x3(h2_img, w2_r, stride=stride, epilogue="bn",
                                 epilogue_args=[s2, b2], out_dtype=bf16,
                                 emit_pool_sums=True)
        out = _se_apply_add(pool_sums, params["se_w1"], params["se_w2"],
                            h3, sc, hw=hs * ws)
        return out.reshape(n, hs, ws, cout)

    # no SE: fuse the residual add directly into the conv2 epilogue
    out = _conv3x3(h2_img, w2_r, stride=stride, epilogue="bn",
                   epilogue_args=[s2, b2], residual=sc, out_dtype=f32)
    return out.reshape(n, hs, ws, cout)


# --------------------------------------------------------------------------- #
# pure-JAX float32 reference of the PyTorch module (eval-mode BN)
# --------------------------------------------------------------------------- #

def reference_forward(x, params, *, stride, use_se):
    dn = ("NHWC", "HWIO", "NHWC")
    hi = lax.Precision.HIGHEST
    s1, b1 = _fold_bn(params["bn1"])
    h = x * s1.reshape(1, 1, 1, -1) + b1.reshape(1, 1, 1, -1)
    h = lax.conv_general_dilated(h, params["conv1_w"], (1, 1), ((1, 1), (1, 1)),
                                 dimension_numbers=dn, precision=hi)
    alpha = params["prelu_alpha"].reshape(1, 1, 1, -1)
    h = jnp.where(h > 0, h, alpha * h)
    h = lax.conv_general_dilated(h, params["conv2_w"], (stride, stride),
                                 ((1, 1), (1, 1)), dimension_numbers=dn,
                                 precision=hi)
    s2, b2 = _fold_bn(params["bn2"])
    h = h * s2.reshape(1, 1, 1, -1) + b2.reshape(1, 1, 1, -1)
    if use_se:
        pooled = jnp.mean(h, axis=(1, 2))
        z = jnp.maximum(jnp.dot(pooled, params["se_w1"], precision=hi), 0.0)
        s = jax.nn.sigmoid(jnp.dot(z, params["se_w2"], precision=hi))
        h = h * s[:, None, None, :]
    if "conv_sc_w" in params:
        xsl = x[:, ::stride, ::stride, :]
        sc = jnp.einsum("nhwc,co->nhwo", xsl, params["conv_sc_w"], precision=hi)
        ssc, bsc = _fold_bn(params["bn_sc"])
        sc = sc * ssc.reshape(1, 1, 1, -1) + bsc.reshape(1, 1, 1, -1)
    else:
        sc = x[:, ::stride, ::stride, :]
    return h + sc


# --------------------------------------------------------------------------- #
# param init
# --------------------------------------------------------------------------- #

def init_params(key, in_channels, out_channels, use_se, se_reduction):
    keys = jax.random.split(key, 8)

    def bn(k, c):
        k1, k2, k3, k4 = jax.random.split(k, 4)
        return dict(
            gamma=1.0 + 0.1 * jax.random.normal(k1, (c,), jnp.float32),
            beta=0.1 * jax.random.normal(k2, (c,), jnp.float32),
            mean=0.1 * jax.random.normal(k3, (c,), jnp.float32),
            var=jax.random.uniform(k4, (c,), jnp.float32, 0.8, 1.2),
        )

    ws = 0.15
    p = {}
    p["bn1"] = bn(keys[0], in_channels)
    p["conv1_w"] = ws * jax.random.normal(
        keys[1], (3, 3, in_channels, out_channels), jnp.float32)    # HWIO
    p["prelu_alpha"] = jnp.full((out_channels,), 0.25, jnp.float32)
    p["conv2_w"] = ws * jax.random.normal(
        keys[2], (3, 3, out_channels, out_channels), jnp.float32)   # HWIO
    p["bn2"] = bn(keys[3], out_channels)
    if use_se:
        cr = out_channels // se_reduction
        p["se_w1"] = ws * jax.random.normal(keys[4], (out_channels, cr), jnp.float32)
        p["se_w2"] = ws * jax.random.normal(keys[5], (cr, out_channels), jnp.float32)
    if in_channels != out_channels:
        p["conv_sc_w"] = ws * jax.random.normal(
            keys[6], (in_channels, out_channels), jnp.float32)
        p["bn_sc"] = bn(keys[7], out_channels)
    return p


# --------------------------------------------------------------------------- #
# main
# --------------------------------------------------------------------------- #

if __name__ == "__main__":
    N, H, W = 2, 16, 16
    configs = [
        dict(in_channels=4, out_channels=8, stride=2, use_se=True, se_reduction=2),
        dict(in_channels=8, out_channels=8, stride=1, use_se=False, se_reduction=2),
    ]

    fwd = jax.jit(ibottleneck_forward, static_argnames=("stride", "use_se"))

    key = jax.random.PRNGKey(0)
    for i, cfg in enumerate(configs):
        key, kx, kp = jax.random.split(key, 3)
        x_nchw = jax.random.normal(kx, (N, cfg["in_channels"], H, W), jnp.float32)
        x_nhwc = jnp.transpose(x_nchw, (0, 2, 3, 1))   # layout boundary: NCHW -> NHWC
        params = init_params(kp, cfg["in_channels"], cfg["out_channels"],
                             cfg["use_se"], cfg["se_reduction"])

        out = fwd(x_nhwc, params, stride=cfg["stride"], use_se=cfg["use_se"])
        out = jax.block_until_ready(out)

        ref = reference_forward(x_nhwc, params, stride=cfg["stride"],
                                use_se=cfg["use_se"])

        hs = (H - 1) // cfg["stride"] + 1
        assert out.shape == (N, hs, hs, cfg["out_channels"]), out.shape
        # tolerance reflects bf16 MXU operands / bf16 intermediates vs f32 reference
        if not bool(jnp.allclose(out, ref, rtol=5e-2, atol=5e-2)):
            max_err = float(jnp.max(jnp.abs(out - ref)))
            raise SystemExit(
                f"config {i}: mismatch vs reference, max abs err = {max_err}")

    print("KERNEL_OK")
</pallas_src>

<mosaic_0001>
module attributes {stable_mosaic.version = 11 : i64} {
  func.func @kernel(%arg0: i32, %arg1: i32, %arg2: memref<1x18x18x4xbf16, #tpu.memory_space<vmem>>, %arg3: memref<36x8xbf16, #tpu.memory_space<vmem>>, %arg4: memref<1x8xf32, #tpu.memory_space<vmem>>, %arg5: memref<1x256x8xbf16, #tpu.memory_space<vmem>>, %arg6: memref<16x16x36xbf16, #tpu.memory_space<vmem>>) attributes {dimension_semantics = [#tpu.dimension_semantics<parallel>, #tpu.dimension_semantics<parallel>], iteration_bounds = array<i64: 2, 1>, scalar_prefetch = 0 : i64, scratch_operands = 1 : i64, tpu.core_type = #tpu.core_type<tc>, window_params = [{transform_indices = @transform_0, window_bounds = array<i64: 1, 18, 18, 4>}, {pipeline_mode = #tpu.pipeline_mode<synchronous>, transform_indices = @transform_1, window_bounds = array<i64: 36, 8>}, {pipeline_mode = #tpu.pipeline_mode<synchronous>, transform_indices = @transform_2, window_bounds = array<i64: 1, 8>}, {transform_indices = @transform_3, window_bounds = array<i64: 1, 256, 8>}]} {
    %c16_i32 = arith.constant 16 : i32
    %0 = arith.muli %arg1, %c16_i32 : i32
    %c0_i32 = arith.constant 0 : i32
    %1 = arith.addi %0, %c0_i32 : i32
    %c0 = arith.constant 0 : index
    %2 = arith.index_cast %1 : i32 to index
    %c0_0 = arith.constant 0 : index
    %c0_1 = arith.constant 0 : index
    %3 = vector.load %arg2[%c0, %2, %c0_0, %c0_1] : memref<1x18x18x4xbf16, #tpu.memory_space<vmem>>, vector<1x16x18x4xbf16>
    %4 = vector.shape_cast %3 : vector<1x16x18x4xbf16> to vector<16x18x4xbf16>
    %5 = vector.extract_strided_slice %4 {offsets = [0, 0, 0], sizes = [16, 16, 4], strides = [1, 1, 1]} : vector<16x18x4xbf16> to vector<16x16x4xbf16>
    %c0_2 = arith.constant 0 : index
    %c0_3 = arith.constant 0 : index
    %c0_4 = arith.constant 0 : index
    %6 = vector.load %arg6[%c0_2, %c0_3, %c0_4] : memref<16x16x36xbf16, #tpu.memory_space<vmem>>, vector<16x16x4xbf16>
    tpu.vector_store %arg6[%c0_2, %c0_3, %c0_4], %5 {strides = array<i32>} : memref<16x16x36xbf16, #tpu.memory_space<vmem>>, vector<16x16x4xbf16>,
    %7 = vector.extract_strided_slice %4 {offsets = [0, 1, 0], sizes = [16, 16, 4], strides = [1, 1, 1]} : vector<16x18x4xbf16> to vector<16x16x4xbf16>
    %c0_5 = arith.constant 0 : index
    %c0_6 = arith.constant 0 : index
    %c4 = arith.constant 4 : index
    %8 = vector.load %arg6[%c0_5, %c0_6, %c4] : memref<16x16x36xbf16, #tpu.memory_space<vmem>>, vector<16x16x4xbf16>
    tpu.vector_store %arg6[%c0_5, %c0_6, %c4], %7 {strides = array<i32>} : memref<16x16x36xbf16, #tpu.memory_space<vmem>>, vector<16x16x4xbf16>,
    %9 = vector.extract_strided_slice %4 {offsets = [0, 2, 0], sizes = [16, 16, 4], strides = [1, 1, 1]} : vector<16x18x4xbf16> to vector<16x16x4xbf16>
    %c0_7 = arith.constant 0 : index
    %c0_8 = arith.constant 0 : index
    %c8 = arith.constant 8 : index
    %10 = vector.load %arg6[%c0_7, %c0_8, %c8] : memref<16x16x36xbf16, #tpu.memory_space<vmem>>, vector<16x16x4xbf16>
    tpu.vector_store %arg6[%c0_7, %c0_8, %c8], %9 {strides = array<i32>} : memref<16x16x36xbf16, #tpu.memory_space<vmem>>, vector<16x16x4xbf16>,
    %c1_i32 = arith.constant 1 : i32
    %11 = arith.addi %0, %c1_i32 : i32
    %c0_9 = arith.constant 0 : index
    %12 = arith.index_cast %11 : i32 to index
    %c0_10 = arith.constant 0 : index
    %c0_11 = arith.constant 0 : index
    %13 = vector.load %arg2[%c0_9, %12, %c0_10, %c0_11] : memref<1x18x18x4xbf16, #tpu.memory_space<vmem>>, vector<1x16x18x4xbf16>
    %14 = vector.shape_cast %13 : vector<1x16x18x4xbf16> to vector<16x18x4xbf16>
    %15 = vector.extract_strided_slice %14 {offsets = [0, 0, 0], sizes = [16, 16, 4], strides = [1, 1, 1]} : vector<16x18x4xbf16> to vector<16x16x4xbf16>
    %c0_12 = arith.constant 0 : index
    %c0_13 = arith.constant 0 : index
    %c12 = arith.constant 12 : index
    %16 = vector.load %arg6[%c0_12, %c0_13, %c12] : memref<16x16x36xbf16, #tpu.memory_space<vmem>>, vector<16x16x4xbf16>
    tpu.vector_store %arg6[%c0_12, %c0_13, %c12], %15 {strides = array<i32>} : memref<16x16x36xbf16, #tpu.memory_space<vmem>>, vector<16x16x4xbf16>,
    %17 = vector.extract_strided_slice %14 {offsets = [0, 1, 0], sizes = [16, 16, 4], strides = [1, 1, 1]} : vector<16x18x4xbf16> to vector<16x16x4xbf16>
    %c0_14 = arith.constant 0 : index
    %c0_15 = arith.constant 0 : index
    %c16 = arith.constant 16 : index
    %18 = vector.load %arg6[%c0_14, %c0_15, %c16] : memref<16x16x36xbf16, #tpu.memory_space<vmem>>, vector<16x16x4xbf16>
    tpu.vector_store %arg6[%c0_14, %c0_15, %c16], %17 {strides = array<i32>} : memref<16x16x36xbf16, #tpu.memory_space<vmem>>, vector<16x16x4xbf16>,
    %19 = vector.extract_strided_slice %14 {offsets = [0, 2, 0], sizes = [16, 16, 4], strides = [1, 1, 1]} : vector<16x18x4xbf16> to vector<16x16x4xbf16>
    %c0_16 = arith.constant 0 : index
    %c0_17 = arith.constant 0 : index
    %c20 = arith.constant 20 : index
    %20 = vector.load %arg6[%c0_16, %c0_17, %c20] : memref<16x16x36xbf16, #tpu.memory_space<vmem>>, vector<16x16x4xbf16>
    tpu.vector_store %arg6[%c0_16, %c0_17, %c20], %19 {strides = array<i32>} : memref<16x16x36xbf16, #tpu.memory_space<vmem>>, vector<16x16x4xbf16>,
    %c2_i32 = arith.constant 2 : i32
    %21 = arith.addi %0, %c2_i32 : i32
    %c0_18 = arith.constant 0 : index
    %22 = arith.index_cast %21 : i32 to index
    %c0_19 = arith.constant 0 : index
    %c0_20 = arith.constant 0 : index
    %23 = vector.load %arg2[%c0_18, %22, %c0_19, %c0_20] : memref<1x18x18x4xbf16, #tpu.memory_space<vmem>>, vector<1x16x18x4xbf16>
    %24 = vector.shape_cast %23 : vector<1x16x18x4xbf16> to vector<16x18x4xbf16>
    %25 = vector.extract_strided_slice %24 {offsets = [0, 0, 0], sizes = [16, 16, 4], strides = [1, 1, 1]} : vector<16x18x4xbf16> to vector<16x16x4xbf16>
    %c0_21 = arith.constant 0 : index
    %c0_22 = arith.constant 0 : index
    %c24 = arith.constant 24 : index
    %26 = vector.load %arg6[%c0_21, %c0_22, %c24] : memref<16x16x36xbf16, #tpu.memory_space<vmem>>, vector<16x16x4xbf16>
    tpu.vector_store %arg6[%c0_21, %c0_22, %c24], %25 {strides = array<i32>} : memref<16x16x36xbf16, #tpu.memory_space<vmem>>, vector<16x16x4xbf16>,
    %27 = vector.extract_strided_slice %24 {offsets = [0, 1, 0], sizes = [16, 16, 4], strides = [1, 1, 1]} : vector<16x18x4xbf16> to vector<16x16x4xbf16>
    %c0_23 = arith.constant 0 : index
    %c0_24 = arith.constant 0 : index
    %c28 = arith.constant 28 : index
    %28 = vector.load %arg6[%c0_23, %c0_24, %c28] : memref<16x16x36xbf16, #tpu.memory_space<vmem>>, vector<16x16x4xbf16>
    tpu.vector_store %arg6[%c0_23, %c0_24, %c28], %27 {strides = array<i32>} : memref<16x16x36xbf16, #tpu.memory_space<vmem>>, vector<16x16x4xbf16>,
    %29 = vector.extract_strided_slice %24 {offsets = [0, 2, 0], sizes = [16, 16, 4], strides = [1, 1, 1]} : vector<16x18x4xbf16> to vector<16x16x4xbf16>
    %c0_25 = arith.constant 0 : index
    %c0_26 = arith.constant 0 : index
    %c32 = arith.constant 32 : index
    %30 = vector.load %arg6[%c0_25, %c0_26, %c32] : memref<16x16x36xbf16, #tpu.memory_space<vmem>>, vector<16x16x4xbf16>
    tpu.vector_store %arg6[%c0_25, %c0_26, %c32], %29 {strides = array<i32>} : memref<16x16x36xbf16, #tpu.memory_space<vmem>>, vector<16x16x4xbf16>,
    %c0_27 = arith.constant 0 : index
    %c0_28 = arith.constant 0 : index
    %c0_29 = arith.constant 0 : index
    %31 = vector.load %arg6[%c0_27, %c0_28, %c0_29] : memref<16x16x36xbf16, #tpu.memory_space<vmem>>, vector<16x16x36xbf16>
    %32 = vector.shape_cast %31 : vector<16x16x36xbf16> to vector<256x36xbf16>
    %c0_30 = arith.constant 0 : index
    %c0_31 = arith.constant 0 : index
    %33 = vector.load %arg3[%c0_30, %c0_31] : memref<36x8xbf16, #tpu.memory_space<vmem>>, vector<36x8xbf16>
    %cst = arith.constant dense<0.000000e+00> : vector<256x8xf32>
    %34 = tpu.matmul %32, %33, %cst {dimension_numbers = #tpu.dot_dimension_numbers<[1], [0], [0], [1], [0, 0, 1, 1], [], []>} : vector<256x36xbf16>, vector<36x8xbf16>, vector<256x8xf32> -> vector<256x8xf32>
    %c0_32 = arith.constant 0 : index
    %c0_33 = arith.constant 0 : index
    %35 = vector.load %arg4[%c0_32, %c0_33] : memref<1x8xf32, #tpu.memory_space<vmem>>, vector<1x8xf32>
    %cst_34 = arith.constant 0.000000e+00 : f32
    %36 = vector.broadcast %cst_34 : f32 to vector<256x8xf32>
    %37 = arith.cmpf ogt, %34, %36 : vector<256x8xf32>
    %38 = vector.broadcast %35 : vector<1x8xf32> to vector<256x8xf32>
    %39 = arith.mulf %38, %34 : vector<256x8xf32>
    %40 = arith.select %37, %34, %39 : vector<256x8xi1>, vector<256x8xf32>
    %41 = arith.truncf %40 : vector<256x8xf32> to vector<256x8xbf16>
    %c0_35 = arith.constant 0 : index
    %c0_36 = arith.constant 0 : index
    %c0_37 = arith.constant 0 : index
    %42 = vector.load %arg5[%c0_35, %c0_36, %c0_37] : memref<1x256x8xbf16, #tpu.memory_space<vmem>>, vector<1x256x8xbf16>
    %43 = vector.shape_cast %42 : vector<1x256x8xbf16> to vector<256x8xbf16>
    %44 = vector.shape_cast %41 : vector<256x8xbf16> to vector<1x256x8xbf16>
    tpu.vector_store %arg5[%c0_35, %c0_36, %c0_37], %44 {strides = array<i32>} : memref<1x256x8xbf16, #tpu.memory_space<vmem>>, vector<1x256x8xbf16>,
    return
  }
  func.func @transform_0(%arg0: i32, %arg1: i32) -> (i32, i32, i32, i32) {
    %c0_i32 = arith.constant 0 : i32
    %c0_i32_0 = arith.constant 0 : i32
    %c0_i32_1 = arith.constant 0 : i32
    %c0_i32_2 = arith.constant 0 : i32
    return %arg0, %c0_i32, %c0_i32_0, %c0_i32_1 : i32, i32, i32, i32
  }
  func.func @transform_1(%arg0: i32, %arg1: i32) -> (i32, i32) {
    %c0_i32 = arith.constant 0 : i32
    %c0_i32_0 = arith.constant 0 : i32
    %c0_i32_1 = arith.constant 0 : i32
    return %c0_i32, %c0_i32_0 : i32, i32
  }
  func.func @transform_2(%arg0: i32, %arg1: i32) -> (i32, i32) {
    %c0_i32 = arith.constant 0 : i32
    %c0_i32_0 = arith.constant 0 : i32
    %c0_i32_1 = arith.constant 0 : i32
    return %c0_i32, %c0_i32_0 : i32, i32
  }
  func.func @transform_3(%arg0: i32, %arg1: i32) -> (i32, i32, i32) {
    %c0_i32 = arith.constant 0 : i32
    %c0_i32_0 = arith.constant 0 : i32
    return %arg0, %arg1, %c0_i32 : i32, i32, i32
  }
}

module attributes {stable_mosaic.version = 11 : i64} {
  func.func @kernel(%arg0: i32, %arg1: i32, %arg2: memref<1x18x9x8xbf16, #tpu.memory_space<vmem>>, %arg3: memref<1x18x9x8xbf16, #tpu.memory_space<vmem>>, %arg4: memref<72x8xbf16, #tpu.memory_space<vmem>>, %arg5: memref<1x8xf32, #tpu.memory_space<vmem>>, %arg6: memref<1x8xf32, #tpu.memory_space<vmem>>, %arg7: memref<1x64x8xbf16, #tpu.memory_space<vmem>>, %arg8: memref<1x8x8xf32, #tpu.memory_space<vmem>>, %arg9: memref<8x8x72xbf16, #tpu.memory_space<vmem>>) attributes {dimension_semantics = [#tpu.dimension_semantics<parallel>, #tpu.dimension_semantics<arbitrary>], iteration_bounds = array<i64: 2, 1>, scalar_prefetch = 0 : i64, scratch_operands = 1 : i64, tpu.core_type = #tpu.core_type<tc>, window_params = [{transform_indices = @transform_0, window_bounds = array<i64: 1, 18, 9, 8>}, {transform_indices = @transform_1, window_bounds = array<i64: 1, 18, 9, 8>}, {pipeline_mode = #tpu.pipeline_mode<synchronous>, transform_indices = @transform_2, window_bounds = array<i64: 72, 8>}, {pipeline_mode = #tpu.pipeline_mode<synchronous>, transform_indices = @transform_3, window_bounds = array<i64: 1, 8>}, {pipeline_mode = #tpu.pipeline_mode<synchronous>, transform_indices = @transform_4, window_bounds = array<i64: 1, 8>}, {transform_indices = @transform_5, window_bounds = array<i64: 1, 64, 8>}, {transform_indices = @transform_6, window_bounds = array<i64: 1, 8, 8>}]} {
    %c8_i32 = arith.constant 8 : i32
    %0 = arith.muli %arg1, %c8_i32 : i32
    %c2_i32 = arith.constant 2 : i32
    %1 = arith.muli %c2_i32, %0 : i32
    %c0 = arith.constant 0 : index
    %2 = arith.index_cast %1 : i32 to index
    %c0_0 = arith.constant 0 : index
    %c0_1 = arith.constant 0 : index
    %3 = vector.load %arg2[%c0, %2, %c0_0, %c0_1] : memref<1x18x9x8xbf16, #tpu.memory_space<vmem>>, vector<1x18x9x8xbf16>
    %4 = vector.shape_cast %3 : vector<1x18x9x8xbf16> to vector<18x9x8xbf16>
    %5 = vector.shape_cast %4 : vector<18x9x8xbf16> to vector<9x2x9x8xbf16>
    %c2_i32_2 = arith.constant 2 : i32
    %6 = arith.muli %c2_i32_2, %0 : i32
    %c0_3 = arith.constant 0 : index
    %7 = arith.index_cast %6 : i32 to index
    %c0_4 = arith.constant 0 : index
    %c0_5 = arith.constant 0 : index
    %8 = vector.load %arg3[%c0_3, %7, %c0_4, %c0_5] : memref<1x18x9x8xbf16, #tpu.memory_space<vmem>>, vector<1x18x9x8xbf16>
    %9 = vector.shape_cast %8 : vector<1x18x9x8xbf16> to vector<18x9x8xbf16>
    %10 = vector.shape_cast %9 : vector<18x9x8xbf16> to vector<9x2x9x8xbf16>
    %11 = vector.extract_strided_slice %5 {offsets = [0, 0, 0, 0], sizes = [8, 1, 9, 8], strides = [1, 1, 1, 1]} : vector<9x2x9x8xbf16> to vector<8x1x9x8xbf16>
    %12 = vector.shape_cast %11 : vector<8x1x9x8xbf16> to vector<8x9x8xbf16>
    %13 = vector.extract_strided_slice %12 {offsets = [0, 0, 0], sizes = [8, 8, 8], strides = [1, 1, 1]} : vector<8x9x8xbf16> to vector<8x8x8xbf16>
    %c0_6 = arith.constant 0 : index
    %c0_7 = arith.constant 0 : index
    %c0_8 = arith.constant 0 : index
    %14 = vector.load %arg9[%c0_6, %c0_7, %c0_8] : memref<8x8x72xbf16, #tpu.memory_space<vmem>>, vector<8x8x8xbf16>
    tpu.vector_store %arg9[%c0_6, %c0_7, %c0_8], %13 {strides = array<i32>} : memref<8x8x72xbf16, #tpu.memory_space<vmem>>, vector<8x8x8xbf16>,
    %15 = vector.extract_strided_slice %10 {offsets = [0, 0, 0, 0], sizes = [8, 1, 9, 8], strides = [1, 1, 1, 1]} : vector<9x2x9x8xbf16> to vector<8x1x9x8xbf16>
    %16 = vector.shape_cast %15 : vector<8x1x9x8xbf16> to vector<8x9x8xbf16>
    %17 = vector.extract_strided_slice %16 {offsets = [0, 0, 0], sizes = [8, 8, 8], strides = [1, 1, 1]} : vector<8x9x8xbf16> to vector<8x8x8xbf16>
    %c0_9 = arith.constant 0 : index
    %c0_10 = arith.constant 0 : index
    %c8 = arith.constant 8 : index
    %18 = vector.load %arg9[%c0_9, %c0_10, %c8] : memref<8x8x72xbf16, #tpu.memory_space<vmem>>, vector<8x8x8xbf16>
    tpu.vector_store %arg9[%c0_9, %c0_10, %c8], %17 {strides = array<i32>} : memref<8x8x72xbf16, #tpu.memory_space<vmem>>, vector<8x8x8xbf16>,
    %19 = vector.extract_strided_slice %5 {offsets = [0, 0, 0, 0], sizes = [8, 1, 9, 8], strides = [1, 1, 1, 1]} : vector<9x2x9x8xbf16> to vector<8x1x9x8xbf16>
    %20 = vector.shape_cast %19 : vector<8x1x9x8xbf16> to vector<8x9x8xbf16>
    %21 = vector.extract_strided_slice %20 {offsets = [0, 1, 0], sizes = [8, 8, 8], strides = [1, 1, 1]} : vector<8x9x8xbf16> to vector<8x8x8xbf16>
    %c0_11 = arith.constant 0 : index
    %c0_12 = arith.constant 0 : index
    %c16 = arith.constant 16 : index
    %22 = vector.load %arg9[%c0_11, %c0_12, %c16] : memref<8x8x72xbf16, #tpu.memory_space<vmem>>, vector<8x8x8xbf16>
    tpu.vector_store %arg9[%c0_11, %c0_12, %c16], %21 {strides = array<i32>} : memref<8x8x72xbf16, #tpu.memory_space<vmem>>, vector<8x8x8xbf16>,
    %23 = vector.extract_strided_slice %5 {offsets = [0, 1, 0, 0], sizes = [8, 1, 9, 8], strides = [1, 1, 1, 1]} : vector<9x2x9x8xbf16> to vector<8x1x9x8xbf16>
    %24 = vector.shape_cast %23 : vector<8x1x9x8xbf16> to vector<8x9x8xbf16>
    %25 = vector.extract_strided_slice %24 {offsets = [0, 0, 0], sizes = [8, 8, 8], strides = [1, 1, 1]} : vector<8x9x8xbf16> to vector<8x8x8xbf16>
    %c0_13 = arith.constant 0 : index
    %c0_14 = arith.constant 0 : index
    %c24 = arith.constant 24 : index
    %26 = vector.load %arg9[%c0_13, %c0_14, %c24] : memref<8x8x72xbf16, #tpu.memory_space<vmem>>, vector<8x8x8xbf16>
    tpu.vector_store %arg9[%c0_13, %c0_14, %c24], %25 {strides = array<i32>} : memref<8x8x72xbf16, #tpu.memory_space<vmem>>, vector<8x8x8xbf16>,
    %27 = vector.extract_strided_slice %10 {offsets = [0, 1, 0, 0], sizes = [8, 1, 9, 8], strides = [1, 1, 1, 1]} : vector<9x2x9x8xbf16> to vector<8x1x9x8xbf16>
    %28 = vector.shape_cast %27 : vector<8x1x9x8xbf16> to vector<8x9x8xbf16>
    %29 = vector.extract_strided_slice %28 {offsets = [0, 0, 0], sizes = [8, 8, 8], strides = [1, 1, 1]} : vector<8x9x8xbf16> to vector<8x8x8xbf16>
    %c0_15 = arith.constant 0 : index
    %c0_16 = arith.constant 0 : index
    %c32 = arith.constant 32 : index
    %30 = vector.load %arg9[%c0_15, %c0_16, %c32] : memref<8x8x72xbf16, #tpu.memory_space<vmem>>, vector<8x8x8xbf16>
    tpu.vector_store %arg9[%c0_15, %c0_16, %c32], %29 {strides = array<i32>} : memref<8x8x72xbf16, #tpu.memory_space<vmem>>, vector<8x8x8xbf16>,
    %31 = vector.extract_strided_slice %5 {offsets = [0, 1, 0, 0], sizes = [8, 1, 9, 8], strides = [1, 1, 1, 1]} : vector<9x2x9x8xbf16> to vector<8x1x9x8xbf16>
    %32 = vector.shape_cast %31 : vector<8x1x9x8xbf16> to vector<8x9x8xbf16>
    %33 = vector.extract_strided_slice %32 {offsets = [0, 1, 0], sizes = [8, 8, 8], strides = [1, 1, 1]} : vector<8x9x8xbf16> to vector<8x8x8xbf16>
    %c0_17 = arith.constant 0 : index
    %c0_18 = arith.constant 0 : index
    %c40 = arith.constant 40 : index
    %34 = vector.load %arg9[%c0_17, %c0_18, %c40] : memref<8x8x72xbf16, #tpu.memory_space<vmem>>, vector<8x8x8xbf16>
    tpu.vector_store %arg9[%c0_17, %c0_18, %c40], %33 {strides = array<i32>} : memref<8x8x72xbf16, #tpu.memory_space<vmem>>, vector<8x8x8xbf16>,
    %35 = vector.extract_strided_slice %5 {offsets = [1, 0, 0, 0], sizes = [8, 1, 9, 8], strides = [1, 1, 1, 1]} : vector<9x2x9x8xbf16> to vector<8x1x9x8xbf16>
    %36 = vector.shape_cast %35 : vector<8x1x9x8xbf16> to vector<8x9x8xbf16>
    %37 = vector.extract_strided_slice %36 {offsets = [0, 0, 0], sizes = [8, 8, 8], strides = [1, 1, 1]} : vector<8x9x8xbf16> to vector<8x8x8xbf16>
    %c0_19 = arith.constant 0 : index
    %c0_20 = arith.constant 0 : index
    %c48 = arith.constant 48 : index
    %38 = vector.load %arg9[%c0_19, %c0_20, %c48] : memref<8x8x72xbf16, #tpu.memory_space<vmem>>, vector<8x8x8xbf16>
    tpu.vector_store %arg9[%c0_19, %c0_20, %c48], %37 {strides = array<i32>} : memref<8x8x72xbf16, #tpu.memory_space<vmem>>, vector<8x8x8xbf16>,
    %39 = vector.extract_strided_slice %10 {offsets = [1, 0, 0, 0], sizes = [8, 1, 9, 8], strides = [1, 1, 1, 1]} : vector<9x2x9x8xbf16> to vector<8x1x9x8xbf16>
    %40 = vector.shape_cast %39 : vector<8x1x9x8xbf16> to vector<8x9x8xbf16>
    %41 = vector.extract_strided_slice %40 {offsets = [0, 0, 0], sizes = [8, 8, 8], strides = [1, 1, 1]} : vector<8x9x8xbf16> to vector<8x8x8xbf16>
    %c0_21 = arith.constant 0 : index
    %c0_22 = arith.constant 0 : index
    %c56 = arith.constant 56 : index
    %42 = vector.load %arg9[%c0_21, %c0_22, %c56] : memref<8x8x72xbf16, #tpu.memory_space<vmem>>, vector<8x8x8xbf16>
    tpu.vector_store %arg9[%c0_21, %c0_22, %c56], %41 {strides = array<i32>} : memref<8x8x72xbf16, #tpu.memory_space<vmem>>, vector<8x8x8xbf16>,
    %43 = vector.extract_strided_slice %5 {offsets = [1, 0, 0, 0], sizes = [8, 1, 9, 8], strides = [1, 1, 1, 1]} : vector<9x2x9x8xbf16> to vector<8x1x9x8xbf16>
    %44 = vector.shape_cast %43 : vector<8x1x9x8xbf16> to vector<8x9x8xbf16>
    %45 = vector.extract_strided_slice %44 {offsets = [0, 1, 0], sizes = [8, 8, 8], strides = [1, 1, 1]} : vector<8x9x8xbf16> to vector<8x8x8xbf16>
    %c0_23 = arith.constant 0 : index
    %c0_24 = arith.constant 0 : index
    %c64 = arith.constant 64 : index
    %46 = vector.load %arg9[%c0_23, %c0_24, %c64] : memref<8x8x72xbf16, #tpu.memory_space<vmem>>, vector<8x8x8xbf16>
    tpu.vector_store %arg9[%c0_23, %c0_24, %c64], %45 {strides = array<i32>} : memref<8x8x72xbf16, #tpu.memory_space<vmem>>, vector<8x8x8xbf16>,
    %c0_25 = arith.constant 0 : index
    %c0_26 = arith.constant 0 : index
    %c0_27 = arith.constant 0 : index
    %47 = vector.load %arg9[%c0_25, %c0_26, %c0_27] : memref<8x8x72xbf16, #tpu.memory_space<vmem>>, vector<8x8x72xbf16>
    %48 = vector.shape_cast %47 : vector<8x8x72xbf16> to vector<64x72xbf16>
    %c0_28 = arith.constant 0 : index
    %c0_29 = arith.constant 0 : index
    %49 = vector.load %arg4[%c0_28, %c0_29] : memref<72x8xbf16, #tpu.memory_space<vmem>>, vector<72x8xbf16>
    %cst = arith.constant dense<0.000000e+00> : vector<64x8xf32>
    %50 = tpu.matmul %48, %49, %cst {dimension_numbers = #tpu.dot_dimension_numbers<[1], [0], [0], [1], [0, 0, 1, 1], [], []>} : vector<64x72xbf16>, vector<72x8xbf16>, vector<64x8xf32> -> vector<64x8xf32>
    %c0_30 = arith.constant 0 : index
    %c0_31 = arith.constant 0 : index
    %51 = vector.load %arg5[%c0_30, %c0_31] : memref<1x8xf32, #tpu.memory_space<vmem>>, vector<1x8xf32>
    %52 = vector.broadcast %51 : vector<1x8xf32> to vector<64x8xf32>
    %53 = arith.mulf %50, %52 : vector<64x8xf32>
    %c0_32 = arith.constant 0 : index
    %c0_33 = arith.constant 0 : index
    %54 = vector.load %arg6[%c0_32, %c0_33] : memref<1x8xf32, #tpu.memory_space<vmem>>, vector<1x8xf32>
    %55 = vector.broadcast %54 : vector<1x8xf32> to vector<64x8xf32>
    %56 = arith.addf %53, %55 : vector<64x8xf32>
    %c0_i32 = arith.constant 0 : i32
    %57 = arith.cmpi eq, %arg1, %c0_i32 : i32
    %58 = arith.extui %57 : i1 to i32
    %c0_i32_34 = arith.constant 0 : i32
    %59 = arith.cmpi ne, %58, %c0_i32_34 : i32
    scf.if %59 {
      %cst_45 = arith.constant 0.000000e+00 : f32
      %72 = vector.broadcast %cst_45 : f32 to vector<1x8x8xf32>
      %c0_46 = arith.constant 0 : index
      %c0_47 = arith.constant 0 : index
      %c0_48 = arith.constant 0 : index
      %73 = vector.load %arg8[%c0_46, %c0_47, %c0_48] : memref<1x8x8xf32, #tpu.memory_space<vmem>>, vector<1x8x8xf32>
      tpu.vector_store %arg8[%c0_46, %c0_47, %c0_48], %72 {strides = array<i32>} : memref<1x8x8xf32, #tpu.memory_space<vmem>>, vector<1x8x8xf32>,
    } else {
    }
    %c0_35 = arith.constant 0 : index
    %c0_36 = arith.constant 0 : index
    %c0_37 = arith.constant 0 : index
    %60 = vector.load %arg8[%c0_35, %c0_36, %c0_37] : memref<1x8x8xf32, #tpu.memory_space<vmem>>, vector<1x1x8xf32>
    %61 = vector.shape_cast %60 : vector<1x1x8xf32> to vector<1x8xf32>
    %cst_38 = arith.constant dense<0.000000e+00> : vector<8xf32>
    %62 = vector.multi_reduction <add>, %56, %cst_38 [0] : vector<64x8xf32> to vector<8xf32>
    %63 = vector.shape_cast %62 : vector<8xf32> to vector<1x8xf32>
    %64 = arith.addf %61, %63 : vector<1x8xf32>
    %c0_39 = arith.constant 0 : index
    %c0_40 = arith.constant 0 : index
    %c0_41 = arith.constant 0 : index
    %65 = vector.load %arg8[%c0_39, %c0_40, %c0_41] : memref<1x8x8xf32, #tpu.memory_space<vmem>>, vector<1x1x8xf32>
    %66 = vector.shape_cast %65 : vector<1x1x8xf32> to vector<1x8xf32>
    %67 = vector.shape_cast %64 : vector<1x8xf32> to vector<1x1x8xf32>
    tpu.vector_store %arg8[%c0_39, %c0_40, %c0_41], %67 {strides = array<i32>} : memref<1x8x8xf32, #tpu.memory_space<vmem>>, vector<1x1x8xf32>,
    %68 = arith.truncf %56 : vector<64x8xf32> to vector<64x8xbf16>
    %c0_42 = arith.constant 0 : index
    %c0_43 = arith.constant 0 : index
    %c0_44 = arith.constant 0 : index
    %69 = vector.load %arg7[%c0_42, %c0_43, %c0_44] : memref<1x64x8xbf16, #tpu.memory_space<vmem>>, vector<1x64x8xbf16>
    %70 = vector.shape_cast %69 : vector<1x64x8xbf16> to vector<64x8xbf16>
    %71 = vector.shape_cast %68 : vector<64x8xbf16> to vector<1x64x8xbf16>
    tpu.vector_store %arg7[%c0_42, %c0_43, %c0_44], %71 {strides = array<i32>} : memref<1x64x8xbf16, #tpu.memory_space<vmem>>, vector<1x64x8xbf16>,
    return
  }
  func.func @transform_0(%arg0: i32, %arg1: i32) -> (i32, i32, i32, i32) {
    %c0_i32 = arith.constant 0 : i32
    %c0_i32_0 = arith.constant 0 : i32
    %c0_i32_1 = arith.constant 0 : i32
    %c0_i32_2 = arith.constant 0 : i32
    return %arg0, %c0_i32, %c0_i32_0, %c0_i32_1 : i32, i32, i32, i32
  }
  func.func @transform_1(%arg0: i32, %arg1: i32) -> (i32, i32, i32, i32) {
    %c0_i32 = arith.constant 0 : i32
    %c0_i32_0 = arith.constant 0 : i32
    %c0_i32_1 = arith.constant 0 : i32
    %c0_i32_2 = arith.constant 0 : i32
    return %arg0, %c0_i32, %c0_i32_0, %c0_i32_1 : i32, i32, i32, i32
  }
  func.func @transform_2(%arg0: i32, %arg1: i32) -> (i32, i32) {
    %c0_i32 = arith.constant 0 : i32
    %c0_i32_0 = arith.constant 0 : i32
    %c0_i32_1 = arith.constant 0 : i32
    return %c0_i32, %c0_i32_0 : i32, i32
  }
  func.func @transform_3(%arg0: i32, %arg1: i32) -> (i32, i32) {
    %c0_i32 = arith.constant 0 : i32
    %c0_i32_0 = arith.constant 0 : i32
    %c0_i32_1 = arith.constant 0 : i32
    return %c0_i32, %c0_i32_0 : i32, i32
  }
  func.func @transform_4(%arg0: i32, %arg1: i32) -> (i32, i32) {
    %c0_i32 = arith.constant 0 : i32
    %c0_i32_0 = arith.constant 0 : i32
    %c0_i32_1 = arith.constant 0 : i32
    return %c0_i32, %c0_i32_0 : i32, i32
  }
  func.func @transform_5(%arg0: i32, %arg1: i32) -> (i32, i32, i32) {
    %c0_i32 = arith.constant 0 : i32
    %c0_i32_0 = arith.constant 0 : i32
    return %arg0, %arg1, %c0_i32 : i32, i32, i32
  }
  func.func @transform_6(%arg0: i32, %arg1: i32) -> (i32, i32, i32) {
    %c0_i32 = arith.constant 0 : i32
    %c0_i32_0 = arith.constant 0 : i32
    %c0_i32_1 = arith.constant 0 : i32
    return %arg0, %c0_i32, %c0_i32_0 : i32, i32, i32
  }
}

module attributes {stable_mosaic.version = 11 : i64} {
  func.func @_conv1x1_bn_kernel(%arg0: i32, %arg1: memref<128x4xbf16, #tpu.memory_space<vmem>>, %arg2: memref<4x8xbf16, #tpu.memory_space<vmem>>, %arg3: memref<1x8xf32, #tpu.memory_space<vmem>>, %arg4: memref<1x8xf32, #tpu.memory_space<vmem>>, %arg5: memref<128x8xbf16, #tpu.memory_space<vmem>>) attributes {dimension_semantics = [#tpu.dimension_semantics<parallel>], iteration_bounds = array<i64: 1>, scalar_prefetch = 0 : i64, scratch_operands = 0 : i64, tpu.core_type = #tpu.core_type<tc>, window_params = [{transform_indices = @transform_0, window_bounds = array<i64: 128, 4>}, {pipeline_mode = #tpu.pipeline_mode<synchronous>, transform_indices = @transform_1, window_bounds = array<i64: 4, 8>}, {pipeline_mode = #tpu.pipeline_mode<synchronous>, transform_indices = @transform_2, window_bounds = array<i64: 1, 8>}, {pipeline_mode = #tpu.pipeline_mode<synchronous>, transform_indices = @transform_3, window_bounds = array<i64: 1, 8>}, {transform_indices = @transform_4, window_bounds = array<i64: 128, 8>}]} {
    %c0 = arith.constant 0 : index
    %c0_0 = arith.constant 0 : index
    %0 = vector.load %arg1[%c0, %c0_0] : memref<128x4xbf16, #tpu.memory_space<vmem>>, vector<128x4xbf16>
    %c0_1 = arith.constant 0 : index
    %c0_2 = arith.constant 0 : index
    %1 = vector.load %arg2[%c0_1, %c0_2] : memref<4x8xbf16, #tpu.memory_space<vmem>>, vector<4x8xbf16>
    %cst = arith.constant dense<0.000000e+00> : vector<128x8xf32>
    %2 = tpu.matmul %0, %1, %cst {dimension_numbers = #tpu.dot_dimension_numbers<[1], [0], [0], [1], [0, 0, 1, 1], [], []>} : vector<128x4xbf16>, vector<4x8xbf16>, vector<128x8xf32> -> vector<128x8xf32>
    %c0_3 = arith.constant 0 : index
    %c0_4 = arith.constant 0 : index
    %3 = vector.load %arg3[%c0_3, %c0_4] : memref<1x8xf32, #tpu.memory_space<vmem>>, vector<1x8xf32>
    %4 = vector.broadcast %3 : vector<1x8xf32> to vector<128x8xf32>
    %5 = arith.mulf %2, %4 : vector<128x8xf32>
    %c0_5 = arith.constant 0 : index
    %c0_6 = arith.constant 0 : index
    %6 = vector.load %arg4[%c0_5, %c0_6] : memref<1x8xf32, #tpu.memory_space<vmem>>, vector<1x8xf32>
    %7 = vector.broadcast %6 : vector<1x8xf32> to vector<128x8xf32>
    %8 = arith.addf %5, %7 : vector<128x8xf32>
    %9 = arith.truncf %8 : vector<128x8xf32> to vector<128x8xbf16>
    %c0_7 = arith.constant 0 : index
    %c0_8 = arith.constant 0 : index
    %10 = vector.load %arg5[%c0_7, %c0_8] : memref<128x8xbf16, #tpu.memory_space<vmem>>, vector<128x8xbf16>
    tpu.vector_store %arg5[%c0_7, %c0_8], %9 {strides = array<i32>} : memref<128x8xbf16, #tpu.memory_space<vmem>>, vector<128x8xbf16>,
    return
  }
  func.func @transform_0(%arg0: i32) -> (i32, i32) {
    %c0_i32 = arith.constant 0 : i32
    %c0_i32_0 = arith.constant 0 : i32
    return %arg0, %c0_i32 : i32, i32
  }
  func.func @transform_1(%arg0: i32) -> (i32, i32) {
    %c0_i32 = arith.constant 0 : i32
    %c0_i32_0 = arith.constant 0 : i32
    %c0_i32_1 = arith.constant 0 : i32
    return %c0_i32, %c0_i32_0 : i32, i32
  }
  func.func @transform_2(%arg0: i32) -> (i32, i32) {
    %c0_i32 = arith.constant 0 : i32
    %c0_i32_0 = arith.constant 0 : i32
    %c0_i32_1 = arith.constant 0 : i32
    return %c0_i32, %c0_i32_0 : i32, i32
  }
  func.func @transform_3(%arg0: i32) -> (i32, i32) {
    %c0_i32 = arith.constant 0 : i32
    %c0_i32_0 = arith.constant 0 : i32
    %c0_i32_1 = arith.constant 0 : i32
    return %c0_i32, %c0_i32_0 : i32, i32
  }
  func.func @transform_4(%arg0: i32) -> (i32, i32) {
    %c0_i32 = arith.constant 0 : i32
    %c0_i32_0 = arith.constant 0 : i32
    return %arg0, %c0_i32 : i32, i32
  }
}

module attributes {stable_mosaic.version = 11 : i64} {
  func.func @kernel(%arg0: i32, %arg1: i32, %arg2: memref<1x8x8xf32, #tpu.memory_space<vmem>>, %arg3: memref<8x4xf32, #tpu.memory_space<vmem>>, %arg4: memref<4x8xf32, #tpu.memory_space<vmem>>, %arg5: memref<1x64x8xbf16, #tpu.memory_space<vmem>>, %arg6: memref<1x64x8xbf16, #tpu.memory_space<vmem>>, %arg7: memref<1x64x8xf32, #tpu.memory_space<vmem>>) attributes {dimension_semantics = [#tpu.dimension_semantics<parallel>, #tpu.dimension_semantics<parallel>], iteration_bounds = array<i64: 2, 1>, scalar_prefetch = 0 : i64, scratch_operands = 0 : i64, tpu.core_type = #tpu.core_type<tc>, window_params = [{transform_indices = @transform_0, window_bounds = array<i64: 1, 8, 8>}, {pipeline_mode = #tpu.pipeline_mode<synchronous>, transform_indices = @transform_1, window_bounds = array<i64: 8, 4>}, {pipeline_mode = #tpu.pipeline_mode<synchronous>, transform_indices = @transform_2, window_bounds = array<i64: 4, 8>}, {transform_indices = @transform_3, window_bounds = array<i64: 1, 64, 8>}, {transform_indices = @transform_4, window_bounds = array<i64: 1, 64, 8>}, {transform_indices = @transform_5, window_bounds = array<i64: 1, 64, 8>}]} {
    %c0 = arith.constant 0 : index
    %c0_0 = arith.constant 0 : index
    %c0_1 = arith.constant 0 : index
    %0 = vector.load %arg2[%c0, %c0_0, %c0_1] : memref<1x8x8xf32, #tpu.memory_space<vmem>>, vector<1x1x8xf32>
    %1 = vector.shape_cast %0 : vector<1x1x8xf32> to vector<1x8xf32>
    %cst = arith.constant 1.562500e-02 : f32
    %2 = vector.broadcast %cst : f32 to vector<1x8xf32>
    %3 = arith.mulf %1, %2 : vector<1x8xf32>
    %c0_2 = arith.constant 0 : index
    %c0_3 = arith.constant 0 : index
    %4 = vector.load %arg3[%c0_2, %c0_3] : memref<8x4xf32, #tpu.memory_space<vmem>>, vector<8x4xf32>
    %cst_4 = arith.constant dense<0.000000e+00> : vector<1x4xf32>
    %5 = tpu.matmul %3, %4, %cst_4 {dimension_numbers = #tpu.dot_dimension_numbers<[1], [0], [0], [1], [0, 0, 1, 1], [], []>} : vector<1x8xf32>, vector<8x4xf32>, vector<1x4xf32> -> vector<1x4xf32>
    %cst_5 = arith.constant 0.000000e+00 : f32
    %6 = vector.broadcast %cst_5 : f32 to vector<1x4xf32>
    %7 = arith.maximumf %5, %6 : vector<1x4xf32>
    %c0_6 = arith.constant 0 : index
    %c0_7 = arith.constant 0 : index
    %8 = vector.load %arg4[%c0_6, %c0_7] : memref<4x8xf32, #tpu.memory_space<vmem>>, vector<4x8xf32>
    %cst_8 = arith.constant dense<0.000000e+00> : vector<1x8xf32>
    %9 = tpu.matmul %7, %8, %cst_8 {dimension_numbers = #tpu.dot_dimension_numbers<[1], [0], [0], [1], [0, 0, 1, 1], [], []>} : vector<1x4xf32>, vector<4x8xf32>, vector<1x8xf32> -> vector<1x8xf32>
    %10 = arith.negf %9 : vector<1x8xf32>
    %11 = math.exp %10 : vector<1x8xf32>
    %cst_9 = arith.constant 1.000000e+00 : f32
    %12 = vector.broadcast %cst_9 : f32 to vector<1x8xf32>
    %13 = arith.addf %12, %11 : vector<1x8xf32>
    %14 = arith.divf %12, %13 : vector<1x8xf32>
    %c0_10 = arith.constant 0 : index
    %c0_11 = arith.constant 0 : index
    %c0_12 = arith.constant 0 : index
    %15 = vector.load %arg5[%c0_10, %c0_11, %c0_12] : memref<1x64x8xbf16, #tpu.memory_space<vmem>>, vector<1x64x8xbf16>
    %16 = vector.shape_cast %15 : vector<1x64x8xbf16> to vector<64x8xbf16>
    %17 = arith.extf %16 : vector<64x8xbf16> to vector<64x8xf32>
    %18 = vector.broadcast %14 : vector<1x8xf32> to vector<64x8xf32>
    %19 = arith.mulf %17, %18 : vector<64x8xf32>
    %c0_13 = arith.constant 0 : index
    %c0_14 = arith.constant 0 : index
    %c0_15 = arith.constant 0 : index
    %20 = vector.load %arg6[%c0_13, %c0_14, %c0_15] : memref<1x64x8xbf16, #tpu.memory_space<vmem>>, vector<1x64x8xbf16>
    %21 = vector.shape_cast %20 : vector<1x64x8xbf16> to vector<64x8xbf16>
    %22 = arith.extf %21 : vector<64x8xbf16> to vector<64x8xf32>
    %23 = arith.addf %19, %22 : vector<64x8xf32>
    %c0_16 = arith.constant 0 : index
    %c0_17 = arith.constant 0 : index
    %c0_18 = arith.constant 0 : index
    %24 = vector.load %arg7[%c0_16, %c0_17, %c0_18] : memref<1x64x8xf32, #tpu.memory_space<vmem>>, vector<1x64x8xf32>
    %25 = vector.shape_cast %24 : vector<1x64x8xf32> to vector<64x8xf32>
    %26 = vector.shape_cast %23 : vector<64x8xf32> to vector<1x64x8xf32>
    tpu.vector_store %arg7[%c0_16, %c0_17, %c0_18], %26 {strides = array<i32>} : memref<1x64x8xf32, #tpu.memory_space<vmem>>, vector<1x64x8xf32>,
    return
  }
  func.func @transform_0(%arg0: i32, %arg1: i32) -> (i32, i32, i32) {
    %c0_i32 = arith.constant 0 : i32
    %c0_i32_0 = arith.constant 0 : i32
    %c0_i32_1 = arith.constant 0 : i32
    return %arg0, %c0_i32, %c0_i32_0 : i32, i32, i32
  }
  func.func @transform_1(%arg0: i32, %arg1: i32) -> (i32, i32) {
    %c0_i32 = arith.constant 0 : i32
    %c0_i32_0 = arith.constant 0 : i32
    %c0_i32_1 = arith.constant 0 : i32
    return %c0_i32, %c0_i32_0 : i32, i32
  }
  func.func @transform_2(%arg0: i32, %arg1: i32) -> (i32, i32) {
    %c0_i32 = arith.constant 0 : i32
    %c0_i32_0 = arith.constant 0 : i32
    %c0_i32_1 = arith.constant 0 : i32
    return %c0_i32, %c0_i32_0 : i32, i32
  }
  func.func @transform_3(%arg0: i32, %arg1: i32) -> (i32, i32, i32) {
    %c0_i32 = arith.constant 0 : i32
    %c0_i32_0 = arith.constant 0 : i32
    return %arg0, %arg1, %c0_i32 : i32, i32, i32
  }
  func.func @transform_4(%arg0: i32, %arg1: i32) -> (i32, i32, i32) {
    %c0_i32 = arith.constant 0 : i32
    %c0_i32_0 = arith.constant 0 : i32
    return %arg0, %arg1, %c0_i32 : i32, i32, i32
  }
  func.func @transform_5(%arg0: i32, %arg1: i32) -> (i32, i32, i32) {
    %c0_i32 = arith.constant 0 : i32
    %c0_i32_0 = arith.constant 0 : i32
    return %arg0, %arg1, %c0_i32 : i32, i32, i32
  }
}

</mosaic_0001>

<bundles_post_ra>
// kernel: ibottleneck_forward.7
= control target key start
LH: loop header
LB: loop body
LE: loop exit
PB: predicated region body
PF: predicated region fallthrough
CT: control target
= control target key end

     0   :  { %10 = vsyncpa [#allocation3], 0  ;;  %s1052_s0 = inlined_call_operand.vmem [shape: f32[2,8,8], index: 0, kind: input, shape index: {}]   ;;  %s1053_s1 = inlined_call_operand.vmem [shape: f32[8,4], index: 1, kind: input, shape index: {}]   ;;  %s1054_s2 = inlined_call_operand.vmem [shape: f32[4,8], index: 2, kind: input, shape index: {}]   ;;  %s1055_s3 = inlined_call_operand.vmem [shape: bf16[2,64,8], index: 3, kind: input, shape index: {}]   ;;  %s1056_s4 = inlined_call_operand.vmem [shape: bf16[2,64,8], index: 4, kind: input, shape index: {}]   ;;  %s1057_s5 = inlined_call_operand.hbm [shape: f32[2,64,8], index: 5, kind: output, shape index: {}]  }
   0x1   :  { %12 = vsyncpa [#allocation3 + $0x1], 0  ;;  %s908_s18 = smov 0   ;;  %s910_s19 = smov 0  }
   0x2   :  { %s912_s20 = smov 0   ;;  %s914_s21 = smov 0  }
   0x3   :  { %s916_s22 = smov 0   ;;  %s918_s23 = smov 0  }
   0x4 LB: > { %s655_s24 = sadd.s32 4294967295, %s871_s23   ;;  %s656_s25 = sadd.s32 4294967294, %s871_s23   ;;  %s871_s23 = sphi %s918_s23, %s18_s23   ;;  %s867_s22 = sphi %s916_s22, %s1064_s22   ;;  %s863_s21 = sphi %s914_s21, %s1063_s21   ;;  %s859_s20 = sphi %s912_s20, %s1062_s20   ;;  %s855_s19 = sphi %s910_s19, %s1061_s19   ;;  %s851_s18 = sphi %s908_s18, %s1060_s18  }
   0x5   : > { %s30_s26 = sadd.s32 1, %s867_s22  ;;  %s163_s27 = sadd.s32 1, %s859_s20 }
   0x6   : > { %p32_p0 = scmp.ge.s32.totalorder %s30_s26, 2  ;;  %p173_p1 = scmp.ne.s32.totalorder %s859_s20, %s855_s19 }
   0x7   : > { %p174_p2 = scmp.eq.s32.totalorder %s655_s24, 1  ;;  %p179_p3 = scmp.ne.s32.totalorder %s855_s19, %s851_s18 }
   0x8   : > { %s1066_s26 = smov (%p32_p0, %s30_s26), 0  ;;  %p180_p5 = scmp.eq.s32.totalorder %s656_s25, 1 }
   0x9   : > { %p948_p4 = por %p174_p2, %p173_p1  ;;  %s158_s29 = ssub.s32 %s867_s22, %s1066_s26 }
   0xa   : > { %p659_p6 = scmp.ge.s32.totalorder %s871_s23, 1  ;;  %p161_p7 = scmp.eq.s32.totalorder %s158_s29, 0 }
   0xb   : > { %p955_p8 = por %p180_p5, %p179_p3  ;;  %p237_p9 = scmp.lt.s32.totalorder %s871_s23, 3 }
   0xc   : > { %s961_s6 = scalar_select %p161_p7, %s859_s20, %s163_s27  }
   0xd   : > { %p238_p10 = pnand %p659_p6, %p237_p9 }
   0xe   : > { %v309_v0 = vld [vmem:[%s1053_s1] sm:$0xff] (!%p238_p10)  ;;  %p282_p11 = scmp.lt.s32.totalorder (!%p238_p10), %s863_s21, 1  ;;  %v873_v1 = vmov (!%p238_p10), 0.0   ;;  %vm874_vm0 = vmmov (!%p238_p10), 0   ;;  %vm310_vm1 = vcmask (!%p238_p10), 64512   ;;  %vm390_vm2 = vcmask (!%p238_p10), 1043456  }
   0xf   : > { %241 = sbr.rel (%p238_p10) target bundleno = 505 (0x1f9), region = 40  ;;  %720 = vmatprep.subr.mxu0 (!%p238_p10), %v873_v1  ;;  %722 = vmatprep.mubr.msk.f32.mxu0 (!%p238_p10), %vm874_vm0, %v873_v1  ;;  %v385_v4 = vld [vmem:[%s1054_s2] sm:$0xf] (!%p238_p10)  ;;  %vm386_vm3 = vcmask (!%p238_p10), 31744   ;;  %v486_v13 = vlaneseq (!%p238_p10)  ;;  %s279_s27 = sand.u32 (!%p238_p10), 1, %s855_s19  }
  0x10   : > { %721 = vmatpush3.msra.mxu0 (!%p238_p10), %v309_v0  ;;  %725 = vmatprep.subr.mxu1 (!%p238_p10), %v873_v1  ;;  %s875_s17 = smov (!%p238_p10), [#allocation2]  }
  0x11   : > { %727 = vmatprep.mubr.msk.f32.mxu1 (!%p238_p10), %vm874_vm0, %v873_v1  ;;  %726 = vmatpush3.msk.msra.mxu1 (!%p238_p10), %vm390_vm2, %v385_v4  ;;  %v487_v14 = vshrl.u32 (!%p238_p10), %v486_v13, 7  ;;  %s797_s24 = sshll.u32 (!%p238_p10), %s875_s17, 4  ;;  %s798_s24 = int_to_ptr.vmem [resolvable:$false] %s797_s24 }
  0x13   : > { %v488_v20 = vsub.s32 (!%p238_p10), 0, %v487_v14 }
  0x16   : > { %s968_s9 = scalar_select %p282_p11, %s863_s21, 1 }
  0x18   : > { %s661_s10 = sshll.u32 %s968_s9, 3  ;;  %s675_s16 = sshll.u32 %s968_s9, 5 }
  0x19   : > { %s285_s13 = scalar_lea.vmem %s1052_s0, %s661_s10  ;;  %s294_s25 = scalar_lea.vmem %s1055_s3, %s675_s16 }
  0x1a   : > { %v307_v2 = vld [vmem:[%s285_s13] sm:$0x1]  ;;  %s304_s8 = scalar_lea.vmem %s1056_s4, %s675_s16  ;;  %v710_v16 = vld [vmem:[%s294_s25 + $0x8] sm:$0xff]   ;;  %v711_v17 = vld [vmem:[%s294_s25 + $0x10] sm:$0xff]   ;;  %s660_s10 = sshll.u32 %s279_s27, 6 }
  0x1b   : > { %v308_v3 = vmul.f32 0.015625, %v307_v2  ;;  %v679_v15 = vld [vmem:[%s294_s25] sm:$0xff]   ;;  %v712_v18 = vld [vmem:[%s294_s25 + $0x18] sm:$0xff]   ;;  %v713_v22 = vld [vmem:[%s304_s8 + $0x8] sm:$0xff]   ;;  %v684_v24 = vunpack.c.l.bf16 %v710_v16  ;;  %v685_v25 = vunpack.c.h.bf16 %v710_v16  ;;  %v688_v26 = vunpack.c.l.bf16 %v711_v17  ;;  %s677_s9 = sshll.u32 %s863_s21, 10  ;;  %s281_s11 = scalar_lea.vmem [#allocation2], %s660_s10 }
  0x1c   : > { %v695_v19 = vld [vmem:[%s304_s8] sm:$0xff]   ;;  %v680_v21 = vunpack.c.l.bf16 %v679_v15  ;;  %v681_v23 = vunpack.c.h.bf16 %v679_v15  ;;  %v714_v27 = vld [vmem:[%s304_s8 + $0x10] sm:$0xff]   ;;  %v715_v28 = vld [vmem:[%s304_s8 + $0x18] sm:$0xff]   ;;  %v689_v30 = vunpack.c.h.bf16 %v711_v17  ;;  %v692_v31 = vunpack.c.l.bf16 %v712_v18  ;;  %s546_s12 = sshll.u32 %s281_s11, 4  ;;  %s992_s15 = scalar_lea.hbm %s1057_s5, %s677_s9  ;;  %s994_s12 = int_to_ptr.vmem [resolvable:$true] %s546_s12 }
  0x1d   : > { %723 = vmatmul.mubr.msk.f32.vlgmr.msra.gmra.mrb[0].mxu0 %vm310_vm1, %v308_v3  ;;  %v693_v32 = vunpack.c.h.bf16 %v712_v18  ;;  %v696_v33 = vunpack.c.l.bf16 %v695_v19  ;;  %v697_v34 = vunpack.c.h.bf16 %v695_v19  ;;  %v700_v35 = vunpack.c.l.bf16 %v713_v22  ;;  %s1006_s21 = scalar_lea.sflag [#allocation3], %s279_s27  ;;  %s793_s16 = scalar_lea.vmem %s994_s12, 1024 }
  0x1e   : > { %v701_v36 = vunpack.c.h.bf16 %v713_v22  ;;  %v704_v38 = vunpack.c.l.bf16 %v714_v27  ;;  %v705_v39 = vunpack.c.h.bf16 %v714_v27  ;;  %v708_v40 = vunpack.c.l.bf16 %v715_v28  ;;  %p794_p12 = scmp.ne.s32.totalorder %s994_s12, %s793_s16  ;;  %s799_s25 = scalar_lea.vmem %s798_s24, 2048 }
  0x1f   : > { %v709_v41 = vunpack.c.h.bf16 %v715_v28  ;;  %p800_p1 = scmp.lt.s32.totalorder %s994_s12, %s798_s24  ;;  %p801_p2 = scmp.lt.s32.totalorder %s799_s25, %s793_s16 }
  0x20   : > { %p795_p13 = pnand %p794_p12, %p948_p4 }
  0x21   : > { %p802_p3 = por %p801_p2, %p800_p1 }
  0x22   : > { %p796_p0 = pneg %p795_p13 }
  0x24   : > { %p803_p5 = pnand %p802_p3, %p796_p0 }
  0xf0   : > { %v380_v5 = vpop.f32.mrb[0].mxu0 }
  0xf1   : > { %v384_v6 = vmax.f32 %v380_v5, 0.0  ;;  %v724_v7 = vpop.f32.mrb[1].mxu0 }
  0xf3   : > { %728 = vmatmul.mubr.msk.f32.vlgmr.msra.gmra.mrb[0].mxu1 %vm386_vm3, %v384_v6 }
 0x1c6   : > { %v460_v8 = vpop.f32.mrb[0].mxu1 }
 0x1c7   : > { %v669_v9 = vmul.f32 -1.442695, %v460_v8  ;;  %v729_v10 = vpop.f32.mrb[1].mxu1 }
 0x1c9   : > { %789 = vpow2.f32 %v669_v9 }
 0x1d3   : > { %v790_v11 = vpop.eup %789 }
 0x1d4   : > { %v467_v12 = vadd.f32 1.0, %v790_v11 }
 0x1d6   : > { %791 = vrcp.f32 %v467_v12 }
 0x1e0   : > { %v792_v29 = vpop.eup %791 }
 0x1e1   : > { %v489_v37 = vrot.slane %v792_v29, %v488_v20 }
 0x1e3   : > { %v490_v42 = vmul.f32 %v680_v21, %v489_v37  ;;  %v491_v43 = vmul.f32 %v681_v23, %v489_v37  ;;  %v492_v44 = vmul.f32 %v684_v24, %v489_v37  ;;  %v493_v45 = vmul.f32 %v685_v25, %v489_v37 }
 0x1e4   : > { %v494_v46 = vmul.f32 %v688_v26, %v489_v37  ;;  %v495_v47 = vmul.f32 %v689_v30, %v489_v37  ;;  %v496_v48 = vmul.f32 %v692_v31, %v489_v37  ;;  %v497_v49 = vmul.f32 %v693_v32, %v489_v37 }
 0x1e5   : > { %v514_v50 = vadd.f32 %v696_v33, %v490_v42  ;;  %v515_v51 = vadd.f32 %v697_v34, %v491_v43  ;;  %v516_v52 = vadd.f32 %v700_v35, %v492_v44  ;;  %v517_v53 = vadd.f32 %v701_v36, %v493_v45 }
 0x1e6   : > { %v518_v54 = vadd.f32 %v704_v38, %v494_v46  ;;  %v519_v55 = vadd.f32 %v705_v39, %v495_v47  ;;  %v520_v56 = vadd.f32 %v708_v40, %v496_v48  ;;  %v521_v57 = vadd.f32 %v709_v41, %v497_v49 }
 0x1e7   : > { %522 = vst.msk [vmem:[%s281_s11] sm:$0xff] %vm310_vm1, %v514_v50  ;;  %523 = vst.msk [vmem:[%s281_s11 + $0x8] sm:$0xff] %vm310_vm1, %v515_v51 }
 0x1e8   : > { %524 = vst.msk [vmem:[%s281_s11 + $0x10] sm:$0xff] %vm310_vm1, %v516_v52  ;;  %525 = vst.msk [vmem:[%s281_s11 + $0x18] sm:$0xff] %vm310_vm1, %v517_v53 }
 0x1e9   : > { %526 = vst.msk [vmem:[%s281_s11 + $0x20] sm:$0xff] %vm310_vm1, %v518_v54  ;;  %527 = vst.msk [vmem:[%s281_s11 + $0x28] sm:$0xff] %vm310_vm1, %v519_v55 }
 0x1ea   : > { %528 = vst.msk [vmem:[%s281_s11 + $0x30] sm:$0xff] %vm310_vm1, %v520_v56  ;;  %529 = vst.msk [vmem:[%s281_s11 + $0x38] sm:$0xff] %vm310_vm1, %v521_v57 }
 0x1eb   : > { %806 = shalt.err (!%p803_p5)
}
 0x1ec   : > { %s807_s27 = scalar_lea.hbm %s992_s15, 1024  ;;  %s811_s8 = scalar_lea.hbm %s1057_s5, 2048 }
 0x1ed   : > { %p808_p6 = scmp.ne.s32.totalorder %s992_s15, %s807_s27  ;;  %p812_p10 = scmp.lt.u32.totalorder %s992_s15, %s1057_s5 }
 0x1ee   : > { %p813_p11 = scmp.lt.u32.totalorder %s811_s8, %s807_s27  ;;  %p815_p13 = scmp.lt.u32.totalorder %s807_s27, %s992_s15 }
 0x1ef   : > { %p809_p7 = pnand %p808_p6, %p948_p4 }
 0x1f0   : > { %p814_p12 = por %p813_p11, %p812_p10 }
 0x1f1   : > { %p810_p9 = pneg %p809_p7 }
 0x1f2   : > { %p816_p0 = por %p815_p13, %p814_p12 }
 0x1f4   : > { %p817_p1 = pnand %p816_p0, %p810_p9 }
 0x1f6   : > { %820 = shalt.err (!%p817_p1)
}
 0x1f7   : > { %s876_s11 = smov 128   ;;  %s877_s13 = smov 8  }
 0x1f8   : > { %730 = dma.vmem_to_hbm [thread:$0]  (%p948_p4), %s994_s12, 1024, %s992_s15, %s1006_s21, %s876_s11, %s876_s11, %s877_s13  }
 0x1f9 PF: > { %p736_p2 = scmp.ge.s32.totalorder %s871_s23, 2  ;;  %s561_s14 = sand.u32 1, %s851_s18  }
 0x1fa   : > { %s562_s16 = scalar_lea.sflag [#allocation3], %s561_s14 }
 0x1fb   : > { %p733_p3 = pnand %p736_p2, %p955_p8 }
 0x1fd   : > { %846 = dma.done.wait (!%p733_p3), %s562_s16, 1024  }
 0x1fe   : > { %848 = vsyncadd (!%p733_p3), %s562_s16, 4294966272  ;;  %s18_s23 = sadd.s32 1, %s871_s23   ;;  %s1060_s18 = smov %s855_s19 }
 0x1ff   : > { %p15_p5 = scmp.ge.s32.totalorder %s18_s23, 4   ;;  %s1061_s19 = smov %s859_s20 }
 0x200   : > { %s1062_s20 = smov %s961_s6  ;;  %s1063_s21 = smov %s867_s22 }
 0x201   : > { %s1064_s22 = smov %s1066_s26  ;;  %17 = sbr.rel (!%p15_p5) target bundleno = 4 (0x4), region = 81 }
 0x208   :  { %567 = vsyncpa [#allocation3], 1 }
 0x209   :  { %569 = vsyncpa [#allocation3 + $0x1], 1 }

// kernel: ibottleneck_forward.5
= control target key start
LH: loop header
LB: loop body
LE: loop exit
PB: predicated region body
PF: predicated region fallthrough
CT: control target
= control target key end

     0   :  { %vm100_vm0 = vcmask 1041408   ;;  %vm75_vm1 = vcmask 31744   ;;  %vm311_vm2 = vcmask 60416   ;;  %s587_s1 = inlined_call_operand.vmem [shape: bf16[4,8], index: 1, kind: input, shape index: {}]   ;;  %s588_s0 = inlined_call_operand.vmem [shape: bf16[128,4], index: 0, kind: input, shape index: {}]   ;;  %s589_s2 = inlined_call_operand.vmem [shape: f32[1,8], index: 2, kind: input, shape index: {}]   ;;  %s590_s3 = inlined_call_operand.vmem [shape: f32[1,8], index: 3, kind: input, shape index: {}]   ;;  %s591_s4 = inlined_call_operand.vmem [shape: bf16[128,8], index: 4, kind: output, shape index: {}]  }
   0x1   :  { %v34_v0 = vld [vmem:[%s587_s1] sm:$0x3]  ;;  %v415_v4 = vld [vmem:[%s588_s0 + $0x8] sm:$0xff]   ;;  %v417_v6 = vld [vmem:[%s588_s0 + $0x10] sm:$0xff]  }
   0x2   :  { %411 = vmatprep.subr.msk.bf16.mxu0 %vm100_vm0, %v34_v0  ;;  %412 = vmatprep.subr.msk.bf16.mxu1 %vm100_vm0, %v34_v0  ;;  %v102_v1 = vsel %vm100_vm0, %v34_v0, 0  ;;  %v413_v2 = vld [vmem:[%s588_s0] sm:$0xff]   ;;  %v416_v5 = vld [vmem:[%s588_s0 + $0x28] sm:$0xff]   ;;  %v418_v7 = vld [vmem:[%s588_s0 + $0x30] sm:$0xff]  }
   0x3   :  { %392 = vmatpush3.bf16.msra.mxu0 %v102_v1  ;;  %410 = vmatpush3.bf16.msra.mxu1 %v102_v1  ;;  %v414_v3 = vld [vmem:[%s588_s0 + $0x20] sm:$0xff]   ;;  %v419_v8 = vld [vmem:[%s588_s0 + $0x18] sm:$0xff]  }
   0x4   :  { %393 = vmatprep.mubr.msk.bf16.mxu0 %vm75_vm1, %v413_v2  ;;  %401 = vmatprep.mubr.msk.bf16.mxu1 %vm75_vm1, %v414_v3  ;;  %v420_v9 = vld [vmem:[%s588_s0 + $0x38] sm:$0xff]   ;;  %v484_v10 = vld [vmem:[%s589_s2] ss:$0 sm:$0xff] }
   0x5   :  { %v489_v12 = vld [vmem:[%s590_s3] ss:$0 sm:$0xff] }
   0x6   :  { %394 = vmatmul.mubr.msk.bf16.vlgmr.msra.gmra.mrb[0].mxu0 %vm75_vm1, %v415_v4  ;;  %402 = vmatmul.mubr.msk.bf16.vlgmr.msra.gmra.mrb[0].mxu1 %vm75_vm1, %v416_v5 }
   0x7   :  { %397 = vmatprep.mubr.msk.bf16.mxu0 %vm75_vm1, %v417_v6  ;;  %405 = vmatprep.mubr.msk.bf16.mxu1 %vm75_vm1, %v418_v7 }
   0xe   :  { %398 = vmatmul.mubr.msk.bf16.gmra.mrb[4].mxu0 %vm75_vm1, %v419_v8  ;;  %406 = vmatmul.mubr.msk.bf16.gmra.mrb[4].mxu1 %vm75_vm1, %v420_v9 }
  0xd9   :  { %v395_v11 = vpop.f32.mrb[0].mxu0  ;;  %v403_v14 = vpop.f32.mrb[0].mxu1 }
  0xda   :  { %v210_v13 = vmul.f32 %v395_v11, %v484_v10  ;;  %v138_v15 = vpop.f32.mrb[1].mxu0  ;;  %v218_v16 = vmul.f32 %v403_v14, %v484_v10  ;;  %v170_v18 = vpop.f32.mrb[1].mxu1 }
  0xdb   :  { %v208_v17 = vmul.f32 %v484_v10, %v138_v15  ;;  %v396_v19 = vpop.f32.mrb[2].mxu0  ;;  %v216_v21 = vmul.f32 %v484_v10, %v170_v18  ;;  %v404_v23 = vpop.f32.mrb[2].mxu1 }
  0xdc   :  { %v233_v20 = vadd.f32 %v489_v12, %v210_v13  ;;  %v211_v22 = vmul.f32 %v396_v19, %v484_v10  ;;  %v141_v24 = vpop.f32.mrb[3].mxu0  ;;  %v241_v25 = vadd.f32 %v489_v12, %v218_v16  ;;  %v219_v27 = vmul.f32 %v404_v23, %v484_v10  ;;  %v173_v29 = vpop.f32.mrb[3].mxu1 }
  0xdd   :  { %v231_v26 = vadd.f32 %v489_v12, %v208_v17  ;;  %v209_v28 = vmul.f32 %v484_v10, %v141_v24  ;;  %v239_v31 = vadd.f32 %v489_v12, %v216_v21  ;;  %v217_v33 = vmul.f32 %v484_v10, %v173_v29 }
  0xde   :  { %v368_v30 = vpack.c.bf16 %v233_v20, %v233_v20  ;;  %v234_v32 = vadd.f32 %v489_v12, %v211_v22  ;;  %v376_v34 = vpack.c.bf16 %v241_v25, %v241_v25  ;;  %v242_v36 = vadd.f32 %v489_v12, %v219_v27 }
  0xdf   :  { %v366_v35 = vpack.c.bf16 %v231_v26, %v231_v26  ;;  %v232_v37 = vadd.f32 %v489_v12, %v209_v28  ;;  %v374_v38 = vpack.c.bf16 %v239_v31, %v239_v31  ;;  %v240_v40 = vadd.f32 %v489_v12, %v217_v33 }
  0xe0   :  { %314 = vst.msk [vmem:[%s591_s4 + $0x8] sm:$0xf] %vm311_vm2, %v368_v30  ;;  %v369_v39 = vpack.c.bf16 %v234_v32, %v234_v32  ;;  %322 = vst.msk [vmem:[%s591_s4 + $0x28] sm:$0xf] %vm311_vm2, %v376_v34  ;;  %v377_v41 = vpack.c.bf16 %v242_v36, %v242_v36 }
  0xe1   :  { %312 = vst.msk [vmem:[%s591_s4] sm:$0xf] %vm311_vm2, %v366_v35  ;;  %v367_v42 = vpack.c.bf16 %v232_v37, %v232_v37  ;;  %v399_v43 = vpop.f32.mrb[4].mxu0  ;;  %320 = vst.msk [vmem:[%s591_s4 + $0x20] sm:$0xf] %vm311_vm2, %v374_v38  ;;  %v375_v44 = vpack.c.bf16 %v240_v40, %v240_v40  ;;  %v407_v46 = vpop.f32.mrb[4].mxu1 }
  0xe2   :  { %315 = vst.msk [vmem:[%s591_s4 + $0xc] sm:$0xf] %vm311_vm2, %v369_v39  ;;  %v214_v45 = vmul.f32 %v399_v43, %v484_v10  ;;  %v154_v47 = vpop.f32.mrb[5].mxu0  ;;  %323 = vst.msk [vmem:[%s591_s4 + $0x2c] sm:$0xf] %vm311_vm2, %v377_v41  ;;  %v222_v48 = vmul.f32 %v407_v46, %v484_v10  ;;  %v186_v50 = vpop.f32.mrb[5].mxu1 }
  0xe3   :  { %313 = vst.msk [vmem:[%s591_s4 + $0x4] sm:$0xf] %vm311_vm2, %v367_v42  ;;  %v212_v49 = vmul.f32 %v484_v10, %v154_v47  ;;  %v400_v51 = vpop.f32.mrb[6].mxu0  ;;  %321 = vst.msk [vmem:[%s591_s4 + $0x24] sm:$0xf] %vm311_vm2, %v375_v44  ;;  %v220_v53 = vmul.f32 %v484_v10, %v186_v50  ;;  %v408_v55 = vpop.f32.mrb[6].mxu1 }
  0xe4   :  { %v237_v52 = vadd.f32 %v489_v12, %v214_v45  ;;  %v215_v54 = vmul.f32 %v400_v51, %v484_v10  ;;  %v157_v56 = vpop.f32.mrb[7].mxu0  ;;  %v245_v57 = vadd.f32 %v489_v12, %v222_v48  ;;  %v223_v59 = vmul.f32 %v408_v55, %v484_v10  ;;  %v189_v61 = vpop.f32.mrb[7].mxu1 }
  0xe5   :  { %v235_v58 = vadd.f32 %v489_v12, %v212_v49  ;;  %v213_v60 = vmul.f32 %v484_v10, %v157_v56  ;;  %v243_v63 = vadd.f32 %v489_v12, %v220_v53  ;;  %v221_v1 = vmul.f32 %v484_v10, %v189_v61 }
  0xe6   :  { %v372_v62 = vpack.c.bf16 %v237_v52, %v237_v52  ;;  %v238_v0 = vadd.f32 %v489_v12, %v215_v54  ;;  %v380_v2 = vpack.c.bf16 %v245_v57, %v245_v57  ;;  %v246_v4 = vadd.f32 %v489_v12, %v223_v59 }
  0xe7   :  { %v370_v3 = vpack.c.bf16 %v235_v58, %v235_v58  ;;  %v236_v5 = vadd.f32 %v489_v12, %v213_v60  ;;  %v378_v6 = vpack.c.bf16 %v243_v63, %v243_v63  ;;  %v244_v8 = vadd.f32 %v489_v12, %v221_v1 }
  0xe8   :  { %318 = vst.msk [vmem:[%s591_s4 + $0x18] sm:$0xf] %vm311_vm2, %v372_v62  ;;  %v373_v7 = vpack.c.bf16 %v238_v0, %v238_v0  ;;  %326 = vst.msk [vmem:[%s591_s4 + $0x38] sm:$0xf] %vm311_vm2, %v380_v2  ;;  %v381_v9 = vpack.c.bf16 %v246_v4, %v246_v4 }
  0xe9   :  { %316 = vst.msk [vmem:[%s591_s4 + $0x10] sm:$0xf] %vm311_vm2, %v370_v3  ;;  %v371_v10 = vpack.c.bf16 %v236_v5, %v236_v5  ;;  %324 = vst.msk [vmem:[%s591_s4 + $0x30] sm:$0xf] %vm311_vm2, %v378_v6  ;;  %v379_v11 = vpack.c.bf16 %v244_v8, %v244_v8 }
  0xea   :  { %319 = vst.msk [vmem:[%s591_s4 + $0x1c] sm:$0xf] %vm311_vm2, %v373_v7  ;;  %327 = vst.msk [vmem:[%s591_s4 + $0x3c] sm:$0xf] %vm311_vm2, %v381_v9 }
  0xeb   :  { %317 = vst.msk [vmem:[%s591_s4 + $0x14] sm:$0xf] %vm311_vm2, %v371_v10  ;;  %325 = vst.msk [vmem:[%s591_s4 + $0x34] sm:$0xf] %vm311_vm2, %v379_v11 }

// kernel: ibottleneck_forward.6
= control target key start
LH: loop header
LB: loop body
LE: loop exit
PB: predicated region body
PF: predicated region fallthrough
CT: control target
= control target key end

     0   :  { %s1481_s21 = smov 0   ;;  %s1483_s22 = smov 0   ;;  %s1985_s0 = inlined_call_operand.vmem [shape: bf16[2,18,9,8], index: 0, kind: input, shape index: {}]   ;;  %s1986_s1 = inlined_call_operand.vmem [shape: bf16[2,18,9,8], index: 1, kind: input, shape index: {}]   ;;  %s1987_s2 = inlined_call_operand.vmem [shape: bf16[72,8], index: 2, kind: input, shape index: {}]   ;;  %s1988_s3 = inlined_call_operand.vmem [shape: f32[1,8], index: 3, kind: input, shape index: {}]   ;;  %s1989_s4 = inlined_call_operand.vmem [shape: f32[1,8], index: 4, kind: input, shape index: {}]   ;;  %s1990_s5 = inlined_call_operand.vmem [shape: bf16[2,64,8], index: 5, kind: output, shape index: {0}]   ;;  %s1991_s6 = inlined_call_operand.vmem [shape: f32[2,8,8], index: 6, kind: output, shape index: {1}]  }
   0x1   :  { %s1485_s23 = smov 0  }
   0x2 LB: > { %s29_s24 = sadd.s32 1, %s1431_s22  ;;  %p1291_p0 = scmp.ge.s32.totalorder %s1435_s23, 1  ;;  %s1435_s23 = sphi %s1485_s23, %s17_s23   ;;  %s1431_s22 = sphi %s1483_s22, %s1995_s22   ;;  %s1427_s21 = sphi %s1481_s21, %s1994_s21  }
   0x3   : > { %p31_p1 = scmp.ge.s32.totalorder %s29_s24, 2  ;;  %p239_p2 = scmp.lt.s32.totalorder %s1435_s23, 3 }
   0x5   : > { %s1997_s24 = smov (%p31_p1, %s29_s24), 0  ;;  %p240_p3 = pnand %p1291_p0, %p239_p2 }
   0x6   : > { %p282_p4 = scmp.lt.s32.totalorder (!%p240_p3), %s1427_s21, 1  ;;  %s1437_s8 = smov (!%p240_p3), 8   ;;  %vm414_vm0 = vsmask.f32 (!%p240_p3), 3328  ;;  %vm415_vm1 = vsmask.f32 (!%p240_p3), 7440 }
   0x7   : > { %243 = sbr.rel (%p240_p3) target bundleno = 509 (0x1fd), region = 40  ;;  %vm364_vm2 = vcmask (!%p240_p3), 60416   ;;  %vm1554_vm3 = vmor (!%p240_p3), %vm414_vm0, %vm415_vm1  ;;  %s1438_s9 = smov (!%p240_p3), 24   ;;  %vm988_vm4 = vcmask (!%p240_p3), 1043456   ;;  %vm405_vm5 = vcmask (!%p240_p3), 126016   ;;  %vm553_vm6 = vcmask (!%p240_p3), 191616  }
   0x8   : > { %s1439_s10 = smov (!%p240_p3), 16   ;;  %s1440_s11 = smov (!%p240_p3), 32   ;;  %vm594_vm7 = vcmask (!%p240_p3), 257216   ;;  %vm635_vm8 = vcmask (!%p240_p3), 322816   ;;  %vm780_vm9 = vcmask (!%p240_p3), 388416   ;;  %vm821_vm10 = vcmask (!%p240_p3), 454016  }
   0x9   : > { %s1441_s12 = smov (!%p240_p3), 40   ;;  %s1442_s13 = smov (!%p240_p3), 48   ;;  %vm855_vm11 = vcmask (!%p240_p3), 519616   ;;  %vm902_vm12 = vcmask (!%p240_p3), 585216   ;;  %vm975_vm13 = vcmask (!%p240_p3), 588800   ;;  %vm1091_vm14 = vcmask (!%p240_p3), 64512  }
   0xa   : > { %s1443_s18 = smov (!%p240_p3), 56   ;;  %s1444_s27 = smov (!%p240_p3), 64   ;;  %vm1117_vm15 = vcmask (!%p240_p3), 57344  }
   0xe   : > { %s1999_s21 = smov (!%p282_p4, %s1427_s21), 1 }
   0xf   : > { %s1370_s25 = smul.u32 144, %s1999_s21  ;;  %s1322_s14 = sshll.u32 %s1999_s21, 5 }
  0x10   : > { %s1948_s17 = scalar_lea.vmem %s1990_s5, %s1322_s14 }
  0x11   : > { %s1505_s28 = scalar_lea.vmem %s1986_s1, %s1370_s25  ;;  %s1510_s7 = scalar_lea.vmem %s1985_s0, %s1370_s25 }
  0x12   : > { %v1513_v0 = vld [vmem:[%s1505_s28 + $0x20] sm:$0xf]  ;;  %v1520_v2 = vld [vmem:[%s1505_s28 + $0x30] sm:$0xf]  ;;  %v317_v5 = vld [vmem:[%s1510_s7 + $0x18] sm:$0xf] }
  0x13   : > { %v347_v1 = vld [vmem:[%s1505_s28] sm:$0xf]  ;;  %385 = vrot.lane.b32.xlu1 %v1513_v0, %s1437_s8  ;;  %v1523_v3 = vld [vmem:[%s1505_s28 + $0x10] sm:$0xf]  ;;  %v316_v6 = vld [vmem:[%s1510_s7 + $0x14] sm:$0x1] }
  0x14   : > { %381 = vrot.lane.b32.xlu0 %v347_v1, %s1437_s8  ;;  %v1526_v4 = vld [vmem:[%s1510_s7 + $0x10] sm:$0xf]  ;;  %v659_v9 = vshrl.u32 %v317_v5, 16  ;;  %v313_v10 = vld [vmem:[%s1510_s7 + $0x8] sm:$0xf]  ;;  %v441_v11 = vshll.u32 %v316_v6, 16 }
  0x15   : > { %v432_v7 = vshrl.u32 %v1526_v4, 16  ;;  %v435_v8 = vshll.u32 %v1526_v4, 16  ;;  %366 = vst.msk [vmem:[#allocation2 + $0x4] sm:$0xf] %vm364_vm2, %v1526_v4  ;;  %v311_v12 = vld [vmem:[%s1510_s7] sm:$0xf] }
  0x16   : > { %v662_v13 = vshll.u32 %v317_v5, 16  ;;  %v645_v14 = vshrl.u32 %v313_v10, 16  ;;  %v312_v17 = vld [vmem:[%s1510_s7 + $0x4] sm:$0x1]  ;;  %365 = vst.msk [vmem:[#allocation2] sm:$0xf] %vm364_vm2, %v311_v12 }
  0x17   : > { %387 = vrot.lane.b32.xlu1 %v1520_v2, %s1437_s8  ;;  %v434_v15 = vrot.slane %v432_v7, 4  ;;  %v437_v16 = vrot.slane %v435_v8, 5  ;;  %v648_v18 = vshll.u32 %v313_v10, 16  ;;  %v443_v19 = vrot.slane %v441_v11, 5  ;;  %v1543_v22 = vld [vmem:[%s1510_s7 + $0x30] sm:$0xf] }
  0x18   : > { %383 = vrot.lane.b32.xlu0 %v1523_v3, %s1437_s8  ;;  %v418_v20 = vshrl.u32 %v311_v12, 16  ;;  %v421_v21 = vshll.u32 %v311_v12, 16  ;;  %v427_v24 = vshll.u32 %v312_v17, 16  ;;  %v324_v25 = vld [vmem:[%s1510_s7 + $0x34] sm:$0x1]  ;;  %v460_v26 = vshrl.u32 %v1543_v22, 16 }
  0x19   : > { %v438_v23 = vor.u32 %v437_v16, %v434_v15  ;;  %v1548_v27 = vld [vmem:[%s1510_s7 + $0x20] sm:$0xf]  ;;  %368 = vst.msk [vmem:[#allocation2 + $0xc] sm:$0xf] %vm364_vm2, %v1543_v22  ;;  %v463_v31 = vshll.u32 %v1543_v22, 16  ;;  %v469_v32 = vshll.u32 %v324_v25, 16 }
  0x1a   : > { %v420_v29 = vrot.slane %v418_v20, 4  ;;  %v423_v30 = vrot.slane %v421_v21, 5  ;;  %v320_v33 = vld [vmem:[%s1510_s7 + $0x24] sm:$0x1]  ;;  %367 = vst.msk [vmem:[#allocation2 + $0x8] sm:$0xf] %vm364_vm2, %v1548_v27 }
  0x1b   : > { %572 = vrot.lane.b32.xlu1 %v317_v5, %s1438_s9  ;;  %v439_v34 = vrot.slane %v438_v23, 4  ;;  %v429_v35 = vrot.slane %v427_v24, 5  ;;  %v462_v36 = vrot.slane %v460_v26, 4  ;;  %v446_v37 = vshrl.u32 %v1548_v27, 16  ;;  %v325_v42 = vld [vmem:[%s1510_s7 + $0x38] sm:$0xf] }
  0x1c   : > { %570 = vrot.lane.b32.xlu0 %v313_v10, %s1438_s9  ;;  %v424_v38 = vor.u32 %v423_v30, %v420_v29  ;;  %v465_v39 = vrot.slane %v463_v31, 5  ;;  %v471_v40 = vrot.slane %v469_v32, 5  ;;  %v449_v41 = vshll.u32 %v1548_v27, 16  ;;  %v321_v51 = vld [vmem:[%s1510_s7 + $0x28] sm:$0xf] }
  0x1d   : > { %v1569_v43 = vsel %vm1554_vm3, %v439_v34, %v443_v19  ;;  %v448_v44 = vrot.slane %v446_v37, 4  ;;  %v455_v45 = vshll.u32 %v320_v33, 16  ;;  %v687_v46 = vshrl.u32 %v325_v42, 16  ;;  %v318_v6 = vld [vmem:[%s1510_s7 + $0x1c] sm:$0x1] }
  0x1e   : > { %v425_v47 = vrot.slane %v424_v38, 4  ;;  %v466_v48 = vor.u32 %v465_v39, %v462_v36  ;;  %v451_v49 = vrot.slane %v449_v41, 5  ;;  %v690_v50 = vshll.u32 %v325_v42, 16  ;;  %v314_v7 = vld [vmem:[%s1510_s7 + $0xc] sm:$0x1] }
  0x1f   : > { %v661_v52 = vrot.slane %v659_v9, 4  ;;  %v664_v53 = vrot.slane %v662_v13, 5  ;;  %531 = vrot.lane.b32.xlu1 %v1569_v43, %s1439_s10  ;;  %v673_v54 = vshrl.u32 %v321_v51, 16  ;;  %v676_v55 = vshll.u32 %v321_v51, 16  ;;  %v1586_v10 = vld [vmem:[%s1510_s7 + $0x40] sm:$0xf] }
  0x20   : > { %v430_v56 = vsel %vm1554_vm3, %v425_v47, %v429_v35  ;;  %v467_v57 = vrot.slane %v466_v48, 4  ;;  %v452_v58 = vor.u32 %v451_v49, %v448_v44  ;;  %v457_v59 = vrot.slane %v455_v45, 5  ;;  %v326_v13 = vld [vmem:[%s1510_s7 + $0x3c] sm:$0x1]  ;;  %369 = vst.msk [vmem:[#allocation2 + $0x10] sm:$0xf] %vm364_vm2, %v1586_v10 }
  0x21   : > { %v647_v60 = vrot.slane %v645_v14, 4  ;;  %v650_v61 = vrot.slane %v648_v18, 5  ;;  %529 = vrot.lane.b32.xlu0 %v430_v56, %s1439_s10  ;;  %v689_v62 = vrot.slane %v687_v46, 4  ;;  %v692_v63 = vrot.slane %v690_v50, 5  ;;  %v322_v14 = vld [vmem:[%s1510_s7 + $0x2c] sm:$0x1] }
  0x22   : > { %v1579_v1 = vsel %vm1554_vm3, %v467_v57, %v471_v40  ;;  %v453_v5 = vrot.slane %v452_v58, 4  ;;  %v675_v8 = vrot.slane %v673_v54, 4  ;;  %v678_v9 = vrot.slane %v676_v55, 5  ;;  %v350_v20 = vld [vmem:[%s1505_s28 + $0x18] sm:$0xf] }
  0x23   : > { %535 = vrot.lane.b32.xlu1 %v1579_v1, %s1439_s10  ;;  %v665_v11 = vor.u32 %v664_v53, %v661_v52  ;;  %v651_v15 = vor.u32 %v650_v61, %v647_v60  ;;  %v693_v16 = vor.u32 %v692_v63, %v689_v62  ;;  %v668_v17 = vshll.u32 %v318_v6, 16  ;;  %v348_v24 = vld [vmem:[%s1505_s28 + $0x8] sm:$0xf]  ;;  %v1602_v26 = vld [vmem:[%s1510_s7 + $0x50] sm:$0xf] }
  0x24   : > { %v1590_v12 = vsel %vm1554_vm3, %v453_v5, %v457_v59  ;;  %v654_v18 = vshll.u32 %v314_v7, 16  ;;  %v679_v19 = vor.u32 %v678_v9, %v675_v8  ;;  %v696_v21 = vshll.u32 %v326_v13, 16  ;;  %v1612_v33 = vld [vmem:[%s1510_s7 + $0x70] sm:$0xf]  ;;  %370 = vst.msk [vmem:[#allocation2 + $0x14] sm:$0xf] %vm364_vm2, %v1602_v26 }
  0x25   : > { %533 = vrot.lane.b32.xlu0 %v1590_v12, %s1439_s10  ;;  %v682_v23 = vshll.u32 %v322_v14, 16  ;;  %v666_v25 = vrot.slane %v665_v11, 4  ;;  %v670_v29 = vrot.slane %v668_v17, 5  ;;  %v1605_v30 = vrot.slane %v651_v15, 4  ;;  %v340_v34 = vld [vmem:[%s1510_s7 + $0x74] sm:$0x1] }
  0x26   : > { %v1607_v31 = vrot.slane %v654_v18, 5  ;;  %v1609_v32 = vrot.slane %v693_v16, 4  ;;  %v516_v35 = vshrl.u32 %v1612_v33, 16  ;;  %v519_v36 = vshll.u32 %v1612_v33, 16  ;;  %v1620_v37 = vld [vmem:[%s1510_s7 + $0x60] sm:$0xf] }
  0x27   : > { %576 = vrot.lane.b32.xlu1 %v325_v42, %s1438_s9  ;;  %372 = vst.msk [vmem:[#allocation2 + $0x1c] sm:$0xf] %vm364_vm2, %v1612_v33  ;;  %v1625_v38 = vrot.slane %v696_v21, 5  ;;  %v1627_v39 = vrot.slane %v679_v19, 4  ;;  %v1629_v40 = vrot.slane %v682_v23, 5  ;;  %v525_v41 = vshll.u32 %v340_v34, 16 }
  0x28   : > { %v336_v42 = vld [vmem:[%s1510_s7 + $0x64] sm:$0x1]  ;;  %371 = vst.msk [vmem:[#allocation2 + $0x18] sm:$0xf] %vm364_vm2, %v1620_v37  ;;  %v354_v44 = vld [vmem:[%s1505_s28 + $0x38] sm:$0xf]  ;;  %v671_v48 = vsel %vm1554_vm3, %v666_v25, %v670_v29  ;;  %v657_v49 = vsel %vm1554_vm3, %v1605_v30, %v1607_v31 }
  0x29   : > { %574 = vrot.lane.b32.xlu0 %v321_v51, %s1438_s9  ;;  %v518_v45 = vrot.slane %v516_v35, 4  ;;  %v521_v46 = vrot.slane %v519_v36, 5  ;;  %v502_v47 = vshrl.u32 %v1620_v37, 16  ;;  %v505_v50 = vshll.u32 %v1620_v37, 16  ;;  %v1645_v52 = vld [vmem:[%s1510_s7 + $0x58] sm:$0xf] }
  0x2a   : > { %v511_v51 = vshll.u32 %v336_v42, 16  ;;  %v352_v53 = vld [vmem:[%s1505_s28 + $0x28] sm:$0xf]  ;;  %v527_v55 = vrot.slane %v525_v41, 5  ;;  %v715_v57 = vshrl.u32 %v1645_v52, 16  ;;  %v699_v58 = vsel %vm1554_vm3, %v1609_v32, %v1625_v38 }
  0x2b   : > { %613 = vrot.lane.b32.xlu1 %v350_v20, %s1440_s11  ;;  %v522_v54 = vor.u32 %v521_v46, %v518_v45  ;;  %v504_v56 = vrot.slane %v502_v47, 4  ;;  %v685_v59 = vsel %vm1554_vm3, %v1627_v39, %v1629_v40  ;;  %v507_v60 = vrot.slane %v505_v50, 5  ;;  %v1660_v62 = vld [vmem:[%s1510_s7 + $0x48] sm:$0xf]  ;;  %v1665_v8 = vld [vmem:[%s1510_s7 + $0x78] sm:$0xf] }
  0x2c   : > { %v718_v61 = vshll.u32 %v1645_v52, 16  ;;  %v717_v5 = vrot.slane %v715_v57, 4  ;;  %v701_v6 = vshrl.u32 %v1660_v62, 16  ;;  %v704_v7 = vshll.u32 %v1660_v62, 16  ;;  %v1670_v15 = vld [vmem:[%s1510_s7 + $0x68] sm:$0xf] }
  0x2d   : > { %611 = vrot.lane.b32.xlu0 %v348_v24, %s1440_s11  ;;  %v523_v63 = vrot.slane %v522_v54, 4  ;;  %v508_v9 = vor.u32 %v507_v60, %v504_v56  ;;  %v513_v11 = vrot.slane %v511_v51, 5  ;;  %v743_v14 = vshrl.u32 %v1665_v8, 16  ;;  %v334_v20 = vld [vmem:[%s1510_s7 + $0x5c] sm:$0x1] }
  0x2e   : > { %v720_v13 = vrot.slane %v718_v61, 5  ;;  %v703_v17 = vrot.slane %v701_v6, 4  ;;  %v706_v18 = vrot.slane %v704_v7, 5  ;;  %v746_v19 = vshll.u32 %v1665_v8, 16  ;;  %v330_v29 = vld [vmem:[%s1510_s7 + $0x4c] sm:$0x1] }
  0x2f   : > { %617 = vrot.lane.b32.xlu1 %v354_v44, %s1440_s11  ;;  %v1674_v16 = vsel %vm1554_vm3, %v523_v63, %v527_v55  ;;  %v509_v21 = vrot.slane %v508_v9, 4  ;;  %v745_v24 = vrot.slane %v743_v14, 4  ;;  %v729_v25 = vshrl.u32 %v1670_v15, 16  ;;  %v342_v35 = vld [vmem:[%s1510_s7 + $0x7c] sm:$0x1]  ;;  %v1404_v9 = vld [vmem:[%s1987_s2] sm:$0xff]  }
  0x30   : > { %v721_v23 = vor.u32 %v720_v13, %v717_v5  ;;  %v707_v30 = vor.u32 %v706_v18, %v703_v17  ;;  %v748_v31 = vrot.slane %v746_v19, 5  ;;  %v732_v32 = vshll.u32 %v1670_v15, 16  ;;  %v338_v41 = vld [vmem:[%s1510_s7 + $0x6c] sm:$0x1]  ;;  %v1696_v47 = vld [vmem:[%s1510_s7 + $0x80] sm:$0xf]  ;;  %1340 = vmatprep.subr.bf16.mxu0 %v1404_v9  ;;  %1358 = vmatprep.subr.bf16.mxu1 %v1404_v9 }
  0x31   : > { %615 = vrot.lane.b32.xlu0 %v352_v53, %s1440_s11  ;;  %v724_v34 = vshll.u32 %v334_v20, 16  ;;  %v1686_v36 = vsel %vm1554_vm3, %v509_v21, %v513_v11  ;;  %v731_v38 = vrot.slane %v729_v25, 4  ;;  %v710_v40 = vshll.u32 %v330_v29, 16  ;;  %v344_v57 = vld [vmem:[%s1510_s7 + $0x84] sm:$0x1]  ;;  %1341 = vmatpush3.bf16.msra.mxu0 %v1404_v9  ;;  %v1405_v17 = vld [vmem:[%s1987_s2 + $0x8] sm:$0xff]  }
  0x32   : > { %v1688_v39 = vrot.slane %v721_v23, 4  ;;  %v749_v42 = vor.u32 %v748_v31, %v745_v24  ;;  %v734_v44 = vrot.slane %v732_v32, 5  ;;  %v1693_v46 = vrot.slane %v707_v30, 4  ;;  %1363 = vmatpush3.bf16.msra.mxu1 %v1404_v9  ;;  %1342 = vmatprep.subr.bf16.mxu0 %v1405_v17  ;;  %v1406_v20 = vld [vmem:[%s1987_s2 + $0x10] sm:$0xff]   ;;  %v355_v23 = vld [vmem:[%s1505_s28 + $0x40] sm:$0xf] }
  0x33   : > { %758 = vrot.lane.b32.xlu1 %v671_v48, %s1441_s12  ;;  %v1691_v45 = vrot.slane %v724_v34, 5  ;;  %v1699_v48 = vrot.slane %v710_v40, 5  ;;  %v738_v50 = vshll.u32 %v338_v41, 16  ;;  %v865_v51 = vshrl.u32 %v1696_v47, 16  ;;  %1359 = vmatprep.subr.bf16.mxu1 %v1405_v17  ;;  %v328_v24 = vld [vmem:[%s1510_s7 + $0x44] sm:$0x1] }
  0x34   : > { %v735_v53 = vor.u32 %v734_v44, %v731_v38  ;;  %v1706_v55 = vrot.slane %v749_v42, 4  ;;  %v868_v56 = vshll.u32 %v1696_v47, 16  ;;  %v874_v7 = vshll.u32 %v344_v57, 16  ;;  %v1409_v31 = vld [vmem:[%s1987_s2 + $0x20] ss:$0 sps:$4 sm:$0xff]  }
  0x35   : > { %756 = vrot.lane.b32.xlu0 %v657_v49, %s1441_s12  ;;  %v752_v49 = vshll.u32 %v342_v35, 16  ;;  %v727_v54 = vsel %vm1554_vm3, %v1688_v39, %v1691_v45  ;;  %v1717_v61 = vrot.slane %v738_v50, 5  ;;  %v867_v63 = vrot.slane %v865_v51, 4  ;;  %1343 = vmatpush3.bf16.msra.mxu0 %v1405_v17  ;;  %v357_v32 = vld [vmem:[%s1505_s28 + $0x50] sm:$0xf] }
  0x36   : > { %v1719_v5 = vrot.slane %v735_v53, 4  ;;  %v870_v6 = vrot.slane %v868_v56, 5  ;;  %v1734_v14 = vrot.slane %v874_v7, 5  ;;  %v474_v18 = vshrl.u32 %v1586_v10, 16  ;;  %1364 = vmatpush3.bf16.msra.mxu1 %v1405_v17  ;;  %1344 = vmatprep.subr.bf16.mxu0 %v1406_v20  ;;  %v359_v50 = vld [vmem:[%s1505_s28 + $0x60] sm:$0xf] }
  0x37   : > { %762 = vrot.lane.b32.xlu1 %v699_v58, %s1441_s12  ;;  %v713_v58 = vsel %vm1554_vm3, %v1693_v46, %v1699_v48  ;;  %v1715_v60 = vrot.slane %v752_v49, 5  ;;  %v477_v19 = vshll.u32 %v1586_v10, 16  ;;  %1360 = vmatprep.subr.bf16.mxu1 %v1406_v20  ;;  %v488_v29 = vshrl.u32 %v1602_v26, 16  ;;  %v356_v53 = vld [vmem:[%s1505_s28 + $0x48] sm:$0xf] }
  0x38   : > { %v741_v11 = vsel %vm1554_vm3, %v1719_v5, %v1717_v61  ;;  %v871_v13 = vor.u32 %v870_v6, %v867_v63  ;;  %v491_v30 = vshll.u32 %v1602_v26, 16  ;;  %v990_v40 = vsel %vm988_vm4, %v1409_v31, 0  ;;  %v362_v56 = vld [vmem:[%s1505_s28 + $0x78] sm:$0xf]  ;;  %v360_v57 = vld [vmem:[%s1505_s28 + $0x68] sm:$0xf] }
  0x39   : > { %760 = vrot.lane.b32.xlu0 %v685_v59, %s1441_s12  ;;  %v755_v59 = vsel %vm1554_vm3, %v1706_v55, %v1715_v60  ;;  %v479_v21 = vrot.slane %v477_v19, 5  ;;  %1345 = vmatpush3.bf16.msra.mxu0 %v1406_v20  ;;  %v490_v35 = vrot.slane %v488_v29, 4 }
  0x3a   : > { %1365 = vmatpush3.bf16.msra.mxu1 %v1406_v20  ;;  %v493_v38 = vrot.slane %v491_v30, 5 }
  0x3b   : > { %799 = vrot.lane.b32.xlu1 %v1548_v27, %s1442_s13  ;;  %v1738_v27 = vrot.slane %v871_v13, 4 }
  0x3c   : > { %v494_v41 = vor.u32 %v493_v38, %v490_v35 }
  0x3d   : > { %797 = vrot.lane.b32.xlu0 %v1526_v4, %s1442_s13  ;;  %v877_v4 = vsel %vm1554_vm3, %v1738_v27, %v1734_v14 }
  0x3e   : > { %v495_v44 = vrot.slane %v494_v41, 4 }
  0x3f   : > { %803 = vrot.lane.b32.xlu1 %v1586_v10, %s1442_s13  ;;  %v476_v10 = vrot.slane %v474_v18, 4 }
  0x41   : > { %801 = vrot.lane.b32.xlu0 %v1543_v22, %s1442_s13  ;;  %v483_v22 = vshll.u32 %v328_v24, 16  ;;  %v480_v25 = vor.u32 %v479_v21, %v476_v10 }
  0x43   : > { %833 = vrot.lane.b32.xlu1 %v1513_v0, %s1443_s18  ;;  %v1407_v0 = vld [vmem:[%s1987_s2 + $0x18] sm:$0xff]   ;;  %v481_v34 = vrot.slane %v480_v25, 4 }
  0x44   : > { %1346 = vmatprep.subr.bf16.mxu0 %v1407_v0  ;;  %1361 = vmatprep.subr.bf16.mxu1 %v1407_v0 }
  0x45   : > { %831 = vrot.lane.b32.xlu0 %v1523_v3, %s1443_s18  ;;  %1347 = vmatpush3.bf16.msra.mxu0 %v1407_v0  ;;  %v485_v3 = vrot.slane %v483_v22, 5 }
  0x46   : > { %1366 = vmatpush3.bf16.msra.mxu1 %v1407_v0  ;;  %1368 = vmatprep.subr.msk.bf16.mxu0 %vm988_vm4, %v1409_v31 }
  0x47   : > { %837 = vrot.lane.b32.xlu1 %v355_v23, %s1443_s18  ;;  %1369 = vmatprep.subr.msk.bf16.mxu1 %vm988_vm4, %v1409_v31 }
  0x49   : > { %835 = vrot.lane.b32.xlu0 %v1520_v2, %s1443_s18  ;;  %v332_v2 = vld [vmem:[%s1510_s7 + $0x54] sm:$0x1]  ;;  %1349 = vmatpush3.bf16.msra.mxu0 %v990_v40 }
  0x4a   : > { %1367 = vmatpush3.bf16.msra.mxu1 %v990_v40  ;;  %v497_v42 = vshll.u32 %v332_v2, 16 }
  0x4b   : > { %880 = vrot.lane.b32.xlu1 %v1590_v12, %s1444_s27  ;;  %v486_v12 = vsel %vm1554_vm3, %v481_v34, %v485_v3 }
  0x4c   : > { %v499_v49 = vrot.slane %v497_v42, 5 }
  0x4d   : > { %878 = vrot.lane.b32.xlu0 %v1569_v43, %s1444_s27  ;;  %v361_v43 = vld [vmem:[%s1505_s28 + $0x70] sm:$0xf] }
  0x4e   : > { %v500_v51 = vsel %vm1554_vm3, %v495_v44, %v499_v49 }
  0x4f   : > { %391 = vrot.lane.b32.xlu1 %v357_v32, %s1437_s8 }
  0x51   : > { %389 = vrot.lane.b32.xlu0 %v355_v23, %s1437_s8 }
  0x53   : > { %884 = vrot.lane.b32.xlu1 %v486_v12, %s1444_s27 }
  0x55   : > { %882 = vrot.lane.b32.xlu0 %v1579_v1, %s1444_s27  ;;  %v358_v1 = vld [vmem:[%s1505_s28 + $0x58] sm:$0xf] }
  0x57   : > { %395 = vrot.lane.b32.xlu1 %v361_v43, %s1437_s8 }
  0x59   : > { %393 = vrot.lane.b32.xlu0 %v359_v50, %s1437_s8 }
  0x5b   : > { %539 = vrot.lane.b32.xlu1 %v500_v51, %s1439_s10 }
  0x5d   : > { %537 = vrot.lane.b32.xlu0 %v486_v12, %s1439_s10 }
  0x5f   : > { %543 = vrot.lane.b32.xlu1 %v1674_v16, %s1439_s10 }
  0x61   : > { %541 = vrot.lane.b32.xlu0 %v1686_v36, %s1439_s10 }
  0x63   : > { %580 = vrot.lane.b32.xlu1 %v1645_v52, %s1438_s9  ;;  %v363_v52 = vld [vmem:[%s1505_s28 + $0x80] sm:$0xf]  ;;  %s1296_s28 = sshll.u32 %s1999_s21, 3 }
  0x65   : > { %578 = vrot.lane.b32.xlu0 %v1660_v62, %s1438_s9 }
  0x67   : > { %584 = vrot.lane.b32.xlu1 %v1665_v8, %s1438_s9 }
  0x69   : > { %582 = vrot.lane.b32.xlu0 %v1670_v15, %s1438_s9  ;;  %s1934_s9 = scalar_lea.vmem %s1991_s6, %s1296_s28 }
  0x6b   : > { %621 = vrot.lane.b32.xlu1 %v358_v1, %s1440_s11 }
  0x6d   : > { %619 = vrot.lane.b32.xlu0 %v356_v53, %s1440_s11 }
  0x6f   : > { %625 = vrot.lane.b32.xlu1 %v362_v56, %s1440_s11 }
  0x71   : > { %623 = vrot.lane.b32.xlu0 %v360_v57, %s1440_s11 }
  0x73   : > { %766 = vrot.lane.b32.xlu1 %v727_v54, %s1441_s12 }
  0x75   : > { %764 = vrot.lane.b32.xlu0 %v713_v58, %s1441_s12 }
  0x77   : > { %770 = vrot.lane.b32.xlu1 %v755_v59, %s1441_s12 }
  0x79   : > { %768 = vrot.lane.b32.xlu0 %v741_v11, %s1441_s12 }
  0x7b   : > { %807 = vrot.lane.b32.xlu1 %v1620_v37, %s1442_s13 }
  0x7d   : > { %805 = vrot.lane.b32.xlu0 %v1602_v26, %s1442_s13 }
  0x7f   : > { %811 = vrot.lane.b32.xlu1 %v1696_v47, %s1442_s13 }
  0x81   : > { %809 = vrot.lane.b32.xlu0 %v1612_v33, %s1442_s13 }
  0x83   : > { %841 = vrot.lane.b32.xlu1 %v359_v50, %s1443_s18 }
  0x85   : > { %839 = vrot.lane.b32.xlu0 %v357_v32, %s1443_s18  ;;  %v386_v62 = vpop.permute.xlu1 %385 }
  0x86   : > { %v382_v8 = vpop.permute.xlu0 %381  ;;  %408 = vst.msk [vmem:[#allocation2 + $0x8] sm:$0xf] %vm405_vm5, %v386_v62 }
  0x87   : > { %406 = vst.msk [vmem:[#allocation2] sm:$0xf] %vm405_vm5, %v382_v8  ;;  %845 = vrot.lane.b32.xlu1 %v363_v52, %s1443_s18 }
  0x89   : > { %843 = vrot.lane.b32.xlu0 %v361_v43, %s1443_s18  ;;  %v388_v26 = vpop.permute.xlu1 %387 }
  0x8a   : > { %v384_v37 = vpop.permute.xlu0 %383  ;;  %409 = vst.msk [vmem:[#allocation2 + $0xc] sm:$0xf] %vm405_vm5, %v388_v26 }
  0x8b   : > { %407 = vst.msk [vmem:[#allocation2 + $0x4] sm:$0xf] %vm405_vm5, %v384_v37  ;;  %888 = vrot.lane.b32.xlu1 %v1686_v36, %s1444_s27 }
  0x8d   : > { %886 = vrot.lane.b32.xlu0 %v500_v51, %s1444_s27  ;;  %v573_v33 = vpop.permute.xlu1 %572 }
  0x8e   : > { %v571_v15 = vpop.permute.xlu0 %570 }
  0x8f   : > { %892 = vrot.lane.b32.xlu1 %v877_v4, %s1444_s27 }
  0x91   : > { %890 = vrot.lane.b32.xlu0 %v1674_v16, %s1444_s27  ;;  %v532_v39 = vpop.permute.xlu1 %531 }
  0x92   : > { %555 = vst.msk [vmem:[#allocation2 + $0x4] sm:$0xf] %vm553_vm6, %v532_v39 }
  0x93   : > { %v530_v36 = vpop.permute.xlu0 %529  ;;  %596 = vst.msk [vmem:[#allocation2 + $0x4] sm:$0xf] %vm594_vm7, %v573_v33  ;;  %v1445_v33 = vmov 0.0  }
  0x94   : > { %554 = vst.msk [vmem:[#allocation2] sm:$0xf] %vm553_vm6, %v530_v36  ;;  %v1311_v36 = vld [vmem:[%s1989_s4] ss:$0 sm:$0xff] }
  0x95   : > { %v536_v45 = vpop.permute.xlu1 %535  ;;  %595 = vst.msk [vmem:[#allocation2] sm:$0xf] %vm594_vm7, %v571_v15  ;;  %v1310_v15 = vld [vmem:[%s1988_s3] ss:$0 sm:$0xff] }
  0x96   : > { %557 = vst.msk [vmem:[#allocation2 + $0xc] sm:$0xf] %vm553_vm6, %v536_v45 }
  0x97   : > { %v534_v28 = vpop.permute.xlu0 %533  ;;  %1092 = vst.msk [vmem:[%s1934_s9] sm:$0xff] %vm1091_vm14, %v1445_v33 }
  0x98   : > { %556 = vst.msk [vmem:[#allocation2 + $0x8] sm:$0xf] %vm553_vm6, %v534_v28 }
  0x99   : > { %v577_v46 = vpop.permute.xlu1 %576 }
  0x9a   : > { %598 = vst.msk [vmem:[#allocation2 + $0xc] sm:$0xf] %vm594_vm7, %v577_v46 }
  0x9b   : > { %v575_v16 = vpop.permute.xlu0 %574 }
  0x9c   : > { %597 = vst.msk [vmem:[#allocation2 + $0x8] sm:$0xf] %vm594_vm7, %v575_v16 }
  0x9d   : > { %v614_v47 = vpop.permute.xlu1 %613 }
  0x9e   : > { %637 = vst.msk [vmem:[#allocation2 + $0x4] sm:$0xf] %vm635_vm8, %v614_v47 }
  0x9f   : > { %v612_v48 = vpop.permute.xlu0 %611 }
  0xa0   : > { %636 = vst.msk [vmem:[#allocation2] sm:$0xf] %vm635_vm8, %v612_v48 }
  0xa1   : > { %v618_v54 = vpop.permute.xlu1 %617 }
  0xa2   : > { %639 = vst.msk [vmem:[#allocation2 + $0xc] sm:$0xf] %vm635_vm8, %v618_v54 }
  0xa3   : > { %v616_v55 = vpop.permute.xlu0 %615 }
  0xa4   : > { %638 = vst.msk [vmem:[#allocation2 + $0x8] sm:$0xf] %vm635_vm8, %v616_v55 }
  0xa5   : > { %v759_v58 = vpop.permute.xlu1 %758 }
  0xa6   : > { %782 = vst.msk [vmem:[#allocation2 + $0x4] sm:$0xf] %vm780_vm9, %v759_v58 }
  0xa7   : > { %v757_v60 = vpop.permute.xlu0 %756 }
  0xa8   : > { %781 = vst.msk [vmem:[#allocation2] sm:$0xf] %vm780_vm9, %v757_v60 }
  0xa9   : > { %v763_v61 = vpop.permute.xlu1 %762 }
  0xaa   : > { %784 = vst.msk [vmem:[#allocation2 + $0xc] sm:$0xf] %vm780_vm9, %v763_v61 }
  0xab   : > { %v761_v63 = vpop.permute.xlu0 %760 }
  0xac   : > { %783 = vst.msk [vmem:[#allocation2 + $0x8] sm:$0xf] %vm780_vm9, %v761_v63 }
  0xad   : > { %v800_v5 = vpop.permute.xlu1 %799 }
  0xae   : > { %823 = vst.msk [vmem:[#allocation2 + $0x4] sm:$0xf] %vm821_vm10, %v800_v5 }
  0xaf   : > { %v798_v6 = vpop.permute.xlu0 %797 }
  0xb0   : > { %822 = vst.msk [vmem:[#allocation2] sm:$0xf] %vm821_vm10, %v798_v6 }
  0xb1   : > { %v804_v7 = vpop.permute.xlu1 %803 }
  0xb2   : > { %825 = vst.msk [vmem:[#allocation2 + $0xc] sm:$0xf] %vm821_vm10, %v804_v7 }
  0xb3   : > { %v802_v59 = vpop.permute.xlu0 %801 }
  0xb4   : > { %824 = vst.msk [vmem:[#allocation2 + $0x8] sm:$0xf] %vm821_vm10, %v802_v59 }
  0xb5   : > { %v834_v9 = vpop.permute.xlu1 %833 }
  0xb6   : > { %857 = vst.msk [vmem:[#allocation2 + $0x4] sm:$0xf] %vm855_vm11, %v834_v9 }
  0xb7   : > { %v832_v11 = vpop.permute.xlu0 %831 }
  0xb8   : > { %856 = vst.msk [vmem:[#allocation2] sm:$0xf] %vm855_vm11, %v832_v11 }
  0xb9   : > { %v838_v13 = vpop.permute.xlu1 %837 }
  0xba   : > { %859 = vst.msk [vmem:[#allocation2 + $0xc] sm:$0xf] %vm855_vm11, %v838_v13 }
  0xbb   : > { %v836_v14 = vpop.permute.xlu0 %835 }
  0xbc   : > { %858 = vst.msk [vmem:[#allocation2 + $0x8] sm:$0xf] %vm855_vm11, %v836_v14 }
  0xbd   : > { %v881_v27 = vpop.permute.xlu1 %880 }
  0xbe   : > { %904 = vst.msk [vmem:[#allocation2 + $0x4] sm:$0xf] %vm902_vm12, %v881_v27 }
  0xbf   : > { %v879_v17 = vpop.permute.xlu0 %878 }
  0xc0   : > { %903 = vst.msk [vmem:[#allocation2] sm:$0xf] %vm902_vm12, %v879_v17 }
  0xc1   : > { %v392_v18 = vpop.permute.xlu1 %391 }
  0xc2   : > { %411 = vst.msk [vmem:[#allocation2 + $0x14] sm:$0xf] %vm405_vm5, %v392_v18 }
  0xc3   : > { %v390_v19 = vpop.permute.xlu0 %389 }
  0xc4   : > { %410 = vst.msk [vmem:[#allocation2 + $0x10] sm:$0xf] %vm405_vm5, %v390_v19 }
  0xc5   : > { %v885_v4 = vpop.permute.xlu1 %884 }
  0xc6   : > { %906 = vst.msk [vmem:[#allocation2 + $0xc] sm:$0xf] %vm902_vm12, %v885_v4 }
  0xc7   : > { %v883_v20 = vpop.permute.xlu0 %882  ;;  %v1408_v10 = vld [vmem:[#allocation2] sm:$0xff]  }
  0xc8   : > { %905 = vst.msk [vmem:[#allocation2 + $0x8] sm:$0xf] %vm902_vm12, %v883_v20  ;;  %1350 = vmatprep.mubr.msk.bf16.mxu0 %vm975_vm13, %v1408_v10 }
  0xc9   : > { %v396_v21 = vpop.permute.xlu1 %395 }
  0xca   : > { %413 = vst.msk [vmem:[#allocation2 + $0x1c] sm:$0xf] %vm405_vm5, %v396_v21 }
  0xcb   : > { %v394_v23 = vpop.permute.xlu0 %393 }
  0xcc   : > { %412 = vst.msk [vmem:[#allocation2 + $0x18] sm:$0xf] %vm405_vm5, %v394_v23 }
  0xcd   : > { %v540_v24 = vpop.permute.xlu1 %539 }
  0xce   : > { %559 = vst.msk [vmem:[#allocation2 + $0x14] sm:$0xf] %vm553_vm6, %v540_v24 }
  0xcf   : > { %v538_v22 = vpop.permute.xlu0 %537  ;;  %v1410_v0 = vld [vmem:[#allocation2 + $0x8] sm:$0xff]  }
  0xd0   : > { %558 = vst.msk [vmem:[#allocation2 + $0x10] sm:$0xf] %vm553_vm6, %v538_v22  ;;  %1351 = vmatmul.mubr.msk.bf16.vlgmr.msra.gmra.mrb[0].mxu0 %vm975_vm13, %v1410_v0 }
  0xd1   : > { %v544_v25 = vpop.permute.xlu1 %543 }
  0xd2   : > { %561 = vst.msk [vmem:[#allocation2 + $0x1c] sm:$0xf] %vm553_vm6, %v544_v25 }
  0xd3   : > { %v542_v29 = vpop.permute.xlu0 %541 }
  0xd4   : > { %560 = vst.msk [vmem:[#allocation2 + $0x18] sm:$0xf] %vm553_vm6, %v542_v29 }
  0xd5   : > { %v581_v30 = vpop.permute.xlu1 %580 }
  0xd6   : > { %600 = vst.msk [vmem:[#allocation2 + $0x14] sm:$0xf] %vm594_vm7, %v581_v30 }
  0xd7   : > { %v579_v3 = vpop.permute.xlu0 %578 }
  0xd8   : > { %599 = vst.msk [vmem:[#allocation2 + $0x10] sm:$0xf] %vm594_vm7, %v579_v3 }
  0xd9   : > { %v585_v31 = vpop.permute.xlu1 %584 }
  0xda   : > { %602 = vst.msk [vmem:[#allocation2 + $0x1c] sm:$0xf] %vm594_vm7, %v585_v31 }
  0xdb   : > { %v583_v32 = vpop.permute.xlu0 %582 }
  0xdc   : > { %601 = vst.msk [vmem:[#allocation2 + $0x18] sm:$0xf] %vm594_vm7, %v583_v32 }
  0xdd   : > { %v622_v34 = vpop.permute.xlu1 %621 }
  0xde   : > { %641 = vst.msk [vmem:[#allocation2 + $0x14] sm:$0xf] %vm635_vm8, %v622_v34 }
  0xdf   : > { %v620_v35 = vpop.permute.xlu0 %619 }
  0xe0   : > { %640 = vst.msk [vmem:[#allocation2 + $0x10] sm:$0xf] %vm635_vm8, %v620_v35 }
  0xe1   : > { %v626_v38 = vpop.permute.xlu1 %625 }
  0xe2   : > { %643 = vst.msk [vmem:[#allocation2 + $0x1c] sm:$0xf] %vm635_vm8, %v626_v38 }
  0xe3   : > { %v624_v2 = vpop.permute.xlu0 %623 }
  0xe4   : > { %642 = vst.msk [vmem:[#allocation2 + $0x18] sm:$0xf] %vm635_vm8, %v624_v2 }
  0xe5   : > { %v767_v40 = vpop.permute.xlu1 %766 }
  0xe6   : > { %786 = vst.msk [vmem:[#allocation2 + $0x14] sm:$0xf] %vm780_vm9, %v767_v40 }
  0xe7   : > { %v765_v12 = vpop.permute.xlu0 %764 }
  0xe8   : > { %785 = vst.msk [vmem:[#allocation2 + $0x10] sm:$0xf] %vm780_vm9, %v765_v12 }
  0xe9   : > { %v771_v41 = vpop.permute.xlu1 %770 }
  0xea   : > { %788 = vst.msk [vmem:[#allocation2 + $0x1c] sm:$0xf] %vm780_vm9, %v771_v41 }
  0xeb   : > { %v769_v42 = vpop.permute.xlu0 %768 }
  0xec   : > { %787 = vst.msk [vmem:[#allocation2 + $0x18] sm:$0xf] %vm780_vm9, %v769_v42 }
  0xed   : > { %v808_v43 = vpop.permute.xlu1 %807 }
  0xee   : > { %827 = vst.msk [vmem:[#allocation2 + $0x14] sm:$0xf] %vm821_vm10, %v808_v43 }
  0xef   : > { %v806_v44 = vpop.permute.xlu0 %805 }
  0xf0   : > { %826 = vst.msk [vmem:[#allocation2 + $0x10] sm:$0xf] %vm821_vm10, %v806_v44 }
  0xf1   : > { %v812_v49 = vpop.permute.xlu1 %811 }
  0xf2   : > { %829 = vst.msk [vmem:[#allocation2 + $0x1c] sm:$0xf] %vm821_vm10, %v812_v49 }
  0xf3   : > { %v810_v50 = vpop.permute.xlu0 %809 }
  0xf4   : > { %828 = vst.msk [vmem:[#allocation2 + $0x18] sm:$0xf] %vm821_vm10, %v810_v50 }
  0xf5   : > { %v842_v51 = vpop.permute.xlu1 %841 }
  0xf6   : > { %861 = vst.msk [vmem:[#allocation2 + $0x14] sm:$0xf] %vm855_vm11, %v842_v51 }
  0xf7   : > { %v840_v1 = vpop.permute.xlu0 %839 }
  0xf8   : > { %860 = vst.msk [vmem:[#allocation2 + $0x10] sm:$0xf] %vm855_vm11, %v840_v1  ;;  %v1093_v1 = vld [vmem:[%s1934_s9] sm:$0x1] }
  0xf9   : > { %v846_v53 = vpop.permute.xlu1 %845 }
  0xfa   : > { %863 = vst.msk [vmem:[#allocation2 + $0x1c] sm:$0xf] %vm855_vm11, %v846_v53 }
  0xfb   : > { %v844_v56 = vpop.permute.xlu0 %843 }
  0xfc   : > { %862 = vst.msk [vmem:[#allocation2 + $0x18] sm:$0xf] %vm855_vm11, %v844_v56 }
  0xfd   : > { %v889_v57 = vpop.permute.xlu1 %888 }
  0xfe   : > { %908 = vst.msk [vmem:[#allocation2 + $0x14] sm:$0xf] %vm902_vm12, %v889_v57 }
  0xff   : > { %v887_v52 = vpop.permute.xlu0 %886 }
 0x100   : > { %907 = vst.msk [vmem:[#allocation2 + $0x10] sm:$0xf] %vm902_vm12, %v887_v52 }
 0x101   : > { %v893_v62 = vpop.permute.xlu1 %892 }
 0x102   : > { %910 = vst.msk [vmem:[#allocation2 + $0x1c] sm:$0xf] %vm902_vm12, %v893_v62 }
 0x103   : > { %v891_v8 = vpop.permute.xlu0 %890 }
 0x104   : > { %909 = vst.msk [vmem:[#allocation2 + $0x18] sm:$0xf] %vm902_vm12, %v891_v8 }
 0x107   : > { %v1411_v26 = vld [vmem:[#allocation2 + $0x10] sm:$0xff]  }
 0x108   : > { %1354 = vmatprep.mubr.msk.bf16.mxu1 %vm975_vm13, %v1411_v26 }
 0x10b   : > { %v1412_v37 = vld [vmem:[#allocation2 + $0x18] sm:$0xff]  }
 0x10c   : > { %1355 = vmatmul.mubr.msk.bf16.vlgmr.msra.gmra.mrb[0].mxu1 %vm975_vm13, %v1412_v37 }
 0x1a3   : > { %v1352_v39 = vpop.f32.mrb[0].mxu0 }
 0x1a4   : > { %v1066_v45 = vmul.f32 %v1352_v39, %v1310_v15  ;;  %v1026_v28 = vpop.f32.mrb[1].mxu0 }
 0x1a5   : > { %v1064_v46 = vmul.f32 %v1310_v15, %v1026_v28  ;;  %v1353_v16 = vpop.f32.mrb[2].mxu0 }
 0x1a6   : > { %v1081_v47 = vadd.f32 %v1311_v36, %v1066_v45  ;;  %v1067_v48 = vmul.f32 %v1353_v16, %v1310_v15  ;;  %v1029_v54 = vpop.f32.mrb[3].mxu0 }
 0x1a7   : > { %v1079_v55 = vadd.f32 %v1311_v36, %v1064_v46  ;;  %v1065_v58 = vmul.f32 %v1310_v15, %v1029_v54 }
 0x1a8   : > { %v1325_v60 = vpack.c.bf16 %v1081_v47, %v1081_v47  ;;  %v1082_v61 = vadd.f32 %v1311_v36, %v1067_v48  ;;  %v1098_v13 = vsel %vm1091_vm14, %v1081_v47, 0.0 }
 0x1a9   : > { %v1323_v63 = vpack.c.bf16 %v1079_v55, %v1079_v55  ;;  %v1080_v5 = vadd.f32 %v1311_v36, %v1065_v58  ;;  %v1095_v7 = vsel %vm1091_vm14, %v1079_v55, 0.0 }
 0x1aa   : > { %1153 = vst.msk [vmem:[%s1948_s17 + $0x8] sm:$0xf] %vm364_vm2, %v1325_v60  ;;  %v1326_v6 = vpack.c.bf16 %v1082_v61, %v1082_v61  ;;  %v1100_v27 = vsel %vm1091_vm14, %v1082_v61, 0.0 }
 0x1ab   : > { %1151 = vst.msk [vmem:[%s1948_s17] sm:$0xf] %vm364_vm2, %v1323_v63  ;;  %v1096_v59 = vsel %vm1091_vm14, %v1080_v5, 0.0  ;;  %v1324_v9 = vpack.c.bf16 %v1080_v5, %v1080_v5 }
 0x1ac   : > { %1154 = vst.msk [vmem:[%s1948_s17 + $0xc] sm:$0xf] %vm364_vm2, %v1326_v6  ;;  %v1097_v11 = vadd.f32 %v1096_v59, %v1095_v7 }
 0x1ad   : > { %1152 = vst.msk [vmem:[%s1948_s17 + $0x4] sm:$0xf] %vm364_vm2, %v1324_v9 }
 0x1ae   : > { %v1099_v14 = vadd.f32 %v1098_v13, %v1097_v11 }
 0x1b0   : > { %v1101_v17 = vadd.f32 %v1100_v27, %v1099_v14 }
 0x1df   : > { %v1356_v18 = vpop.f32.mrb[0].mxu1 }
 0x1e0   : > { %v1070_v19 = vmul.f32 %v1356_v18, %v1310_v15  ;;  %v1042_v4 = vpop.f32.mrb[1].mxu1 }
 0x1e1   : > { %v1068_v20 = vmul.f32 %v1310_v15, %v1042_v4  ;;  %v1357_v10 = vpop.f32.mrb[2].mxu1 }
 0x1e2   : > { %v1085_v21 = vadd.f32 %v1311_v36, %v1070_v19  ;;  %v1071_v23 = vmul.f32 %v1357_v10, %v1310_v15  ;;  %v1045_v24 = vpop.f32.mrb[3].mxu1 }
 0x1e3   : > { %v1083_v22 = vadd.f32 %v1311_v36, %v1068_v20  ;;  %v1069_v0 = vmul.f32 %v1310_v15, %v1045_v24 }
 0x1e4   : > { %v1329_v25 = vpack.c.bf16 %v1085_v21, %v1085_v21  ;;  %v1086_v29 = vadd.f32 %v1311_v36, %v1071_v23  ;;  %v1106_v40 = vsel %vm1091_vm14, %v1085_v21, 0.0 }
 0x1e5   : > { %v1102_v30 = vsel %vm1091_vm14, %v1083_v22, 0.0  ;;  %v1327_v3 = vpack.c.bf16 %v1083_v22, %v1083_v22  ;;  %v1084_v31 = vadd.f32 %v1311_v36, %v1069_v0 }
 0x1e6   : > { %1157 = vst.msk [vmem:[%s1948_s17 + $0x18] sm:$0xf] %vm364_vm2, %v1329_v25  ;;  %v1103_v32 = vadd.f32 %v1102_v30, %v1101_v17  ;;  %v1330_v34 = vpack.c.bf16 %v1086_v29, %v1086_v29  ;;  %v1108_v41 = vsel %vm1091_vm14, %v1086_v29, 0.0 }
 0x1e7   : > { %1155 = vst.msk [vmem:[%s1948_s17 + $0x10] sm:$0xf] %vm364_vm2, %v1327_v3  ;;  %v1104_v35 = vsel %vm1091_vm14, %v1084_v31, 0.0  ;;  %v1328_v38 = vpack.c.bf16 %v1084_v31, %v1084_v31 }
 0x1e8   : > { %1158 = vst.msk [vmem:[%s1948_s17 + $0x1c] sm:$0xf] %vm364_vm2, %v1330_v34  ;;  %v1105_v2 = vadd.f32 %v1104_v35, %v1103_v32 }
 0x1e9   : > { %1156 = vst.msk [vmem:[%s1948_s17 + $0x14] sm:$0xf] %vm364_vm2, %v1328_v38 }
 0x1ea   : > { %v1107_v12 = vadd.f32 %v1106_v40, %v1105_v2 }
 0x1ec   : > { %v1109_v42 = vadd.f32 %v1108_v41, %v1107_v12 }
 0x1ee   : > { %v1110_v43 = vrot.slane %v1109_v42, 4 }
 0x1f0   : > { %v1111_v44 = vadd.f32 %v1110_v43, %v1109_v42 }
 0x1f2   : > { %v1112_v49 = vrot.slane %v1111_v44, 2 }
 0x1f4   : > { %v1113_v50 = vadd.f32 %v1112_v49, %v1111_v44 }
 0x1f6   : > { %v1114_v51 = vrot.slane %v1113_v50, 1 }
 0x1f8   : > { %v1115_v53 = vadd.f32 %v1114_v51, %v1113_v50 }
 0x1fa   : > { %v1116_v56 = vadd.f32 %v1115_v53, %v1093_v1 }
 0x1fc   : > { %1118 = vst.msk [vmem:[%s1934_s9] sm:$0x1] %vm1117_vm15, %v1116_v56 }
 0x1fd PF: > { %s17_s23 = sadd.s32 1, %s1435_s23   ;;  %s1994_s21 = smov %s1431_s22 }
 0x1fe   : > { %p14_p5 = scmp.ge.s32.totalorder %s17_s23, 4   ;;  %s1995_s22 = smov %s1997_s24 }
 0x200   :  { %16 = sbr.rel (!%p14_p5) target bundleno = 2 (0x2), region = 91 }

// kernel: ibottleneck_forward.4
= control target key start
LH: loop header
LB: loop body
LE: loop exit
PB: predicated region body
PF: predicated region fallthrough
CT: control target
= control target key end

     0   :  { %s3151_s12 = smov 0   ;;  %s3153_s13 = smov 0   ;;  %s4230_s0 = inlined_call_operand.vmem [shape: bf16[2,18,18,4], index: 0, kind: input, shape index: {}]   ;;  %s4231_s1 = inlined_call_operand.vmem [shape: bf16[36,8], index: 1, kind: input, shape index: {}]   ;;  %s4232_s2 = inlined_call_operand.vmem [shape: f32[1,8], index: 2, kind: input, shape index: {}]   ;;  %s4233_s3 = inlined_call_operand.vmem [shape: bf16[2,256,8], index: 3, kind: output, shape index: {}]  }
   0x1   :  { %s3155_s14 = smov 0  }
   0x2 LB: > { %s25_s15 = sadd.s32 1, %s3117_s13  ;;  %p2619_p0 = scmp.ge.s32.totalorder %s3121_s14, 1  ;;  %s3121_s14 = sphi %s3155_s14, %s13_s14   ;;  %s3117_s13 = sphi %s3153_s13, %s4235_s13   ;;  %s3113_s12 = sphi %s3151_s12, %s4234_s12  }
   0x3   : > { %p27_p1 = scmp.ge.s32.totalorder %s25_s15, 2  ;;  %p151_p2 = scmp.lt.s32.totalorder %s3121_s14, 3 }
   0x5   : > { %s4237_s15 = smov (%p27_p1, %s25_s15), 0  ;;  %p152_p3 = pnand %p2619_p0, %p151_p2 }
   0x6   : > { %p179_p4 = scmp.lt.s32.totalorder (!%p152_p3), %s3113_s12, 1  ;;  %vm666_vm0 = vcmask (!%p152_p3), 1046528   ;;  %s3123_s20 = smov (!%p152_p3), 12   ;;  %vm408_vm1 = vsmask.f32 (!%p152_p3), 7424  ;;  %vm343_vm2 = vcmask (!%p152_p3), 31744  }
   0x7   : > { %155 = sbr.rel (%p152_p3) target bundleno = 618 (0x26a), region = 32  ;;  %s3124_s21 = smov (!%p152_p3), 8   ;;  %vm2095_vm3 = vcmask (!%p152_p3), 1041408   ;;  %vm649_vm4 = vcmask (!%p152_p3), 64544   ;;  %vm763_vm5 = vcmask (!%p152_p3), 97344   ;;  %vm960_vm6 = vcmask (!%p152_p3), 130144  }
   0x8   : > { %s3125_s22 = smov (!%p152_p3), 4   ;;  %s3126_s23 = smov (!%p152_p3), 16   ;;  %vm1265_vm7 = vcmask (!%p152_p3), 162944   ;;  %vm1378_vm8 = vcmask (!%p152_p3), 195744   ;;  %vm1575_vm9 = vcmask (!%p152_p3), 228544   ;;  %vm1880_vm10 = vcmask (!%p152_p3), 261344  }
   0x9   : > { %s3127_s24 = smov (!%p152_p3), 20   ;;  %s3128_s25 = smov (!%p152_p3), 24   ;;  %vm1993_vm11 = vcmask (!%p152_p3), 294144   ;;  %vm2046_vm12 = vcmask (!%p152_p3), 293888   ;;  %vm2491_vm13 = vcmask (!%p152_p3), 60416  }
   0xa   : > { %s3129_s26 = smov (!%p152_p3), 28   ;;  %s3130_s27 = smov (!%p152_p3), 32  }
   0xe   : > { %s4239_s12 = smov (!%p179_p4, %s3113_s12), 1 }
   0xf   : > { %s2967_s16 = smul.u32 216, %s4239_s12  ;;  %s2869_s9 = sshll.u32 %s4239_s12, 7 }
  0x11   : > { %s3175_s19 = scalar_lea.vmem %s4230_s0, %s2967_s16  ;;  %s4122_s16 = scalar_lea.vmem %s4233_s3, %s2869_s9 }
  0x12   : > { %v3178_v0 = vld [vmem:[%s3175_s19 + $0x6c] sm:$0xff]   ;;  %v3188_v2 = vld [vmem:[%s3175_s19 + $0x60] sm:$0xff]   ;;  %v3003_v3 = vld [vmem:[%s3175_s19 + $0x68] ss:$0 sps:$4 sm:$0x11]  }
  0x13   : > { %v3181_v1 = vld [vmem:[%s3175_s19 + $0xc] sm:$0xff]   ;;  %928 = vrot.lane.b32.xlu1 %v3178_v0, %s3123_s20  ;;  %v3192_v4 = vld [vmem:[%s3175_s19] sm:$0xff]   ;;  %v1122_v5 = vshrl.u32 %v3178_v0, 16  ;;  %v691_v6 = vrot.slane %v3188_v2, 1  ;;  %v692_v7 = vrot.slane %v3003_v3, 1  ;;  %v3222_v36 = vld [vmem:[%s3175_s19 + $0x78] sm:$0xff]  }
  0x14   : > { %912 = vrot.lane.b32.xlu0 %v3181_v1, %s3123_s20  ;;  %v3005_v8 = vld [vmem:[%s3175_s19 + $0x8] ss:$0 sps:$4 sm:$0x11]   ;;  %v3198_v9 = vld [vmem:[%s3175_s19 + $0x6c] sm:$0xff]   ;;  %v667_v10 = vrot.slane %v3192_v4, 1  ;;  %v410_v22 = vshrl.u32 %v3192_v4, 16 }
  0x15   : > { %v3202_v11 = vld [vmem:[%s3175_s19 + $0xc] sm:$0xff]   ;;  %v693_v12 = vsel %vm666_vm0, %v691_v6, %v692_v7  ;;  %v668_v13 = vrot.slane %v3005_v8, 1  ;;  %v3007_v14 = vld [vmem:[%s3175_s19 + $0x74] ss:$0 sps:$4 sm:$0x11]   ;;  %v694_v15 = vrot.slane %v3198_v9, 1 }
  0x16   : > { %v670_v16 = vrot.slane %v3202_v11, 1  ;;  %v695_v18 = vrot.slane %v3007_v14, 1  ;;  %v3009_v19 = vld [vmem:[%s3175_s19 + $0x14] ss:$0 sps:$4 sm:$0x11]   ;;  %v422_v20 = vshrl.u32 %v3202_v11, 16 }
  0x17   : > { %731 = vrot.lane.b32.xlu1 %v693_v12, %s3124_s21  ;;  %v669_v17 = vsel %vm666_vm0, %v667_v10, %v668_v13  ;;  %v424_v21 = vshll.u32 %v3202_v11, 16  ;;  %v412_v23 = vshll.u32 %v3192_v4, 16  ;;  %v671_v25 = vrot.slane %v3009_v19, 1  ;;  %v3012_v44 = vld [vmem:[%s3175_s19 + $0x74] ss:$0 sps:$4 sm:$0x11]  }
  0x18   : > { %715 = vrot.lane.b32.xlu0 %v669_v17, %s3124_s21  ;;  %v696_v24 = vsel %vm666_vm0, %v694_v15, %v695_v18  ;;  %v429_v26 = vshll.u32 %v3009_v19, 16  ;;  %v417_v27 = vshll.u32 %v3005_v8, 16  ;;  %v518_v30 = vshrl.u32 %v3198_v9, 16  ;;  %v3013_v49 = vld [vmem:[%s3175_s19 + $0x14] ss:$0 sps:$4 sm:$0x11]  }
  0x19   : > { %v426_v28 = vrot.slane %v424_v21, 1  ;;  %v414_v29 = vrot.slane %v412_v23, 1  ;;  %v520_v31 = vshll.u32 %v3198_v9, 16  ;;  %v672_v32 = vsel %vm666_vm0, %v670_v16, %v671_v25  ;;  %v3234_v52 = vld [vmem:[%s3175_s19 + $0x18] sm:$0xff]   ;;  %345 = vst.msk [vmem:[#allocation2 + $0x8] sm:$0xff] %vm343_vm2, %v3202_v11  ;;  %344 = vst.msk [vmem:[#allocation2] sm:$0xff] %vm343_vm2, %v3192_v4 }
  0x1a   : > { %v431_v33 = vrot.slane %v429_v26, 1  ;;  %v419_v34 = vrot.slane %v417_v27, 1  ;;  %v525_v35 = vshll.u32 %v3007_v14, 16  ;;  %v506_v40 = vshrl.u32 %v3188_v2, 16  ;;  %352 = vst.msk [vmem:[#allocation2 + $0x40] sm:$0xff] %vm343_vm2, %v3188_v2  ;;  %353 = vst.msk [vmem:[#allocation2 + $0x48] sm:$0xff] %vm343_vm2, %v3198_v9 }
  0x1b   : > { %733 = vrot.lane.b32.xlu1 %v696_v24, %s3124_s21  ;;  %v427_v37 = vor.u32 %v426_v28, %v422_v20  ;;  %v415_v38 = vor.u32 %v414_v29, %v410_v22  ;;  %v522_v39 = vrot.slane %v520_v31, 1  ;;  %v508_v42 = vshll.u32 %v3188_v2, 16  ;;  %v3014_v58 = vld [vmem:[%s3175_s19 + $0x80] ss:$0 sps:$4 sm:$0x11]  }
  0x1c   : > { %717 = vrot.lane.b32.xlu0 %v672_v32, %s3124_s21  ;;  %v527_v41 = vrot.slane %v525_v35, 1  ;;  %v513_v43 = vshll.u32 %v3003_v3, 16  ;;  %v1124_v48 = vshll.u32 %v3178_v0, 16  ;;  %v1129_v53 = vshll.u32 %v3012_v44, 16 }
  0x1d   : > { %v432_v45 = vsel %vm408_vm1, %v427_v37, %v431_v33  ;;  %v420_v46 = vsel %vm408_vm1, %v415_v38, %v419_v34  ;;  %v523_v47 = vor.u32 %v522_v39, %v518_v30  ;;  %v510_v50 = vrot.slane %v508_v42, 1  ;;  %v3015_v62 = vld [vmem:[%s3175_s19 + $0x20] ss:$0 sps:$4 sm:$0x11]   ;;  %v3264_v30 = vld [vmem:[%s3175_s19 + $0x78] sm:$0xff]   ;;  %v3279_v38 = vld [vmem:[%s3175_s19 + $0x84] sm:$0xff]  }
  0x1e   : > { %v515_v51 = vrot.slane %v513_v43, 1  ;;  %v1126_v55 = vrot.slane %v1124_v48, 1  ;;  %v1028_v56 = vshll.u32 %v3181_v1, 16  ;;  %v1033_v57 = vshll.u32 %v3013_v49, 16 }
  0x1f   : > { %603 = vrot.lane.b32.xlu1 %v432_v45, %s3125_s22  ;;  %v528_v54 = vsel %vm408_vm1, %v523_v47, %v527_v41  ;;  %v511_v59 = vor.u32 %v510_v50, %v506_v40  ;;  %v1026_v60 = vshrl.u32 %v3181_v1, 16  ;;  %v1136_v61 = vshll.u32 %v3222_v36, 16  ;;  %v3276_v37 = vld [vmem:[%s3175_s19 + $0x80] ss:$0 sps:$4 sm:$0x11]   ;;  %v3284_v40 = vld [vmem:[%s3175_s19 + $0x24] sm:$0xff]  }
  0x20   : > { %601 = vrot.lane.b32.xlu0 %v420_v46, %s3125_s22  ;;  %v1131_v63 = vrot.slane %v1129_v53, 1  ;;  %v1030_v3 = vrot.slane %v1028_v56, 1  ;;  %v1035_v7 = vrot.slane %v1033_v57, 1  ;;  %v1134_v8 = vshrl.u32 %v3222_v36, 16 }
  0x21   : > { %v516_v6 = vsel %vm408_vm1, %v511_v59, %v515_v51  ;;  %v1040_v10 = vshll.u32 %v3234_v52, 16  ;;  %v1127_v12 = vor.u32 %v1126_v55, %v1122_v5  ;;  %v1138_v13 = vrot.slane %v1136_v61, 1  ;;  %v3298_v48 = vld [vmem:[%s3175_s19 + $0x8c] ss:$0 sps:$4 sm:$0x11]   ;;  %v3315_v59 = vld [vmem:[%s3175_s19 + $0x18] sm:$0xff]  }
  0x22   : > { %v1141_v14 = vshll.u32 %v3014_v58, 16  ;;  %v1031_v15 = vor.u32 %v1030_v3, %v1026_v60  ;;  %v1038_v16 = vshrl.u32 %v3234_v52, 16  ;;  %v1045_v18 = vshll.u32 %v3015_v62, 16  ;;  %v3305_v53 = vld [vmem:[%s3175_s19 + $0x2c] ss:$0 sps:$4 sm:$0x11]  }
  0x23   : > { %619 = vrot.lane.b32.xlu1 %v528_v54, %s3125_s22  ;;  %v1042_v17 = vrot.slane %v1040_v10, 1  ;;  %v1132_v19 = vsel %vm408_vm1, %v1127_v12, %v1131_v63  ;;  %v1139_v20 = vor.u32 %v1138_v13, %v1134_v8  ;;  %v1306_v25 = vrot.slane %v3178_v0, 1  ;;  %v3308_v54 = vld [vmem:[%s3175_s19 + $0x78] sm:$0xff]   ;;  %v3325_v8 = vld [vmem:[%s3175_s19 + $0x20] ss:$0 sps:$4 sm:$0x11]  }
  0x24   : > { %617 = vrot.lane.b32.xlu0 %v516_v6, %s3125_s22  ;;  %v1143_v21 = vrot.slane %v1141_v14, 1  ;;  %v1036_v5 = vsel %vm408_vm1, %v1031_v15, %v1035_v7  ;;  %v1047_v23 = vrot.slane %v1045_v18, 1  ;;  %v1307_v26 = vrot.slane %v3012_v44, 1  ;;  %v3322_v7 = vld [vmem:[%s3175_s19 + $0x80] ss:$0 sps:$4 sm:$0x11]  }
  0x25   : > { %v1043_v22 = vor.u32 %v1042_v17, %v1038_v16  ;;  %v1282_v28 = vrot.slane %v3181_v1, 1  ;;  %v1283_v29 = vrot.slane %v3013_v49, 1  ;;  %v1309_v32 = vrot.slane %v3222_v36, 1  ;;  %v3273_v1 = vld [vmem:[%s3175_s19 + $0x18] sm:$0xff]   ;;  %346 = vst.msk [vmem:[#allocation2 + $0x10] sm:$0xff] %vm343_vm2, %v3315_v59  ;;  %354 = vst.msk [vmem:[#allocation2 + $0x50] sm:$0xff] %vm343_vm2, %v3308_v54 }
  0x26   : > { %v1144_v24 = vsel %vm408_vm1, %v1139_v20, %v1143_v21  ;;  %v1308_v31 = vsel %vm666_vm0, %v1306_v25, %v1307_v26  ;;  %v1310_v0 = vrot.slane %v3014_v58, 1  ;;  %v1285_v34 = vrot.slane %v3234_v52, 1  ;;  %v3345_v26 = vld [vmem:[%s3175_s19 + $0x84] sm:$0xff]  }
  0x27   : > { %930 = vrot.lane.b32.xlu1 %v3222_v36, %s3123_s20  ;;  %v1048_v27 = vsel %vm408_vm1, %v1043_v22, %v1047_v23  ;;  %v1284_v33 = vsel %vm666_vm0, %v1282_v28, %v1283_v29  ;;  %v1286_v35 = vrot.slane %v3015_v62, 1  ;;  %v1739_v39 = vshll.u32 %v3264_v30, 16  ;;  %v3287_v36 = vld [vmem:[%s3175_s19 + $0x20] ss:$0 sps:$4 sm:$0x11]   ;;  %355 = vst.msk [vmem:[#allocation2 + $0x58] sm:$0xff] %vm343_vm2, %v3345_v26 }
  0x28   : > { %914 = vrot.lane.b32.xlu0 %v3234_v52, %s3123_s20  ;;  %v1311_v41 = vsel %vm666_vm0, %v1309_v32, %v1310_v0  ;;  %v1643_v43 = vshll.u32 %v3273_v1, 16  ;;  %v1737_v44 = vshrl.u32 %v3264_v30, 16  ;;  %v1744_v46 = vshll.u32 %v3276_v37, 16 }
  0x29   : > { %v1287_v42 = vsel %vm666_vm0, %v1285_v34, %v1286_v35  ;;  %v1741_v45 = vrot.slane %v1739_v39, 1  ;;  %v1648_v47 = vshll.u32 %v3287_v36, 16  ;;  %v1751_v49 = vshll.u32 %v3279_v38, 16  ;;  %v3357_v35 = vld [vmem:[%s3175_s19 + $0x8c] ss:$0 sps:$4 sm:$0x11]  }
  0x2a   : > { %v1655_v50 = vshll.u32 %v3284_v40, 16  ;;  %v1641_v51 = vshrl.u32 %v3273_v1, 16  ;;  %v1645_v52 = vrot.slane %v1643_v43, 1  ;;  %v1746_v56 = vrot.slane %v1744_v46, 1 }
  0x2b   : > { %1233 = vrot.lane.b32.xlu1 %v1132_v19, %s3126_s23  ;;  %v1742_v55 = vor.u32 %v1741_v45, %v1737_v44  ;;  %v1749_v57 = vshrl.u32 %v3279_v38, 16  ;;  %v1653_v58 = vshrl.u32 %v3284_v40, 16  ;;  %v1650_v60 = vrot.slane %v1648_v47, 1 }
  0x2c   : > { %1217 = vrot.lane.b32.xlu0 %v1036_v5, %s3126_s23  ;;  %v1753_v61 = vrot.slane %v1751_v49, 1  ;;  %v1756_v62 = vshll.u32 %v3298_v48, 16  ;;  %v1657_v63 = vrot.slane %v1655_v50, 1  ;;  %v1646_v3 = vor.u32 %v1645_v52, %v1641_v51 }
  0x2d   : > { %v1660_v6 = vshll.u32 %v3305_v53, 16  ;;  %v1747_v10 = vsel %vm408_vm1, %v1742_v55, %v1746_v56  ;;  %v532_v14 = vshll.u32 %v3308_v54, 16  ;;  %v436_v18 = vshll.u32 %v3315_v59, 16 }
  0x2e   : > { %v1754_v12 = vor.u32 %v1753_v61, %v1749_v57  ;;  %v1758_v13 = vrot.slane %v1756_v62, 1  ;;  %v1651_v15 = vsel %vm408_vm1, %v1646_v3, %v1650_v60  ;;  %v1658_v16 = vor.u32 %v1657_v63, %v1653_v58  ;;  %v3384_v61 = vld [vmem:[%s3175_s19 + $0x90] sm:$0xff]  }
  0x2f   : > { %1235 = vrot.lane.b32.xlu1 %v1144_v24, %s3126_s23  ;;  %v1662_v17 = vrot.slane %v1660_v6, 1  ;;  %v1921_v19 = vrot.slane %v3264_v30, 1  ;;  %v1922_v20 = vrot.slane %v3276_v37, 1  ;;  %v537_v21 = vshll.u32 %v3322_v7, 16  ;;  %v3390_v3 = vld [vmem:[%s3175_s19 + $0x30] sm:$0xff]   ;;  %356 = vst.msk [vmem:[#allocation2 + $0x60] sm:$0xff] %vm343_vm2, %v3384_v61 }
  0x30   : > { %1219 = vrot.lane.b32.xlu0 %v1048_v27, %s3126_s23  ;;  %v441_v5 = vshll.u32 %v3325_v8, 16  ;;  %v1759_v22 = vsel %vm408_vm1, %v1754_v12, %v1758_v13  ;;  %v1897_v23 = vrot.slane %v3273_v1, 1  ;;  %v530_v24 = vshrl.u32 %v3308_v54, 16  ;;  %v3396_v13 = vld [vmem:[%s3175_s19 + $0x9c] sm:$0xff]   ;;  %348 = vst.msk [vmem:[#allocation2 + $0x20] sm:$0xff] %vm343_vm2, %v3390_v3 }
  0x31   : > { %v534_v25 = vrot.slane %v532_v14, 1  ;;  %v1663_v27 = vsel %vm408_vm1, %v1658_v16, %v1662_v17  ;;  %v1898_v28 = vrot.slane %v3287_v36, 1  ;;  %v434_v29 = vshrl.u32 %v3315_v59, 16  ;;  %v3362_v36 = vld [vmem:[%s3175_s19 + $0x2c] ss:$0 sps:$4 sm:$0x11]  }
  0x32   : > { %v539_v32 = vrot.slane %v537_v21, 1  ;;  %v443_v0 = vrot.slane %v441_v5, 1  ;;  %v1925_v43 = vrot.slane %v3298_v48, 1  ;;  %v1900_v44 = vrot.slane %v3284_v40, 1  ;;  %v3399_v14 = vld [vmem:[%s3175_s19 + $0x3c] sm:$0xff]   ;;  %357 = vst.msk [vmem:[#allocation2 + $0x68] sm:$0xff] %vm343_vm2, %v3396_v13 }
  0x33   : > { %1346 = vrot.lane.b32.xlu1 %v1308_v31, %s3127_s24  ;;  %v3351_v31 = vld [vmem:[%s3175_s19 + $0x24] sm:$0xff]   ;;  %v535_v34 = vor.u32 %v534_v25, %v530_v24  ;;  %v1899_v37 = vsel %vm666_vm0, %v1897_v23, %v1898_v28  ;;  %v1901_v45 = vrot.slane %v3305_v53, 1  ;;  %v542_v47 = vshrl.u32 %v3345_v26, 16  ;;  %349 = vst.msk [vmem:[#allocation2 + $0x28] sm:$0xff] %vm343_vm2, %v3399_v14  ;;  %v3443_v17 = vld [vmem:[%s3175_s19 + $0x90] sm:$0xff]  }
  0x34   : > { %1330 = vrot.lane.b32.xlu0 %v1284_v33, %s3127_s24  ;;  %v1923_v33 = vsel %vm666_vm0, %v1921_v19, %v1922_v20  ;;  %v549_v50 = vshll.u32 %v3357_v35, 16  ;;  %v697_v60 = vrot.slane %v3308_v54, 1  ;;  %v698_v63 = vrot.slane %v3322_v7, 1  ;;  %347 = vst.msk [vmem:[#allocation2 + $0x18] sm:$0xff] %vm343_vm2, %v3351_v31  ;;  %v3435_v54 = vld [vmem:[%s3175_s19 + $0x24] sm:$0xff]   ;;  %v3451_v5 = vld [vmem:[%s3175_s19 + $0x30] sm:$0xff]  }
  0x35   : > { %v540_v46 = vsel %vm408_vm1, %v535_v34, %v539_v32  ;;  %v1902_v56 = vsel %vm666_vm0, %v1900_v44, %v1901_v45  ;;  %v674_v12 = vrot.slane %v3325_v8, 1  ;;  %v700_v4 = vrot.slane %v3345_v26, 1  ;;  %v3036_v8 = vld [vmem:[%s3175_s19 + $0x8c] ss:$0 sps:$4 sm:$0x11]  }
  0x36   : > { %v551_v55 = vrot.slane %v549_v50, 1  ;;  %v699_v2 = vsel %vm666_vm0, %v697_v60, %v698_v63  ;;  %v701_v9 = vrot.slane %v3357_v35, 1  ;;  %v676_v11 = vrot.slane %v3351_v31, 1  ;;  %v3037_v19 = vld [vmem:[%s3175_s19 + $0x2c] ss:$0 sps:$4 sm:$0x11]  }
  0x37   : > { %1348 = vrot.lane.b32.xlu1 %v1311_v41, %s3127_s24  ;;  %v448_v41 = vshll.u32 %v3351_v31, 16  ;;  %v677_v7 = vrot.slane %v3362_v36, 1  ;;  %v1052_v20 = vshll.u32 %v3435_v54, 16  ;;  %v1050_v23 = vshrl.u32 %v3435_v54, 16  ;;  %v3071_v63 = vld [vmem:[%s4231_s1 + $0x8] sm:$0xff]  }
  0x38   : > { %1332 = vrot.lane.b32.xlu0 %v1287_v42, %s3127_s24  ;;  %v1924_v42 = vrot.slane %v3279_v38, 1  ;;  %v3038_v25 = vld [vmem:[%s3175_s19 + $0x98] ss:$0 sps:$4 sm:$0x11]   ;;  %v1158_v32 = vshrl.u32 %v3443_v17, 16 }
  0x39   : > { %v450_v52 = vrot.slane %v448_v41, 1  ;;  %v678_v21 = vsel %vm666_vm0, %v676_v11, %v677_v7  ;;  %v1054_v28 = vrot.slane %v1052_v20, 1  ;;  %v3520_v11 = vld [vmem:[%s3175_s19 + $0x9c] sm:$0xff]   ;;  %v3536_v20 = vld [vmem:[%s3175_s19 + $0xb4] sm:$0xff]  }
  0x3a   : > { %v1926_v48 = vsel %vm666_vm0, %v1924_v42, %v1925_v43  ;;  %359 = vst.msk [vmem:[#allocation2 + $0x78] sm:$0xff] %vm343_vm2, %v3536_v20 }
  0x3b   : > { %1543 = vrot.lane.b32.xlu1 %v3264_v30, %s3128_s25  ;;  %v438_v30 = vrot.slane %v436_v18, 1  ;;  %v702_v18 = vsel %vm666_vm0, %v700_v4, %v701_v9  ;;  %v3513_v4 = vld [vmem:[%s3175_s19 + $0x38] ss:$0 sps:$4 sm:$0x11]   ;;  %v3516_v9 = vld [vmem:[%s3175_s19 + $0x48] sm:$0xff]  }
  0x3c   : > { %1527 = vrot.lane.b32.xlu0 %v3273_v1, %s3128_s25  ;;  %v544_v1 = vshll.u32 %v3345_v26, 16  ;;  %v1153_v26 = vshll.u32 %v3036_v8, 16  ;;  %350 = vst.msk [vmem:[#allocation2 + $0x30] sm:$0xff] %vm343_vm2, %v3516_v9 }
  0x3d   : > { %v439_v39 = vor.u32 %v438_v30, %v434_v29  ;;  %v1057_v29 = vshll.u32 %v3037_v19, 16  ;;  %v3460_v30 = vld [vmem:[%s3175_s19 + $0x38] ss:$0 sps:$4 sm:$0x11]  }
  0x3e   : > { %v546_v49 = vrot.slane %v544_v1, 1  ;;  %v1155_v34 = vrot.slane %v1153_v26, 1  ;;  %v1165_v1 = vshll.u32 %v3038_v25, 16  ;;  %v1069_v41 = vshll.u32 %v3460_v30, 16 }
  0x3f   : > { %1545 = vrot.lane.b32.xlu1 %v3279_v38, %s3128_s25  ;;  %v444_v51 = vsel %vm408_vm1, %v439_v39, %v443_v0  ;;  %v446_v38 = vshrl.u32 %v3351_v31, 16  ;;  %v1064_v31 = vshll.u32 %v3451_v5, 16  ;;  %v1062_v0 = vshrl.u32 %v3451_v5, 16  ;;  %v3553_v26 = vld [vmem:[%s3175_s19 + $0x44] ss:$0 sps:$4 sm:$0x11]  }
  0x40   : > { %1529 = vrot.lane.b32.xlu0 %v3284_v40, %s3128_s25  ;;  %v453_v40 = vshll.u32 %v3362_v36, 16  ;;  %v547_v53 = vor.u32 %v546_v49, %v542_v47  ;;  %v1059_v39 = vrot.slane %v1057_v29, 1  ;;  %v1167_v44 = vrot.slane %v1165_v1, 1 }
  0x41   : > { %v451_v57 = vor.u32 %v450_v52, %v446_v38  ;;  %v1066_v36 = vrot.slane %v1064_v31, 1  ;;  %v1071_v47 = vrot.slane %v1069_v41, 1  ;;  %v3481_v38 = vld [vmem:[%s3175_s19 + $0x90] sm:$0xff]   ;;  %v3068_v52 = vld [vmem:[%s4231_s1] sm:$0xff]   ;;  %v1292_v60 = vrot.slane %v3460_v30, 1 }
  0x42   : > { %v455_v58 = vrot.slane %v453_v40, 1  ;;  %v552_v62 = vsel %vm408_vm1, %v547_v53, %v551_v55  ;;  %v1289_v53 = vrot.slane %v3037_v19, 1  ;;  %2921 = vmatprep.subr.bf16.mxu0 %v3068_v52  ;;  %2959 = vmatprep.subr.bf16.mxu1 %v3068_v52  ;;  %v1315_v55 = vrot.slane %v3443_v17, 1  ;;  %v3074_v19 = vld [vmem:[%s4231_s1 + $0x10] ss:$0 sps:$4 sm:$0x33]  }
  0x43   : > { %1848 = vrot.lane.b32.xlu1 %v1747_v10, %s3129_s26  ;;  %v673_v10 = vrot.slane %v3315_v59, 1  ;;  %2922 = vmatpush3.bf16.msra.mxu0 %v3068_v52  ;;  %v1684_v1 = vshll.u32 %v3553_v26, 16 }
  0x44   : > { %1832 = vrot.lane.b32.xlu0 %v1651_v15, %s3129_s26  ;;  %v456_v6 = vsel %vm408_vm1, %v451_v57, %v455_v58  ;;  %v3402_v15 = vld [vmem:[%s3175_s19 + $0x84] sm:$0xff]   ;;  %v1291_v58 = vrot.slane %v3451_v5, 1  ;;  %2962 = vmatpush3.bf16.msra.mxu1 %v3068_v52 }
  0x45   : > { %v675_v59 = vsel %vm666_vm0, %v673_v10, %v674_v12  ;;  %v1148_v16 = vshll.u32 %v3402_v15, 16  ;;  %v1312_v50 = vrot.slane %v3402_v15, 1  ;;  %v3505_v12 = vld [vmem:[%s3175_s19 + $0x98] ss:$0 sps:$4 sm:$0x11]   ;;  %2923 = vmatprep.subr.bf16.mxu0 %v3071_v63  ;;  %2960 = vmatprep.subr.bf16.mxu1 %v3071_v63 }
  0x47   : > { %1850 = vrot.lane.b32.xlu1 %v1759_v22, %s3129_s26  ;;  %v1146_v22 = vshrl.u32 %v3402_v15, 16  ;;  %v1150_v24 = vrot.slane %v1148_v16, 1  ;;  %2924 = vmatpush3.bf16.msra.mxu0 %v3071_v63  ;;  %v1293_v16 = vsel %vm666_vm0, %v1291_v58, %v1292_v60 }
  0x48   : > { %1834 = vrot.lane.b32.xlu0 %v1663_v27, %s3129_s26  ;;  %v1160_v27 = vshll.u32 %v3443_v17, 16  ;;  %2963 = vmatpush3.bf16.msra.mxu1 %v3071_v63 }
  0x49   : > { %2965 = vmatprep.subr.msk.bf16.mxu0 %vm2095_vm3, %v3074_v19  ;;  %2966 = vmatprep.subr.msk.bf16.mxu1 %vm2095_vm3, %v3074_v19 }
  0x4a   : > { %v1162_v35 = vrot.slane %v1160_v27, 1 }
  0x4b   : > { %1961 = vrot.lane.b32.xlu1 %v1923_v33, %s3130_s27  ;;  %v1151_v33 = vor.u32 %v1150_v24, %v1146_v22  ;;  %v1672_v22 = vshll.u32 %v3513_v4, 16 }
  0x4c   : > { %1945 = vrot.lane.b32.xlu0 %v1899_v37, %s3130_s27  ;;  %v1055_v37 = vor.u32 %v1054_v28, %v1050_v23  ;;  %v1163_v43 = vor.u32 %v1162_v35, %v1158_v32  ;;  %v2097_v23 = vsel %vm2095_vm3, %v3074_v19, 0  ;;  %v1773_v28 = vshrl.u32 %v3520_v11, 16 }
  0x4d   : > { %v1156_v42 = vsel %vm408_vm1, %v1151_v33, %v1155_v34  ;;  %2926 = vmatpush3.bf16.msra.mxu0 %v2097_v23  ;;  %2964 = vmatpush3.bf16.msra.mxu1 %v2097_v23  ;;  %v1674_v34 = vrot.slane %v1672_v22, 1  ;;  %v1930_v19 = vrot.slane %v3520_v11, 1 }
  0x4e   : > { %v1060_v45 = vsel %vm408_vm1, %v1055_v37, %v1059_v39  ;;  %v1168_v49 = vsel %vm408_vm1, %v1163_v43, %v1167_v44  ;;  %v3570_v37 = vld [vmem:[%s3175_s19 + $0x98] ss:$0 sps:$4 sm:$0x11]   ;;  %v556_v39 = vshll.u32 %v3384_v61, 16  ;;  %v460_v44 = vshll.u32 %v3390_v3, 16 }
  0x4f   : > { %621 = vrot.lane.b32.xlu1 %v540_v46, %s3125_s22  ;;  %v1067_v46 = vor.u32 %v1066_v36, %v1062_v0  ;;  %v3577_v43 = vld [vmem:[%s3175_s19 + $0x38] ss:$0 sps:$4 sm:$0x11]  }
  0x50   : > { %605 = vrot.lane.b32.xlu0 %v444_v51, %s3125_s22  ;;  %v1313_v51 = vrot.slane %v3036_v8, 1  ;;  %v462_v58 = vrot.slane %v460_v44, 1  ;;  %v465_v60 = vshll.u32 %v3577_v43, 16  ;;  %v704_v44 = vrot.slane %v3570_v37, 1 }
  0x51   : > { %v1072_v40 = vsel %vm408_vm1, %v1067_v46, %v1071_v47  ;;  %v1686_v47 = vrot.slane %v1684_v1, 1 }
  0x52   : > { %v1314_v57 = vsel %vm666_vm0, %v1312_v50, %v1313_v51  ;;  %v1927_v50 = vrot.slane %v3481_v38, 1  ;;  %v1928_v51 = vrot.slane %v3505_v12, 1 }
  0x53   : > { %1963 = vrot.lane.b32.xlu1 %v1926_v48, %s3130_s27  ;;  %v1288_v48 = vrot.slane %v3435_v54, 1 }
  0x54   : > { %1947 = vrot.lane.b32.xlu0 %v1902_v56, %s3130_s27  ;;  %v1316_v56 = vrot.slane %v3038_v25, 1  ;;  %v1775_v25 = vshll.u32 %v3520_v11, 16 }
  0x55   : > { %v1290_v10 = vsel %vm666_vm0, %v1288_v48, %v1289_v53  ;;  %v554_v48 = vshrl.u32 %v3384_v61, 16  ;;  %v558_v53 = vrot.slane %v556_v39, 1 }
  0x56   : > { %v1777_v32 = vrot.slane %v1775_v25, 1  ;;  %v566_v25 = vshrl.u32 %v3396_v13, 16 }
  0x57   : > { %623 = vrot.lane.b32.xlu1 %v552_v62, %s3125_s22  ;;  %v3495_v62 = vld [vmem:[%s3175_s19 + $0x30] sm:$0xff]  }
  0x58   : > { %607 = vrot.lane.b32.xlu0 %v456_v6, %s3125_s22  ;;  %v3501_v6 = vld [vmem:[%s3175_s19 + $0xa8] sm:$0xff]   ;;  %v1665_v7 = vshrl.u32 %v3495_v62, 16  ;;  %v1667_v8 = vshll.u32 %v3495_v62, 16  ;;  %v1778_v41 = vor.u32 %v1777_v32, %v1773_v28  ;;  %v1903_v52 = vrot.slane %v3495_v62, 1 }
  0x59   : > { %358 = vst.msk [vmem:[#allocation2 + $0x70] sm:$0xff] %vm343_vm2, %v3501_v6 }
  0x5a   : > { %v1669_v24 = vrot.slane %v1667_v8, 1  ;;  %v467_v8 = vrot.slane %v465_v60, 1  ;;  %v3670_v60 = vld [vmem:[%s3175_s19 + $0x48] sm:$0xff]  }
  0x5b   : > { %735 = vrot.lane.b32.xlu1 %v699_v2, %s3124_s21  ;;  %v1317_v2 = vsel %vm666_vm0, %v1315_v55, %v1316_v56  ;;  %v561_v55 = vshll.u32 %v3570_v37, 16  ;;  %v458_v56 = vshrl.u32 %v3390_v3, 16 }
  0x5c   : > { %719 = vrot.lane.b32.xlu0 %v675_v59, %s3124_s21  ;;  %v1761_v59 = vshrl.u32 %v3481_v38, 16  ;;  %v1670_v33 = vor.u32 %v1669_v24, %v1665_v7  ;;  %v1907_v24 = vrot.slane %v3553_v26, 1 }
  0x5d   : > { %v563_v63 = vrot.slane %v561_v55, 1  ;;  %v463_v7 = vor.u32 %v462_v58, %v458_v56  ;;  %v3654_v55 = vld [vmem:[%s3175_s19 + $0x3c] sm:$0xff]   ;;  %v3660_v56 = vld [vmem:[%s3175_s19 + $0xa4] ss:$0 sps:$4 sm:$0x11]  }
  0x5f   : > { %737 = vrot.lane.b32.xlu1 %v702_v18, %s3124_s21  ;;  %v1768_v18 = vshll.u32 %v3505_v12, 16  ;;  %v1929_v12 = vsel %vm666_vm0, %v1927_v50, %v1928_v51  ;;  %v680_v50 = vrot.slane %v3577_v43, 1  ;;  %v3646_v43 = vld [vmem:[%s3175_s19 + $0x9c] sm:$0xff]  }
  0x60   : > { %721 = vrot.lane.b32.xlu0 %v678_v21, %s3124_s21  ;;  %v3539_v21 = vld [vmem:[%s3175_s19 + $0xa4] ss:$0 sps:$4 sm:$0x11]  }
  0x61   : > { %v1770_v31 = vrot.slane %v1768_v18, 1  ;;  %v1780_v0 = vshll.u32 %v3539_v21, 16  ;;  %v1931_v22 = vrot.slane %v3539_v21, 1 }
  0x63   : > { %932 = vrot.lane.b32.xlu1 %v3402_v15, %s3123_s20  ;;  %v1763_v15 = vshll.u32 %v3481_v38, 16  ;;  %v1932_v26 = vsel %vm666_vm0, %v1930_v19, %v1931_v22  ;;  %v1088_v19 = vshll.u32 %v3670_v60, 16 }
  0x64   : > { %916 = vrot.lane.b32.xlu0 %v3435_v54, %s3123_s20  ;;  %v3523_v54 = vld [vmem:[%s3175_s19 + $0x3c] sm:$0xff]  }
  0x65   : > { %v1679_v27 = vshll.u32 %v3523_v54, 16  ;;  %v1677_v29 = vshrl.u32 %v3523_v54, 16  ;;  %v1906_v23 = vrot.slane %v3523_v54, 1 }
  0x67   : > { %934 = vrot.lane.b32.xlu1 %v3443_v17, %s3123_s20  ;;  %v1765_v17 = vrot.slane %v1763_v15, 1  ;;  %v1681_v35 = vrot.slane %v1679_v27, 1  ;;  %v559_v15 = vor.u32 %v558_v53, %v554_v48  ;;  %v682_v48 = vrot.slane %v3399_v14, 1 }
  0x68   : > { %918 = vrot.lane.b32.xlu0 %v3451_v5, %s3123_s20  ;;  %v3542_v5 = vld [vmem:[%s3175_s19 + $0x54] sm:$0xff]  }
  0x69   : > { %351 = vst.msk [vmem:[#allocation2 + $0x38] sm:$0xff] %vm343_vm2, %v3542_v5  ;;  %v1766_v30 = vor.u32 %v1765_v17, %v1761_v59  ;;  %v1682_v46 = vor.u32 %v1681_v35, %v1677_v29  ;;  %v472_v17 = vshll.u32 %v3399_v14, 16  ;;  %v564_v28 = vsel %vm408_vm1, %v559_v15, %v563_v63 }
  0x6a   : > { %v1908_v35 = vsel %vm666_vm0, %v1906_v23, %v1907_v24  ;;  %v1076_v63 = vshll.u32 %v3654_v55, 16  ;;  %v1177_v15 = vshll.u32 %v3660_v56, 16 }
  0x6b   : > { %1237 = vrot.lane.b32.xlu1 %v1156_v42, %s3126_s23  ;;  %v1771_v36 = vsel %vm408_vm1, %v1766_v30, %v1770_v31  ;;  %v1782_v42 = vrot.slane %v1780_v0, 1  ;;  %v468_v31 = vsel %vm408_vm1, %v463_v7, %v467_v8  ;;  %v474_v32 = vrot.slane %v472_v17, 1 }
  0x6c   : > { %1221 = vrot.lane.b32.xlu0 %v1060_v45, %s3126_s23  ;;  %v1675_v45 = vsel %vm408_vm1, %v1670_v33, %v1674_v34  ;;  %v1179_v23 = vrot.slane %v1177_v15, 1 }
  0x6f   : > { %1239 = vrot.lane.b32.xlu1 %v1168_v49, %s3126_s23 }
  0x70   : > { %1223 = vrot.lane.b32.xlu0 %v1072_v40, %s3126_s23  ;;  %v1904_v40 = vrot.slane %v3513_v4, 1  ;;  %v568_v4 = vshll.u32 %v3396_v13, 16 }
  0x72   : > { %v1905_v59 = vsel %vm666_vm0, %v1903_v52, %v1904_v40  ;;  %v570_v29 = vrot.slane %v568_v4, 1  ;;  %v1074_v4 = vshrl.u32 %v3654_v55, 16 }
  0x73   : > { %1350 = vrot.lane.b32.xlu1 %v1314_v57, %s3127_s24 }
  0x74   : > { %1334 = vrot.lane.b32.xlu0 %v1290_v10, %s3127_s24  ;;  %v571_v0 = vor.u32 %v570_v29, %v566_v25  ;;  %v1086_v29 = vshrl.u32 %v3670_v60, 16 }
  0x77   : > { %1352 = vrot.lane.b32.xlu1 %v1317_v2, %s3127_s24  ;;  %v3599_v2 = vld [vmem:[%s3175_s19 + $0xa4] ss:$0 sps:$4 sm:$0x11]  }
  0x78   : > { %1336 = vrot.lane.b32.xlu0 %v1293_v16, %s3127_s24  ;;  %v3604_v16 = vld [vmem:[%s3175_s19 + $0x44] ss:$0 sps:$4 sm:$0x11]   ;;  %v573_v30 = vshll.u32 %v3599_v2, 16  ;;  %v707_v37 = vrot.slane %v3599_v2, 1 }
  0x79   : > { %v477_v21 = vshll.u32 %v3604_v16, 16  ;;  %v683_v53 = vrot.slane %v3604_v16, 1  ;;  %v1078_v16 = vrot.slane %v1076_v63, 1 }
  0x7a   : > { %v575_v33 = vrot.slane %v573_v30, 1 }
  0x7b   : > { %1547 = vrot.lane.b32.xlu1 %v3481_v38, %s3128_s25  ;;  %v1783_v38 = vsel %vm408_vm1, %v1778_v41, %v1782_v42  ;;  %v479_v39 = vrot.slane %v477_v21, 1  ;;  %v703_v42 = vrot.slane %v3384_v61, 1  ;;  %v684_v58 = vsel %vm666_vm0, %v682_v48, %v683_v53 }
  0x7c   : > { %1531 = vrot.lane.b32.xlu0 %v3495_v62, %s3128_s25  ;;  %v1687_v62 = vsel %vm408_vm1, %v1682_v46, %v1686_v47  ;;  %v576_v41 = vsel %vm408_vm1, %v571_v0, %v575_v33  ;;  %v679_v47 = vrot.slane %v3390_v3, 1  ;;  %v706_v3 = vrot.slane %v3396_v13, 1 }
  0x7d   : > { %v705_v61 = vsel %vm666_vm0, %v703_v42, %v704_v44  ;;  %v1318_v42 = vrot.slane %v3646_v43, 1  ;;  %v1319_v44 = vrot.slane %v3660_v56, 1  ;;  %v1297_v48 = vrot.slane %v3670_v60, 1  ;;  %v3740_v56 = vld [vmem:[%s3175_s19 + $0xb0] ss:$0 sps:$4 sm:$0x11]  }
  0x7e   : > { %v681_v40 = vsel %vm666_vm0, %v679_v47, %v680_v50  ;;  %v1294_v47 = vrot.slane %v3654_v55, 1  ;;  %v1792_v15 = vshll.u32 %v3740_v56, 16 }
  0x7f   : > { %1549 = vrot.lane.b32.xlu1 %v3520_v11, %s3128_s25  ;;  %v470_v11 = vshrl.u32 %v3399_v14, 16  ;;  %v3665_v14 = vld [vmem:[%s3175_s19 + $0xa8] sm:$0xff]  }
  0x80   : > { %1533 = vrot.lane.b32.xlu0 %v3523_v54, %s3128_s25  ;;  %v1184_v7 = vshll.u32 %v3665_v14, 16  ;;  %v1182_v24 = vshrl.u32 %v3665_v14, 16 }
  0x81   : > { %v475_v1 = vor.u32 %v474_v32, %v470_v11  ;;  %v1079_v11 = vor.u32 %v1078_v16, %v1074_v4  ;;  %v1090_v32 = vrot.slane %v1088_v19, 1 }
  0x83   : > { %1852 = vrot.lane.b32.xlu1 %v1771_v36, %s3129_s26  ;;  %v480_v46 = vsel %vm408_vm1, %v475_v1, %v479_v39  ;;  %v1091_v1 = vor.u32 %v1090_v32, %v1086_v29 }
  0x84   : > { %1836 = vrot.lane.b32.xlu0 %v1675_v45, %s3129_s26 }
  0x85   : > { %v3581_v49 = vpop.permute.xlu1 %928 }
  0x86   : > { %v913_v57 = vpop.permute.xlu0 %912 }
  0x87   : > { %1854 = vrot.lane.b32.xlu1 %v1783_v38, %s3129_s26 }
  0x88   : > { %1838 = vrot.lane.b32.xlu0 %v1687_v62, %s3129_s26  ;;  %v3673_v62 = vld [vmem:[%s3175_s19 + $0x44] ss:$0 sps:$4 sm:$0x11]  }
  0x89   : > { %v732_v10 = vpop.permute.xlu1 %731  ;;  %v1081_v17 = vshll.u32 %v3673_v62, 16  ;;  %v1295_v50 = vrot.slane %v3673_v62, 1  ;;  %v3753_v62 = vld [vmem:[%s3175_s19 + $0x50] ss:$0 sps:$4 sm:$0x11]  }
  0x8a   : > { %v716_v18 = vpop.permute.xlu0 %715 }
  0x8b   : > { %1965 = vrot.lane.b32.xlu1 %v1929_v12, %s3130_s27  ;;  %v1170_v12 = vshrl.u32 %v3646_v43, 16 }
  0x8c   : > { %1949 = vrot.lane.b32.xlu0 %v1905_v59, %s3130_s27  ;;  %v3684_v59 = vld [vmem:[%s3175_s19 + $0xb0] ss:$0 sps:$4 sm:$0x11]  }
  0x8d   : > { %v734_v27 = vpop.permute.xlu1 %733 }
  0x8e   : > { %v718_v54 = vpop.permute.xlu0 %717 }
  0x8f   : > { %625 = vrot.lane.b32.xlu1 %v564_v28, %s3125_s22  ;;  %v1189_v28 = vshll.u32 %v3684_v59, 16 }
  0x90   : > { %609 = vrot.lane.b32.xlu0 %v468_v31, %s3125_s22  ;;  %v1083_v31 = vrot.slane %v1081_v17, 1  ;;  %v1696_v17 = vshll.u32 %v3753_v62, 16 }
  0x91   : > { %v604_v34 = vpop.permute.xlu1 %603  ;;  %v1191_v33 = vrot.slane %v1189_v28, 1 }
  0x92   : > { %651 = vst.msk [vmem:[#allocation2 + $0x8] sm:$0xff] %vm649_vm4, %v604_v34  ;;  %v602_v36 = vpop.permute.xlu0 %601 }
  0x93   : > { %650 = vst.msk [vmem:[#allocation2] sm:$0xff] %vm649_vm4, %v602_v36  ;;  %1967 = vrot.lane.b32.xlu1 %v1932_v26, %s3130_s27 }
  0x94   : > { %765 = vst.msk [vmem:[#allocation2 + $0x8] sm:$0xff] %vm763_vm5, %v718_v54  ;;  %764 = vst.msk [vmem:[#allocation2] sm:$0xff] %vm763_vm5, %v716_v18  ;;  %1951 = vrot.lane.b32.xlu0 %v1908_v35, %s3130_s27  ;;  %v3689_v18 = vld [vmem:[%s3175_s19 + $0x50] ss:$0 sps:$4 sm:$0x11]   ;;  %v1084_v35 = vsel %vm408_vm1, %v1079_v11, %v1083_v31  ;;  %v1698_v31 = vrot.slane %v1696_v17, 1 }
  0x95   : > { %v620_v45 = vpop.permute.xlu1 %619  ;;  %961 = vst.msk [vmem:[#allocation2] sm:$0xff] %vm960_vm6, %v913_v57  ;;  %v1172_v57 = vshll.u32 %v3646_v43, 16  ;;  %v1093_v21 = vshll.u32 %v3689_v18, 16  ;;  %v1298_v53 = vrot.slane %v3689_v18, 1 }
  0x96   : > { %659 = vst.msk [vmem:[#allocation2 + $0x48] sm:$0xff] %vm649_vm4, %v620_v45  ;;  %v618_v51 = vpop.permute.xlu0 %617  ;;  %v3769_v18 = vld [vmem:[%s3175_s19 + $0x5c] ss:$0 sps:$4 sm:$0x11]  }
  0x97   : > { %773 = vst.msk [vmem:[#allocation2 + $0x48] sm:$0xff] %vm763_vm5, %v734_v27  ;;  %627 = vrot.lane.b32.xlu1 %v576_v41, %s3125_s22  ;;  %v1174_v2 = vrot.slane %v1172_v57, 1  ;;  %v1186_v27 = vrot.slane %v1184_v7, 1  ;;  %v1095_v39 = vrot.slane %v1093_v21, 1  ;;  %v1708_v21 = vshll.u32 %v3769_v18, 16 }
  0x98   : > { %658 = vst.msk [vmem:[#allocation2 + $0x40] sm:$0xff] %vm649_vm4, %v618_v51  ;;  %611 = vrot.lane.b32.xlu0 %v480_v46, %s3125_s22 }
  0x99   : > { %772 = vst.msk [vmem:[#allocation2 + $0x40] sm:$0xff] %vm763_vm5, %v732_v10  ;;  %v931_v52 = vpop.permute.xlu1 %930  ;;  %v1175_v25 = vor.u32 %v1174_v2, %v1170_v12  ;;  %v1187_v0 = vor.u32 %v1186_v27, %v1182_v24  ;;  %v1096_v46 = vsel %vm408_vm1, %v1091_v1, %v1095_v39 }
  0x9a   : > { %969 = vst.msk [vmem:[#allocation2 + $0x40] sm:$0xff] %vm960_vm6, %v3581_v49  ;;  %970 = vst.msk [vmem:[#allocation2 + $0x48] sm:$0xff] %vm960_vm6, %v931_v52  ;;  %v915_v13 = vpop.permute.xlu0 %914  ;;  %v708_v49 = vsel %vm666_vm0, %v706_v3, %v707_v37  ;;  %v1321_v3 = vrot.slane %v3665_v14, 1  ;;  %v1322_v37 = vrot.slane %v3684_v59, 1 }
  0x9b   : > { %962 = vst.msk [vmem:[#allocation2 + $0x8] sm:$0xff] %vm960_vm6, %v915_v13  ;;  %739 = vrot.lane.b32.xlu1 %v705_v61, %s3124_s21  ;;  %v1180_v26 = vsel %vm408_vm1, %v1175_v25, %v1179_v23  ;;  %v1192_v41 = vsel %vm408_vm1, %v1187_v0, %v1191_v33  ;;  %v1320_v61 = vsel %vm666_vm0, %v1318_v42, %v1319_v44  ;;  %v3764_v59 = vld [vmem:[%s3175_s19 + $0xbc] ss:$0 sps:$4 sm:$0x11]   ;;  %v1794_v23 = vrot.slane %v1792_v15, 1 }
  0x9c   : > { %723 = vrot.lane.b32.xlu0 %v681_v40, %s3124_s21  ;;  %v1296_v40 = vsel %vm666_vm0, %v1294_v47, %v1295_v50  ;;  %v1804_v28 = vshll.u32 %v3764_v59, 16  ;;  %v3795_v42 = vld [vmem:[%s3175_s19 + $0x50] ss:$0 sps:$4 sm:$0x11]   ;;  %v484_v44 = vshll.u32 %v3516_v9, 16  ;;  %v1934_v47 = vrot.slane %v3740_v56, 1 }
  0x9d   : > { %v1234_v38 = vpop.permute.xlu1 %1233  ;;  %v1937_v17 = vrot.slane %v3764_v59, 1 }
  0x9e   : > { %1274 = vst.msk [vmem:[#allocation2 + $0x40] sm:$0xff] %vm1265_vm7, %v1234_v38  ;;  %v1218_v10 = vpop.permute.xlu0 %1217  ;;  %v1806_v33 = vrot.slane %v1804_v28, 1 }
  0x9f   : > { %1266 = vst.msk [vmem:[#allocation2] sm:$0xff] %vm1265_vm7, %v1218_v10  ;;  %741 = vrot.lane.b32.xlu1 %v708_v49, %s3124_s21  ;;  %v1323_v49 = vsel %vm666_vm0, %v1321_v3, %v1322_v37  ;;  %v578_v3 = vshrl.u32 %v3501_v6, 16 }
  0xa0   : > { %725 = vrot.lane.b32.xlu0 %v684_v58, %s3124_s21  ;;  %v1299_v58 = vsel %vm666_vm0, %v1297_v48, %v1298_v53  ;;  %v482_v53 = vshrl.u32 %v3516_v9, 16 }
  0xa1   : > { %v1236_v8 = vpop.permute.xlu1 %1235 }
  0xa2   : > { %1275 = vst.msk [vmem:[#allocation2 + $0x48] sm:$0xff] %vm1265_vm7, %v1236_v8  ;;  %v1220_v22 = vpop.permute.xlu0 %1219 }
  0xa3   : > { %1267 = vst.msk [vmem:[#allocation2 + $0x8] sm:$0xff] %vm1265_vm7, %v1220_v22  ;;  %936 = vrot.lane.b32.xlu1 %v3646_v43, %s3123_s20  ;;  %v3728_v43 = vld [vmem:[%s3175_s19 + $0xa8] sm:$0xff]  }
  0xa4   : > { %920 = vrot.lane.b32.xlu0 %v3654_v55, %s3123_s20  ;;  %v3734_v55 = vld [vmem:[%s3175_s19 + $0x48] sm:$0xff]   ;;  %v1787_v57 = vshll.u32 %v3728_v43, 16  ;;  %v1785_v12 = vshrl.u32 %v3728_v43, 16 }
  0xa5   : > { %v1347_v30 = vpop.permute.xlu1 %1346  ;;  %v1691_v63 = vshll.u32 %v3734_v55, 16  ;;  %v1689_v4 = vshrl.u32 %v3734_v55, 16  ;;  %v1909_v50 = vrot.slane %v3734_v55, 1 }
  0xa6   : > { %1387 = vst.msk [vmem:[#allocation2 + $0x40] sm:$0xff] %vm1378_vm8, %v1347_v30  ;;  %v1331_v54 = vpop.permute.xlu0 %1330  ;;  %v1789_v2 = vrot.slane %v1787_v57, 1 }
  0xa7   : > { %1379 = vst.msk [vmem:[#allocation2] sm:$0xff] %vm1378_vm8, %v1331_v54  ;;  %938 = vrot.lane.b32.xlu1 %v3665_v14, %s3123_s20  ;;  %v3745_v14 = vld [vmem:[%s3175_s19 + $0xb4] sm:$0xff]   ;;  %v1693_v16 = vrot.slane %v1691_v63, 1  ;;  %v592_v63 = vshll.u32 %v3536_v20, 16 }
  0xa8   : > { %922 = vrot.lane.b32.xlu0 %v3670_v60, %s3123_s20  ;;  %v3750_v60 = vld [vmem:[%s3175_s19 + $0x54] sm:$0xff]   ;;  %v1799_v7 = vshll.u32 %v3745_v14, 16  ;;  %v1797_v24 = vshrl.u32 %v3745_v14, 16  ;;  %v1790_v25 = vor.u32 %v1789_v2, %v1785_v12 }
  0xa9   : > { %v1349_v34 = vpop.permute.xlu1 %1348  ;;  %v1703_v19 = vshll.u32 %v3750_v60, 16  ;;  %v1701_v29 = vshrl.u32 %v3750_v60, 16  ;;  %v1694_v11 = vor.u32 %v1693_v16, %v1689_v4  ;;  %v3825_v4 = vld [vmem:[%s3175_s19 + $0x5c] ss:$0 sps:$4 sm:$0x11]   ;;  %v1936_v16 = vrot.slane %v3745_v14, 1 }
  0xaa   : > { %1388 = vst.msk [vmem:[#allocation2 + $0x48] sm:$0xff] %vm1378_vm8, %v1349_v34  ;;  %v1333_v36 = vpop.permute.xlu0 %1332  ;;  %v1801_v27 = vrot.slane %v1799_v7, 1  ;;  %v3790_v34 = vld [vmem:[%s3175_s19 + $0xb0] ss:$0 sps:$4 sm:$0x11]   ;;  %v496_v7 = vshll.u32 %v3542_v5, 16 }
  0xab   : > { %1380 = vst.msk [vmem:[#allocation2 + $0x8] sm:$0xff] %vm1378_vm8, %v1333_v36  ;;  %1241 = vrot.lane.b32.xlu1 %v1180_v26, %s3126_s23  ;;  %v1705_v32 = vrot.slane %v1703_v19, 1  ;;  %v1795_v26 = vsel %vm408_vm1, %v1790_v25, %v1794_v23  ;;  %v1699_v39 = vsel %vm408_vm1, %v1694_v11, %v1698_v31  ;;  %v1912_v19 = vrot.slane %v3750_v60, 1 }
  0xac   : > { %1225 = vrot.lane.b32.xlu0 %v1084_v35, %s3126_s23  ;;  %v1802_v0 = vor.u32 %v1801_v27, %v1797_v24  ;;  %v580_v35 = vshll.u32 %v3501_v6, 16  ;;  %v590_v24 = vshrl.u32 %v3536_v20, 16  ;;  %v594_v25 = vrot.slane %v592_v63, 1  ;;  %v3904_v63 = vld [vmem:[%s3175_s19 + $0xc8] ss:$0 sps:$4 sm:$0x11]  }
  0xad   : > { %v1544_v45 = vpop.permute.xlu1 %1543  ;;  %v1706_v36 = vor.u32 %v1705_v32, %v1701_v29  ;;  %v498_v59 = vrot.slane %v496_v7, 1  ;;  %v1938_v31 = vsel %vm666_vm0, %v1936_v16, %v1937_v17 }
  0xae   : > { %1584 = vst.msk [vmem:[#allocation2 + $0x40] sm:$0xff] %vm1575_vm9, %v1544_v45  ;;  %v1528_v51 = vpop.permute.xlu0 %1527  ;;  %v582_v37 = vrot.slane %v580_v35, 1  ;;  %v595_v32 = vor.u32 %v594_v25, %v590_v24 }
  0xaf   : > { %1576 = vst.msk [vmem:[#allocation2] sm:$0xff] %vm1575_vm9, %v1528_v51  ;;  %1243 = vrot.lane.b32.xlu1 %v1192_v41, %s3126_s23  ;;  %v1710_v41 = vrot.slane %v1708_v21, 1  ;;  %v1910_v51 = vrot.slane %v3753_v62, 1  ;;  %v3820_v62 = vld [vmem:[%s3175_s19 + $0xbc] ss:$0 sps:$4 sm:$0x11]  }
  0xb0   : > { %1227 = vrot.lane.b32.xlu0 %v1096_v46, %s3126_s23  ;;  %v1933_v46 = vrot.slane %v3728_v43, 1  ;;  %v597_v27 = vshll.u32 %v3820_v62, 16 }
  0xb1   : > { %v1546_v52 = vpop.permute.xlu1 %1545  ;;  %v1911_v12 = vsel %vm666_vm0, %v1909_v50, %v1910_v51  ;;  %v713_v50 = vrot.slane %v3820_v62, 1 }
  0xb2   : > { %1585 = vst.msk [vmem:[#allocation2 + $0x48] sm:$0xff] %vm1575_vm9, %v1546_v52  ;;  %v1530_v13 = vpop.permute.xlu0 %1529  ;;  %v585_v52 = vshll.u32 %v3790_v34, 16  ;;  %v1935_v57 = vsel %vm666_vm0, %v1933_v46, %v1934_v47  ;;  %v599_v21 = vrot.slane %v597_v27, 1  ;;  %v686_v46 = vrot.slane %v3795_v42, 1 }
  0xb3   : > { %1577 = vst.msk [vmem:[#allocation2 + $0x8] sm:$0xff] %vm1575_vm9, %v1530_v13  ;;  %1354 = vrot.lane.b32.xlu1 %v1320_v61, %s3127_s24  ;;  %v1807_v61 = vsel %vm408_vm1, %v1802_v0, %v1806_v33  ;;  %v486_v13 = vrot.slane %v484_v44, 1 }
  0xb4   : > { %1338 = vrot.lane.b32.xlu0 %v1296_v40, %s3127_s24 }
  0xb5   : > { %v1849_v38 = vpop.permute.xlu1 %1848  ;;  %v487_v15 = vor.u32 %v486_v13, %v482_v53  ;;  %v3890_v13 = vld [vmem:[%s3175_s19 + $0x60] sm:$0xff]  }
  0xb6   : > { %1889 = vst.msk [vmem:[#allocation2 + $0x40] sm:$0xff] %vm1880_vm10, %v1849_v38  ;;  %v1833_v10 = vpop.permute.xlu0 %1832  ;;  %v583_v38 = vor.u32 %v582_v37, %v578_v3  ;;  %v689_v3 = vrot.slane %v3825_v4, 1  ;;  %v3874_v37 = vld [vmem:[%s3175_s19 + $0x54] sm:$0xff]   ;;  %v1112_v7 = vshll.u32 %v3890_v13, 16  ;;  %v1110_v24 = vshrl.u32 %v3890_v13, 16 }
  0xb7   : > { %1881 = vst.msk [vmem:[#allocation2] sm:$0xff] %vm1880_vm10, %v1833_v10  ;;  %1356 = vrot.lane.b32.xlu1 %v1323_v49, %s3127_s24  ;;  %v1098_v62 = vshrl.u32 %v3874_v37, 16 }
  0xb8   : > { %1340 = vrot.lane.b32.xlu0 %v1299_v58, %s3127_s24  ;;  %v587_v58 = vrot.slane %v585_v52, 1 }
  0xb9   : > { %v1851_v8 = vpop.permute.xlu1 %1850 }
  0xba   : > { %1890 = vst.msk [vmem:[#allocation2 + $0x48] sm:$0xff] %vm1880_vm10, %v1851_v8  ;;  %v1835_v22 = vpop.permute.xlu0 %1834  ;;  %v588_v23 = vsel %vm408_vm1, %v583_v38, %v587_v58 }
  0xbb   : > { %1882 = vst.msk [vmem:[#allocation2 + $0x8] sm:$0xff] %vm1880_vm10, %v1835_v22  ;;  %1551 = vrot.lane.b32.xlu1 %v3728_v43, %s3128_s25  ;;  %v1711_v43 = vsel %vm408_vm1, %v1706_v36, %v1710_v41  ;;  %v1913_v22 = vrot.slane %v3769_v18, 1  ;;  %v710_v36 = vrot.slane %v3790_v34, 1  ;;  %v712_v34 = vrot.slane %v3536_v20, 1 }
  0xbc   : > { %1535 = vrot.lane.b32.xlu0 %v3734_v55, %s3128_s25  ;;  %v489_v55 = vshll.u32 %v3795_v42, 16  ;;  %v3880_v20 = vld [vmem:[%s3175_s19 + $0xbc] ss:$0 sps:$4 sm:$0x11]  }
  0xbd   : > { %v1962_v30 = vpop.permute.xlu1 %1961  ;;  %v1201_v38 = vshll.u32 %v3880_v20, 16 }
  0xbe   : > { %2002 = vst.msk [vmem:[#allocation2 + $0x40] sm:$0xff] %vm1993_vm11, %v1962_v30  ;;  %v1946_v54 = vpop.permute.xlu0 %1945  ;;  %v491_v2 = vrot.slane %v489_v55, 1  ;;  %v3893_v55 = vld [vmem:[%s3175_s19 + $0x5c] ss:$0 sps:$4 sm:$0x11]  }
  0xbf   : > { %1994 = vst.msk [vmem:[#allocation2] sm:$0xff] %vm1993_vm11, %v1946_v54  ;;  %1553 = vrot.lane.b32.xlu1 %v3745_v14, %s3128_s25  ;;  %v494_v14 = vshrl.u32 %v3542_v5, 16  ;;  %v1203_v16 = vrot.slane %v1201_v38, 1 }
  0xc0   : > { %1537 = vrot.lane.b32.xlu0 %v3750_v60, %s3128_s25  ;;  %v492_v30 = vsel %vm408_vm1, %v487_v15, %v491_v2  ;;  %v501_v60 = vshll.u32 %v3825_v4, 16  ;;  %v1105_v2 = vshll.u32 %v3893_v55, 16  ;;  %v3909_v4 = vld [vmem:[%s3175_s19 + $0x68] ss:$0 sps:$4 sm:$0x11]  }
  0xc1   : > { %v622_v1 = vpop.permute.xlu1 %621  ;;  %v499_v0 = vor.u32 %v498_v59, %v494_v14 }
  0xc2   : > { %660 = vst.msk [vmem:[#allocation2 + $0x50] sm:$0xff] %vm649_vm4, %v622_v1  ;;  %v606_v45 = vpop.permute.xlu0 %605  ;;  %v503_v33 = vrot.slane %v501_v60, 1  ;;  %v600_v1 = vsel %vm408_vm1, %v595_v32, %v599_v21 }
  0xc3   : > { %652 = vst.msk [vmem:[#allocation2 + $0x10] sm:$0xff] %vm649_vm4, %v606_v45  ;;  %1856 = vrot.lane.b32.xlu1 %v1795_v26, %s3129_s26  ;;  %v1914_v26 = vsel %vm666_vm0, %v1912_v19, %v1913_v22  ;;  %v685_v45 = vrot.slane %v3516_v9, 1  ;;  %v3868_v9 = vld [vmem:[%s3175_s19 + $0xb4] sm:$0xff]  }
  0xc4   : > { %1840 = vrot.lane.b32.xlu0 %v1699_v39, %s3129_s26  ;;  %v709_v39 = vrot.slane %v3501_v6, 1  ;;  %v504_v44 = vsel %vm408_vm1, %v499_v0, %v503_v33  ;;  %v1324_v0 = vrot.slane %v3868_v9, 1  ;;  %v1325_v33 = vrot.slane %v3880_v20, 1 }
  0xc5   : > { %v1964_v40 = vpop.permute.xlu1 %1963  ;;  %v2018_v48 = vld [vmem:[#allocation2 + $0x40] sm:$0xff]  ;;  %v687_v51 = vsel %vm666_vm0, %v685_v45, %v686_v46 }
  0xc6   : > { %2003 = vst.msk [vmem:[#allocation2 + $0x48] sm:$0xff] %vm1993_vm11, %v1964_v40  ;;  %v1948_v56 = vpop.permute.xlu0 %1947  ;;  %v2010_v49 = vld [vmem:[#allocation2] sm:$0xff]  ;;  %2943 = vmatprep.mubr.msk.bf16.mxu1 %vm2046_vm12, %v2018_v48  ;;  %v711_v6 = vsel %vm666_vm0, %v709_v39, %v710_v36  ;;  %v714_v40 = vsel %vm666_vm0, %v712_v34, %v713_v50  ;;  %v1300_v39 = vrot.slane %v3874_v37, 1  ;;  %v1301_v36 = vrot.slane %v3893_v55, 1 }
  0xc7   : > { %1995 = vst.msk [vmem:[#allocation2 + $0x8] sm:$0xff] %vm1993_vm11, %v1948_v56  ;;  %2927 = vmatprep.mubr.msk.bf16.mxu0 %vm2046_vm12, %v2010_v49  ;;  %1858 = vrot.lane.b32.xlu1 %v1807_v61, %s3129_s26  ;;  %v688_v61 = vrot.slane %v3542_v5, 1  ;;  %v3885_v48 = vld [vmem:[%s3175_s19 + $0xc0] sm:$0xff]   ;;  %v1196_v5 = vshll.u32 %v3868_v9, 16  ;;  %v1100_v56 = vshll.u32 %v3874_v37, 16  ;;  %v1326_v45 = vsel %vm666_vm0, %v1324_v0, %v1325_v33 }
  0xc8   : > { %1842 = vrot.lane.b32.xlu0 %v1711_v43, %s3129_s26  ;;  %v1206_v17 = vshrl.u32 %v3885_v48, 16  ;;  %v1327_v46 = vrot.slane %v3885_v48, 1  ;;  %v1302_v34 = vsel %vm666_vm0, %v1300_v39, %v1301_v36  ;;  %v1303_v50 = vrot.slane %v3890_v13, 1 }
  0xc9   : > { %v624_v10 = vpop.permute.xlu1 %623  ;;  %v690_v53 = vsel %vm666_vm0, %v688_v61, %v689_v3  ;;  %v1198_v58 = vrot.slane %v1196_v5, 1  ;;  %v1102_v15 = vrot.slane %v1100_v56, 1  ;;  %v3973_v5 = vld [vmem:[%s3175_s19 + $0x68] ss:$0 sps:$4 sm:$0x11]  }
  0xca   : > { %661 = vst.msk [vmem:[#allocation2 + $0x58] sm:$0xff] %vm649_vm4, %v624_v10  ;;  %v608_v8 = vpop.permute.xlu0 %607  ;;  %v1208_v10 = vshll.u32 %v3885_v48, 16 }
  0xcb   : > { %653 = vst.msk [vmem:[#allocation2 + $0x18] sm:$0xff] %vm649_vm4, %v608_v8  ;;  %1969 = vrot.lane.b32.xlu1 %v1935_v57, %s3130_s27  ;;  %v1194_v57 = vshrl.u32 %v3868_v9, 16  ;;  %v1103_v27 = vor.u32 %v1102_v15, %v1098_v62 }
  0xcc   : > { %1953 = vrot.lane.b32.xlu0 %v1911_v12, %s3130_s27  ;;  %v1210_v22 = vrot.slane %v1208_v10, 1  ;;  %v3989_v10 = vld [vmem:[%s3175_s19 + $0x74] ss:$0 sps:$4 sm:$0x11]  }
  0xcd   : > { %v736_v28 = vpop.permute.xlu1 %735  ;;  %v2019_v29 = vld [vmem:[#allocation2 + $0x48] sm:$0xff]  ;;  %v1199_v19 = vor.u32 %v1198_v58, %v1194_v57  ;;  %v3984_v57 = vld [vmem:[%s3175_s19 + $0xd4] ss:$0 sps:$4 sm:$0x11]  }
  0xce   : > { %774 = vst.msk [vmem:[#allocation2 + $0x50] sm:$0xff] %vm763_vm5, %v736_v28  ;;  %v720_v18 = vpop.permute.xlu0 %719  ;;  %v2011_v11 = vld [vmem:[#allocation2 + $0x8] sm:$0xff]  ;;  %2944 = vmatmul.mubr.msk.bf16.vlgmr.msra.gmra.mrb[0].mxu1 %vm2046_vm12, %v2019_v29  ;;  %v1107_v28 = vrot.slane %v1105_v2, 1  ;;  %v1114_v29 = vrot.slane %v1112_v7, 1  ;;  %v1211_v60 = vor.u32 %v1210_v22, %v1206_v17 }
  0xcf   : > { %766 = vst.msk [vmem:[#allocation2 + $0x10] sm:$0xff] %vm763_vm5, %v720_v18  ;;  %2928 = vmatmul.mubr.msk.bf16.vlgmr.msra.gmra.mrb[0].mxu0 %vm2046_vm12, %v2011_v11  ;;  %629 = vrot.lane.b32.xlu1 %v588_v23, %s3125_s22  ;;  %v1213_v23 = vshll.u32 %v3904_v63, 16  ;;  %v1204_v59 = vsel %vm408_vm1, %v1199_v19, %v1203_v16  ;;  %v1828_v16 = vshll.u32 %v3984_v57, 16 }
  0xd0   : > { %613 = vrot.lane.b32.xlu0 %v492_v30, %s3125_s22  ;;  %v1117_v30 = vshll.u32 %v3909_v4, 16  ;;  %v1115_v32 = vor.u32 %v1114_v29, %v1110_v24 }
  0xd1   : > { %v738_v54 = vpop.permute.xlu1 %737  ;;  %v1215_v18 = vrot.slane %v1213_v23, 1 }
  0xd2   : > { %775 = vst.msk [vmem:[#allocation2 + $0x58] sm:$0xff] %vm763_vm5, %v738_v54  ;;  %v722_v35 = vpop.permute.xlu0 %721  ;;  %v1119_v21 = vrot.slane %v1117_v30, 1  ;;  %v1830_v30 = vrot.slane %v1828_v16, 1 }
  0xd3   : > { %767 = vst.msk [vmem:[#allocation2 + $0x18] sm:$0xff] %vm763_vm5, %v722_v35  ;;  %1971 = vrot.lane.b32.xlu1 %v1938_v31, %s3130_s27  ;;  %v1108_v31 = vsel %vm408_vm1, %v1103_v27, %v1107_v28 }
  0xd4   : > { %1955 = vrot.lane.b32.xlu0 %v1914_v26, %s3130_s27  ;;  %v1216_v26 = vsel %vm408_vm1, %v1211_v60, %v1215_v18 }
  0xd5   : > { %v933_v41 = vpop.permute.xlu1 %932 }
  0xd6   : > { %971 = vst.msk [vmem:[#allocation2 + $0x50] sm:$0xff] %vm960_vm6, %v933_v41  ;;  %v917_v47 = vpop.permute.xlu0 %916 }
  0xd7   : > { %963 = vst.msk [vmem:[#allocation2 + $0x10] sm:$0xff] %vm960_vm6, %v917_v47  ;;  %631 = vrot.lane.b32.xlu1 %v600_v1, %s3125_s22  ;;  %v1120_v1 = vsel %vm408_vm1, %v1115_v32, %v1119_v21  ;;  %v1328_v47 = vrot.slane %v3904_v63, 1  ;;  %v1720_v63 = vshll.u32 %v3973_v5, 16 }
  0xd8   : > { %615 = vrot.lane.b32.xlu0 %v504_v44, %s3125_s22  ;;  %v3944_v44 = vld [vmem:[%s3175_s19 + $0xc0] sm:$0xff]  }
  0xd9   : > { %v935_v42 = vpop.permute.xlu1 %934  ;;  %v1811_v61 = vshll.u32 %v3944_v44, 16  ;;  %v1329_v3 = vsel %vm666_vm0, %v1327_v46, %v1328_v47  ;;  %v1722_v23 = vrot.slane %v1720_v63, 1  ;;  %v1939_v32 = vrot.slane %v3944_v44, 1 }
  0xda   : > { %972 = vst.msk [vmem:[#allocation2 + $0x58] sm:$0xff] %vm960_vm6, %v935_v42  ;;  %v919_v52 = vpop.permute.xlu0 %918  ;;  %v3954_v42 = vld [vmem:[%s3175_s19 + $0x60] sm:$0xff]  }
  0xdb   : > { %964 = vst.msk [vmem:[#allocation2 + $0x18] sm:$0xff] %vm960_vm6, %v919_v52  ;;  %743 = vrot.lane.b32.xlu1 %v711_v6, %s3124_s21  ;;  %v3966_v52 = vld [vmem:[%s3175_s19 + $0xc8] ss:$0 sps:$4 sm:$0x11]   ;;  %v1813_v55 = vrot.slane %v1811_v61, 1  ;;  %v1915_v33 = vrot.slane %v3954_v42, 1 }
  0xdc   : > { %727 = vrot.lane.b32.xlu0 %v687_v51, %s3124_s21  ;;  %v1816_v56 = vshll.u32 %v3966_v52, 16  ;;  %v1940_v21 = vrot.slane %v3966_v52, 1 }
  0xdd   : > { %v1238_v43 = vpop.permute.xlu1 %1237 }
  0xde   : > { %1276 = vst.msk [vmem:[#allocation2 + $0x50] sm:$0xff] %vm1265_vm7, %v1238_v43  ;;  %v1222_v49 = vpop.permute.xlu0 %1221  ;;  %v1715_v43 = vshll.u32 %v3954_v42, 16  ;;  %v1818_v7 = vrot.slane %v1816_v56, 1  ;;  %v1941_v36 = vsel %vm666_vm0, %v1939_v32, %v1940_v21 }
  0xdf   : > { %1268 = vst.msk [vmem:[#allocation2 + $0x10] sm:$0xff] %vm1265_vm7, %v1222_v49  ;;  %745 = vrot.lane.b32.xlu1 %v714_v40, %s3124_s21  ;;  %v1713_v49 = vshrl.u32 %v3954_v42, 16 }
  0xe0   : > { %729 = vrot.lane.b32.xlu0 %v690_v53, %s3124_s21  ;;  %v1717_v62 = vrot.slane %v1715_v43, 1 }
  0xe1   : > { %v1240_v12 = vpop.permute.xlu1 %1239 }
  0xe2   : > { %1277 = vst.msk [vmem:[#allocation2 + $0x58] sm:$0xff] %vm1265_vm7, %v1240_v12  ;;  %v1224_v8 = vpop.permute.xlu0 %1223  ;;  %v1718_v22 = vor.u32 %v1717_v62, %v1713_v49 }
  0xe3   : > { %1269 = vst.msk [vmem:[#allocation2 + $0x18] sm:$0xff] %vm1265_vm7, %v1224_v8  ;;  %940 = vrot.lane.b32.xlu1 %v3868_v9, %s3123_s20  ;;  %v1304_v9 = vrot.slane %v3909_v4, 1 }
  0xe4   : > { %924 = vrot.lane.b32.xlu0 %v3874_v37, %s3123_s20  ;;  %v3963_v37 = vld [vmem:[%s3175_s19 + $0xcc] sm:$0xff]  }
  0xe5   : > { %v1351_v25 = vpop.permute.xlu1 %1350  ;;  %v1305_v40 = vsel %vm666_vm0, %v1303_v50, %v1304_v9  ;;  %v1823_v38 = vshll.u32 %v3963_v37, 16  ;;  %v1821_v4 = vshrl.u32 %v3963_v37, 16 }
  0xe6   : > { %1389 = vst.msk [vmem:[#allocation2 + $0x50] sm:$0xff] %vm1378_vm8, %v1351_v25  ;;  %v1335_v14 = vpop.permute.xlu0 %1334  ;;  %v1732_v25 = vshll.u32 %v3989_v10, 16 }
  0xe7   : > { %1381 = vst.msk [vmem:[#allocation2 + $0x10] sm:$0xff] %vm1378_vm8, %v1335_v14  ;;  %942 = vrot.lane.b32.xlu1 %v3885_v48, %s3123_s20  ;;  %v3970_v48 = vld [vmem:[%s3175_s19 + $0x6c] sm:$0xff]   ;;  %v1825_v8 = vrot.slane %v1823_v38, 1 }
  0xe8   : > { %926 = vrot.lane.b32.xlu0 %v3890_v13, %s3123_s20  ;;  %v1809_v13 = vshrl.u32 %v3944_v44, 16  ;;  %v1727_v12 = vshll.u32 %v3970_v48, 16  ;;  %v1725_v17 = vshrl.u32 %v3970_v48, 16  ;;  %v1734_v18 = vrot.slane %v1732_v25, 1 }
  0xe9   : > { %v1353_v11 = vpop.permute.xlu1 %1352  ;;  %v1826_v29 = vor.u32 %v1825_v8, %v1821_v4  ;;  %v1918_v47 = vrot.slane %v3970_v48, 1 }
  0xea   : > { %1390 = vst.msk [vmem:[#allocation2 + $0x58] sm:$0xff] %vm1378_vm8, %v1353_v11  ;;  %v1337_v54 = vpop.permute.xlu0 %1336  ;;  %v1814_v2 = vor.u32 %v1813_v55, %v1809_v13  ;;  %v1729_v24 = vrot.slane %v1727_v12, 1 }
  0xeb   : > { %1382 = vst.msk [vmem:[#allocation2 + $0x18] sm:$0xff] %vm1378_vm8, %v1337_v54  ;;  %1245 = vrot.lane.b32.xlu1 %v1204_v59, %s3126_s23  ;;  %v1723_v59 = vsel %vm408_vm1, %v1718_v22, %v1722_v23 }
  0xec   : > { %1229 = vrot.lane.b32.xlu0 %v1108_v31, %s3126_s23  ;;  %v1819_v28 = vsel %vm408_vm1, %v1814_v2, %v1818_v7  ;;  %v1730_v60 = vor.u32 %v1729_v24, %v1725_v17  ;;  %v1831_v31 = vsel %vm408_vm1, %v1826_v29, %v1830_v30 }
  0xed   : > { %v1548_v35 = vpop.permute.xlu1 %1547 }
  0xee   : > { %1586 = vst.msk [vmem:[#allocation2 + $0x50] sm:$0xff] %vm1575_vm9, %v1548_v35  ;;  %v1532_v41 = vpop.permute.xlu0 %1531  ;;  %v1735_v0 = vsel %vm408_vm1, %v1730_v60, %v1734_v18  ;;  %v1916_v35 = vrot.slane %v3973_v5, 1 }
  0xef   : > { %1578 = vst.msk [vmem:[#allocation2 + $0x10] sm:$0xff] %vm1575_vm9, %v1532_v41  ;;  %1247 = vrot.lane.b32.xlu1 %v1216_v26, %s3126_s23  ;;  %v1942_v41 = vrot.slane %v3963_v37, 1 }
  0xf0   : > { %1231 = vrot.lane.b32.xlu0 %v1120_v1, %s3126_s23  ;;  %v1917_v46 = vsel %vm666_vm0, %v1915_v33, %v1916_v35 }
  0xf1   : > { %v1550_v6 = vpop.permute.xlu1 %1549 }
  0xf2   : > { %1587 = vst.msk [vmem:[#allocation2 + $0x58] sm:$0xff] %vm1575_vm9, %v1550_v6  ;;  %v1534_v51 = vpop.permute.xlu0 %1533  ;;  %v1919_v6 = vrot.slane %v3989_v10, 1 }
  0xf3   : > { %1579 = vst.msk [vmem:[#allocation2 + $0x18] sm:$0xff] %vm1575_vm9, %v1534_v51  ;;  %1358 = vrot.lane.b32.xlu1 %v1326_v45, %s3127_s24 }
  0xf4   : > { %1342 = vrot.lane.b32.xlu0 %v1302_v34, %s3127_s24  ;;  %v1920_v51 = vsel %vm666_vm0, %v1918_v47, %v1919_v6 }
  0xf5   : > { %v1853_v20 = vpop.permute.xlu1 %1852 }
  0xf6   : > { %1891 = vst.msk [vmem:[#allocation2 + $0x50] sm:$0xff] %vm1880_vm10, %v1853_v20  ;;  %v1837_v53 = vpop.permute.xlu0 %1836 }
  0xf7   : > { %1883 = vst.msk [vmem:[#allocation2 + $0x10] sm:$0xff] %vm1880_vm10, %v1837_v53  ;;  %1360 = vrot.lane.b32.xlu1 %v1329_v3, %s3127_s24 }
  0xf8   : > { %1344 = vrot.lane.b32.xlu0 %v1305_v40, %s3127_s24 }
  0xf9   : > { %v1855_v58 = vpop.permute.xlu1 %1854 }
  0xfa   : > { %1892 = vst.msk [vmem:[#allocation2 + $0x58] sm:$0xff] %vm1880_vm10, %v1855_v58  ;;  %v1839_v15 = vpop.permute.xlu0 %1838 }
  0xfb   : > { %1884 = vst.msk [vmem:[#allocation2 + $0x18] sm:$0xff] %vm1880_vm10, %v1839_v15  ;;  %1555 = vrot.lane.b32.xlu1 %v3944_v44, %s3128_s25  ;;  %v1943_v44 = vrot.slane %v3984_v57, 1 }
  0xfc   : > { %1539 = vrot.lane.b32.xlu0 %v3954_v42, %s3128_s25 }
  0xfd   : > { %v1966_v19 = vpop.permute.xlu1 %1965  ;;  %v1944_v50 = vsel %vm666_vm0, %v1942_v41, %v1943_v44 }
  0xfe   : > { %2004 = vst.msk [vmem:[#allocation2 + $0x50] sm:$0xff] %vm1993_vm11, %v1966_v19  ;;  %v1950_v27 = vpop.permute.xlu0 %1949 }
  0xff   : > { %1996 = vst.msk [vmem:[#allocation2 + $0x10] sm:$0xff] %vm1993_vm11, %v1950_v27  ;;  %1557 = vrot.lane.b32.xlu1 %v3963_v37, %s3128_s25 }
 0x100   : > { %1541 = vrot.lane.b32.xlu0 %v3970_v48, %s3128_s25 }
 0x101   : > { %v626_v14 = vpop.permute.xlu1 %625 }
 0x102   : > { %662 = vst.msk [vmem:[#allocation2 + $0x60] sm:$0xff] %vm649_vm4, %v626_v14  ;;  %v610_v11 = vpop.permute.xlu0 %609 }
 0x103   : > { %654 = vst.msk [vmem:[#allocation2 + $0x20] sm:$0xff] %vm649_vm4, %v610_v11  ;;  %1860 = vrot.lane.b32.xlu1 %v1819_v28, %s3129_s26 }
 0x104   : > { %1844 = vrot.lane.b32.xlu0 %v1723_v59, %s3129_s26 }
 0x105   : > { %v1968_v54 = vpop.permute.xlu1 %1967  ;;  %v2020_v26 = vld [vmem:[#allocation2 + $0x50] sm:$0xff] }
 0x106   : > { %2005 = vst.msk [vmem:[#allocation2 + $0x58] sm:$0xff] %vm1993_vm11, %v1968_v54  ;;  %v1952_v1 = vpop.permute.xlu0 %1951  ;;  %v2012_v39 = vld [vmem:[#allocation2 + $0x10] sm:$0xff]  ;;  %2947 = vmatprep.mubr.msk.bf16.mxu1 %vm2046_vm12, %v2020_v26 }
 0x107   : > { %1997 = vst.msk [vmem:[#allocation2 + $0x18] sm:$0xff] %vm1993_vm11, %v1952_v1  ;;  %2931 = vmatprep.mubr.msk.bf16.mxu0 %vm2046_vm12, %v2012_v39  ;;  %1862 = vrot.lane.b32.xlu1 %v1831_v31, %s3129_s26 }
 0x108   : > { %1846 = vrot.lane.b32.xlu0 %v1735_v0, %s3129_s26 }
 0x109   : > { %v628_v45 = vpop.permute.xlu1 %627 }
 0x10a   : > { %663 = vst.msk [vmem:[#allocation2 + $0x68] sm:$0xff] %vm649_vm4, %v628_v45  ;;  %v612_v34 = vpop.permute.xlu0 %611 }
 0x10b   : > { %655 = vst.msk [vmem:[#allocation2 + $0x28] sm:$0xff] %vm649_vm4, %v612_v34  ;;  %1973 = vrot.lane.b32.xlu1 %v1941_v36, %s3130_s27 }
 0x10c   : > { %1957 = vrot.lane.b32.xlu0 %v1917_v46, %s3130_s27 }
 0x10d   : > { %v740_v9 = vpop.permute.xlu1 %739  ;;  %v2021_v42 = vld [vmem:[#allocation2 + $0x58] sm:$0xff] }
 0x10e   : > { %776 = vst.msk [vmem:[#allocation2 + $0x60] sm:$0xff] %vm763_vm5, %v740_v9  ;;  %v724_v61 = vpop.permute.xlu0 %723  ;;  %v2013_v3 = vld [vmem:[#allocation2 + $0x18] sm:$0xff]  ;;  %2948 = vmatmul.mubr.msk.bf16.gmra.mrb[4].mxu1 %vm2046_vm12, %v2021_v42 }
 0x10f   : > { %768 = vst.msk [vmem:[#allocation2 + $0x20] sm:$0xff] %vm763_vm5, %v724_v61  ;;  %2932 = vmatmul.mubr.msk.bf16.gmra.mrb[4].mxu0 %vm2046_vm12, %v2013_v3  ;;  %1975 = vrot.lane.b32.xlu1 %v1944_v50, %s3130_s27 }
 0x110   : > { %1959 = vrot.lane.b32.xlu0 %v1920_v51, %s3130_s27 }
 0x111   : > { %v742_v37 = vpop.permute.xlu1 %741 }
 0x112   : > { %777 = vst.msk [vmem:[#allocation2 + $0x68] sm:$0xff] %vm763_vm5, %v742_v37  ;;  %v726_v52 = vpop.permute.xlu0 %725 }
 0x113   : > { %769 = vst.msk [vmem:[#allocation2 + $0x28] sm:$0xff] %vm763_vm5, %v726_v52 }
 0x115   : > { %v937_v20 = vpop.permute.xlu1 %936 }
 0x116   : > { %973 = vst.msk [vmem:[#allocation2 + $0x60] sm:$0xff] %vm960_vm6, %v937_v20  ;;  %v921_v40 = vpop.permute.xlu0 %920  ;;  %v4113_v20 = vld [vmem:[%s4232_s2] ss:$0 sm:$0xff] }
 0x117   : > { %965 = vst.msk [vmem:[#allocation2 + $0x20] sm:$0xff] %vm960_vm6, %v921_v40 }
 0x119   : > { %v939_v48 = vpop.permute.xlu1 %938 }
 0x11a   : > { %974 = vst.msk [vmem:[#allocation2 + $0x68] sm:$0xff] %vm960_vm6, %v939_v48  ;;  %v923_v5 = vpop.permute.xlu0 %922 }
 0x11b   : > { %966 = vst.msk [vmem:[#allocation2 + $0x28] sm:$0xff] %vm960_vm6, %v923_v5 }
 0x11d   : > { %v1242_v43 = vpop.permute.xlu1 %1241 }
 0x11e   : > { %1278 = vst.msk [vmem:[#allocation2 + $0x60] sm:$0xff] %vm1265_vm7, %v1242_v43  ;;  %v1226_v53 = vpop.permute.xlu0 %1225 }
 0x11f   : > { %1270 = vst.msk [vmem:[#allocation2 + $0x20] sm:$0xff] %vm1265_vm7, %v1226_v53 }
 0x121   : > { %v1244_v13 = vpop.permute.xlu1 %1243 }
 0x122   : > { %1279 = vst.msk [vmem:[#allocation2 + $0x68] sm:$0xff] %vm1265_vm7, %v1244_v13  ;;  %v1228_v55 = vpop.permute.xlu0 %1227 }
 0x123   : > { %1271 = vst.msk [vmem:[#allocation2 + $0x28] sm:$0xff] %vm1265_vm7, %v1228_v55 }
 0x125   : > { %v1355_v56 = vpop.permute.xlu1 %1354 }
 0x126   : > { %1391 = vst.msk [vmem:[#allocation2 + $0x60] sm:$0xff] %vm1378_vm8, %v1355_v56  ;;  %v1339_v49 = vpop.permute.xlu0 %1338 }
 0x127   : > { %1383 = vst.msk [vmem:[#allocation2 + $0x20] sm:$0xff] %vm1378_vm8, %v1339_v49 }
 0x129   : > { %v1357_v57 = vpop.permute.xlu1 %1356 }
 0x12a   : > { %1392 = vst.msk [vmem:[#allocation2 + $0x68] sm:$0xff] %vm1378_vm8, %v1357_v57  ;;  %v1341_v38 = vpop.permute.xlu0 %1340 }
 0x12b   : > { %1384 = vst.msk [vmem:[#allocation2 + $0x28] sm:$0xff] %vm1378_vm8, %v1341_v38 }
 0x12d   : > { %v1552_v58 = vpop.permute.xlu1 %1551 }
 0x12e   : > { %1588 = vst.msk [vmem:[#allocation2 + $0x60] sm:$0xff] %vm1575_vm9, %v1552_v58  ;;  %v1536_v62 = vpop.permute.xlu0 %1535 }
 0x12f   : > { %1580 = vst.msk [vmem:[#allocation2 + $0x20] sm:$0xff] %vm1575_vm9, %v1536_v62 }
 0x131   : > { %v1554_v63 = vpop.permute.xlu1 %1553 }
 0x132   : > { %1589 = vst.msk [vmem:[#allocation2 + $0x68] sm:$0xff] %vm1575_vm9, %v1554_v63  ;;  %v1538_v10 = vpop.permute.xlu0 %1537 }
 0x133   : > { %1581 = vst.msk [vmem:[#allocation2 + $0x28] sm:$0xff] %vm1575_vm9, %v1538_v10 }
 0x135   : > { %v1857_v12 = vpop.permute.xlu1 %1856 }
 0x136   : > { %1893 = vst.msk [vmem:[#allocation2 + $0x60] sm:$0xff] %vm1880_vm10, %v1857_v12  ;;  %v1841_v15 = vpop.permute.xlu0 %1840 }
 0x137   : > { %1885 = vst.msk [vmem:[#allocation2 + $0x20] sm:$0xff] %vm1880_vm10, %v1841_v15 }
 0x139   : > { %v1859_v2 = vpop.permute.xlu1 %1858 }
 0x13a   : > { %1894 = vst.msk [vmem:[#allocation2 + $0x68] sm:$0xff] %vm1880_vm10, %v1859_v2  ;;  %v1843_v4 = vpop.permute.xlu0 %1842 }
 0x13b   : > { %1886 = vst.msk [vmem:[#allocation2 + $0x28] sm:$0xff] %vm1880_vm10, %v1843_v4 }
 0x13d   : > { %v1970_v7 = vpop.permute.xlu1 %1969 }
 0x13e   : > { %2006 = vst.msk [vmem:[#allocation2 + $0x60] sm:$0xff] %vm1993_vm11, %v1970_v7  ;;  %v1954_v8 = vpop.permute.xlu0 %1953 }
 0x13f   : > { %1998 = vst.msk [vmem:[#allocation2 + $0x20] sm:$0xff] %vm1993_vm11, %v1954_v8 }
 0x141   : > { %v630_v16 = vpop.permute.xlu1 %629 }
 0x142   : > { %664 = vst.msk [vmem:[#allocation2 + $0x70] sm:$0xff] %vm649_vm4, %v630_v16  ;;  %v614_v17 = vpop.permute.xlu0 %613 }
 0x143   : > { %656 = vst.msk [vmem:[#allocation2 + $0x30] sm:$0xff] %vm649_vm4, %v614_v17 }
 0x145   : > { %v1972_v19 = vpop.permute.xlu1 %1971  ;;  %v2022_v22 = vld [vmem:[#allocation2 + $0x60] sm:$0xff] }
 0x146   : > { %2007 = vst.msk [vmem:[#allocation2 + $0x68] sm:$0xff] %vm1993_vm11, %v1972_v19  ;;  %v1956_v23 = vpop.permute.xlu0 %1955  ;;  %v2014_v24 = vld [vmem:[#allocation2 + $0x20] sm:$0xff]  ;;  %2951 = vmatprep.mubr.msk.bf16.mxu1 %vm2046_vm12, %v2022_v22 }
 0x147   : > { %1999 = vst.msk [vmem:[#allocation2 + $0x28] sm:$0xff] %vm1993_vm11, %v1956_v23  ;;  %2935 = vmatprep.mubr.msk.bf16.mxu0 %vm2046_vm12, %v2014_v24 }
 0x149   : > { %v632_v25 = vpop.permute.xlu1 %631 }
 0x14a   : > { %665 = vst.msk [vmem:[#allocation2 + $0x78] sm:$0xff] %vm649_vm4, %v632_v25  ;;  %v616_v27 = vpop.permute.xlu0 %615 }
 0x14b   : > { %657 = vst.msk [vmem:[#allocation2 + $0x38] sm:$0xff] %vm649_vm4, %v616_v27 }
 0x14d   : > { %v744_v28 = vpop.permute.xlu1 %743  ;;  %v2023_v29 = vld [vmem:[#allocation2 + $0x68] sm:$0xff] }
 0x14e   : > { %778 = vst.msk [vmem:[#allocation2 + $0x70] sm:$0xff] %vm763_vm5, %v744_v28  ;;  %v728_v30 = vpop.permute.xlu0 %727  ;;  %v2015_v14 = vld [vmem:[#allocation2 + $0x28] sm:$0xff]  ;;  %2952 = vmatmul.mubr.msk.bf16.gmra.mrb[8].mxu1 %vm2046_vm12, %v2023_v29 }
 0x14f   : > { %770 = vst.msk [vmem:[#allocation2 + $0x30] sm:$0xff] %vm763_vm5, %v728_v30  ;;  %2936 = vmatmul.mubr.msk.bf16.gmra.mrb[8].mxu0 %vm2046_vm12, %v2015_v14 }
 0x151   : > { %v746_v59 = vpop.permute.xlu1 %745 }
 0x152   : > { %779 = vst.msk [vmem:[#allocation2 + $0x78] sm:$0xff] %vm763_vm5, %v746_v59  ;;  %v730_v60 = vpop.permute.xlu0 %729 }
 0x153   : > { %771 = vst.msk [vmem:[#allocation2 + $0x38] sm:$0xff] %vm763_vm5, %v730_v60 }
 0x155   : > { %v941_v18 = vpop.permute.xlu1 %940 }
 0x156   : > { %975 = vst.msk [vmem:[#allocation2 + $0x70] sm:$0xff] %vm960_vm6, %v941_v18  ;;  %v925_v11 = vpop.permute.xlu0 %924 }
 0x157   : > { %967 = vst.msk [vmem:[#allocation2 + $0x30] sm:$0xff] %vm960_vm6, %v925_v11 }
 0x159   : > { %v943_v31 = vpop.permute.xlu1 %942 }
 0x15a   : > { %976 = vst.msk [vmem:[#allocation2 + $0x78] sm:$0xff] %vm960_vm6, %v943_v31  ;;  %v927_v32 = vpop.permute.xlu0 %926 }
 0x15b   : > { %968 = vst.msk [vmem:[#allocation2 + $0x38] sm:$0xff] %vm960_vm6, %v927_v32 }
 0x15d   : > { %v1246_v21 = vpop.permute.xlu1 %1245 }
 0x15e   : > { %1280 = vst.msk [vmem:[#allocation2 + $0x70] sm:$0xff] %vm1265_vm7, %v1246_v21  ;;  %v1230_v54 = vpop.permute.xlu0 %1229 }
 0x15f   : > { %1272 = vst.msk [vmem:[#allocation2 + $0x30] sm:$0xff] %vm1265_vm7, %v1230_v54 }
 0x161   : > { %v1248_v26 = vpop.permute.xlu1 %1247 }
 0x162   : > { %1281 = vst.msk [vmem:[#allocation2 + $0x78] sm:$0xff] %vm1265_vm7, %v1248_v26  ;;  %v1232_v0 = vpop.permute.xlu0 %1231 }
 0x163   : > { %1273 = vst.msk [vmem:[#allocation2 + $0x38] sm:$0xff] %vm1265_vm7, %v1232_v0 }
 0x165   : > { %v1359_v33 = vpop.permute.xlu1 %1358 }
 0x166   : > { %1393 = vst.msk [vmem:[#allocation2 + $0x70] sm:$0xff] %vm1378_vm8, %v1359_v33  ;;  %v1343_v35 = vpop.permute.xlu0 %1342 }
 0x167   : > { %1385 = vst.msk [vmem:[#allocation2 + $0x30] sm:$0xff] %vm1378_vm8, %v1343_v35 }
 0x169   : > { %v1361_v1 = vpop.permute.xlu1 %1360 }
 0x16a   : > { %1394 = vst.msk [vmem:[#allocation2 + $0x78] sm:$0xff] %vm1378_vm8, %v1361_v1  ;;  %v1345_v39 = vpop.permute.xlu0 %1344 }
 0x16b   : > { %1386 = vst.msk [vmem:[#allocation2 + $0x38] sm:$0xff] %vm1378_vm8, %v1345_v39 }
 0x16d   : > { %v1556_v36 = vpop.permute.xlu1 %1555 }
 0x16e   : > { %1590 = vst.msk [vmem:[#allocation2 + $0x70] sm:$0xff] %vm1575_vm9, %v1556_v36  ;;  %v1540_v41 = vpop.permute.xlu0 %1539 }
 0x16f   : > { %1582 = vst.msk [vmem:[#allocation2 + $0x30] sm:$0xff] %vm1575_vm9, %v1540_v41 }
 0x171   : > { %v1558_v44 = vpop.permute.xlu1 %1557 }
 0x172   : > { %1591 = vst.msk [vmem:[#allocation2 + $0x78] sm:$0xff] %vm1575_vm9, %v1558_v44  ;;  %v1542_v45 = vpop.permute.xlu0 %1541 }
 0x173   : > { %1583 = vst.msk [vmem:[#allocation2 + $0x38] sm:$0xff] %vm1575_vm9, %v1542_v45 }
 0x175   : > { %v1861_v46 = vpop.permute.xlu1 %1860 }
 0x176   : > { %1895 = vst.msk [vmem:[#allocation2 + $0x70] sm:$0xff] %vm1880_vm10, %v1861_v46  ;;  %v1845_v47 = vpop.permute.xlu0 %1844 }
 0x177   : > { %1887 = vst.msk [vmem:[#allocation2 + $0x30] sm:$0xff] %vm1880_vm10, %v1845_v47 }
 0x179   : > { %v1863_v6 = vpop.permute.xlu1 %1862 }
 0x17a   : > { %1896 = vst.msk [vmem:[#allocation2 + $0x78] sm:$0xff] %vm1880_vm10, %v1863_v6  ;;  %v1847_v34 = vpop.permute.xlu0 %1846 }
 0x17b   : > { %1888 = vst.msk [vmem:[#allocation2 + $0x38] sm:$0xff] %vm1880_vm10, %v1847_v34 }
 0x17d   : > { %v1974_v50 = vpop.permute.xlu1 %1973 }
 0x17e   : > { %2008 = vst.msk [vmem:[#allocation2 + $0x70] sm:$0xff] %vm1993_vm11, %v1974_v50  ;;  %v1958_v9 = vpop.permute.xlu0 %1957 }
 0x17f   : > { %2000 = vst.msk [vmem:[#allocation2 + $0x30] sm:$0xff] %vm1993_vm11, %v1958_v9 }
 0x181   : > { %v1976_v42 = vpop.permute.xlu1 %1975 }
 0x182   : > { %2009 = vst.msk [vmem:[#allocation2 + $0x78] sm:$0xff] %vm1993_vm11, %v1976_v42  ;;  %v1960_v51 = vpop.permute.xlu0 %1959 }
 0x183   : > { %2001 = vst.msk [vmem:[#allocation2 + $0x38] sm:$0xff] %vm1993_vm11, %v1960_v51 }
 0x185   : > { %v2024_v61 = vld [vmem:[#allocation2 + $0x70] sm:$0xff] }
 0x186   : > { %v2016_v3 = vld [vmem:[#allocation2 + $0x30] sm:$0xff]  ;;  %2955 = vmatprep.mubr.msk.bf16.mxu1 %vm2046_vm12, %v2024_v61 }
 0x187   : > { %2939 = vmatprep.mubr.msk.bf16.mxu0 %vm2046_vm12, %v2016_v3 }
 0x189   : > { %v2025_v37 = vld [vmem:[#allocation2 + $0x78] sm:$0xff] }
 0x18a   : > { %v2017_v52 = vld [vmem:[#allocation2 + $0x38] sm:$0xff]  ;;  %2956 = vmatmul.mubr.msk.bf16.gmra.mrb[12].mxu1 %vm2046_vm12, %v2025_v37 }
 0x18b   : > { %2940 = vmatmul.mubr.msk.bf16.gmra.mrb[12].mxu0 %vm2046_vm12, %v2017_v52 }
 0x1a1   : > { %v2945_v40 = vpop.f32.mrb[0].mxu1 }
 0x1a2   : > { %v2929_v48 = vpop.f32.mrb[0].mxu0  ;;  %vm2279_vm14 = vcmp.gt.f32.partialorder %v2945_v40, 0.0  ;;  %v2317_v5 = vmul.f32 %v2945_v40, %v4113_v20  ;;  %v2197_v43 = vpop.f32.mrb[1].mxu1 }
 0x1a3   : > { %vm2263_vm15 = vcmp.gt.f32.partialorder %v2929_v48, 0.0  ;;  %v2301_v53 = vmul.f32 %v2929_v48, %v4113_v20  ;;  %v2133_v13 = vpop.f32.mrb[1].mxu0  ;;  %vm2277_vm0 = vcmp.gt.f32.partialorder %v2197_v43, 0.0  ;;  %v2315_v55 = vmul.f32 %v4113_v20, %v2197_v43  ;;  %v2946_v56 = vpop.f32.mrb[2].mxu1 }
 0x1a4   : > { %v2349_v49 = vsel %vm2279_vm14, %v2945_v40, %v2317_v5  ;;  %vm2261_vm1 = vcmp.gt.f32.partialorder %v2133_v13, 0.0  ;;  %v2299_v57 = vmul.f32 %v4113_v20, %v2133_v13  ;;  %v2930_v38 = vpop.f32.mrb[2].mxu0  ;;  %vm2280_vm2 = vcmp.gt.f32.partialorder %v2946_v56, 0.0  ;;  %v2200_v58 = vpop.f32.mrb[3].mxu1 }
 0x1a5   : > { %v2333_v62 = vsel %vm2263_vm15, %v2929_v48, %v2301_v53  ;;  %v2888_v63 = vpack.c.bf16 %v2349_v49, %v2349_v49  ;;  %v2347_v10 = vsel %vm2277_vm0, %v2197_v43, %v2315_v55  ;;  %vm2264_vm3 = vcmp.gt.f32.partialorder %v2930_v38, 0.0  ;;  %v2136_v12 = vpop.f32.mrb[3].mxu0 }
 0x1a6   : > { %v2872_v15 = vpack.c.bf16 %v2333_v62, %v2333_v62  ;;  %v2331_v2 = vsel %vm2261_vm1, %v2133_v13, %v2299_v57  ;;  %v2886_v4 = vpack.c.bf16 %v2347_v10, %v2347_v10  ;;  %v2302_v7 = vmul.f32 %v2930_v38, %v4113_v20 }
 0x1a7   : > { %2510 = vst.msk [vmem:[%s4122_s16 + $0x48] sm:$0xf] %vm2491_vm13, %v2888_v63  ;;  %v2870_v8 = vpack.c.bf16 %v2331_v2, %v2331_v2  ;;  %v2318_v16 = vmul.f32 %v2946_v56, %v4113_v20  ;;  %vm2262_vm4 = vcmp.gt.f32.partialorder %v2136_v12, 0.0  ;;  %v2300_v17 = vmul.f32 %v4113_v20, %v2136_v12 }
 0x1a8   : > { %2494 = vst.msk [vmem:[%s4122_s16 + $0x8] sm:$0xf] %vm2491_vm13, %v2872_v15  ;;  %2508 = vst.msk [vmem:[%s4122_s16 + $0x40] sm:$0xf] %vm2491_vm13, %v2886_v4  ;;  %v2334_v19 = vsel %vm2264_vm3, %v2930_v38, %v2302_v7  ;;  %vm2278_vm5 = vcmp.gt.f32.partialorder %v2200_v58, 0.0  ;;  %v2316_v22 = vmul.f32 %v4113_v20, %v2200_v58 }
 0x1a9   : > { %2492 = vst.msk [vmem:[%s4122_s16] sm:$0xf] %vm2491_vm13, %v2870_v8  ;;  %v2873_v23 = vpack.c.bf16 %v2334_v19, %v2334_v19  ;;  %v2350_v24 = vsel %vm2280_vm2, %v2946_v56, %v2318_v16  ;;  %v2332_v25 = vsel %vm2262_vm4, %v2136_v12, %v2300_v17 }
 0x1aa   : > { %v2889_v27 = vpack.c.bf16 %v2350_v24, %v2350_v24  ;;  %v2871_v28 = vpack.c.bf16 %v2332_v25, %v2332_v25  ;;  %v2348_v29 = vsel %vm2278_vm5, %v2200_v58, %v2316_v22 }
 0x1ab   : > { %2495 = vst.msk [vmem:[%s4122_s16 + $0xc] sm:$0xf] %vm2491_vm13, %v2873_v23  ;;  %v2887_v30 = vpack.c.bf16 %v2348_v29, %v2348_v29 }
 0x1ac   : > { %2511 = vst.msk [vmem:[%s4122_s16 + $0x4c] sm:$0xf] %vm2491_vm13, %v2889_v27  ;;  %2493 = vst.msk [vmem:[%s4122_s16 + $0x4] sm:$0xf] %vm2491_vm13, %v2871_v28 }
 0x1ad   : > { %2509 = vst.msk [vmem:[%s4122_s16 + $0x44] sm:$0xf] %vm2491_vm13, %v2887_v30 }
 0x1e1   : > { %v2949_v14 = vpop.f32.mrb[4].mxu1 }
 0x1e2   : > { %v2933_v59 = vpop.f32.mrb[4].mxu0  ;;  %vm2283_vm6 = vcmp.gt.f32.partialorder %v2949_v14, 0.0  ;;  %v2321_v60 = vmul.f32 %v2949_v14, %v4113_v20  ;;  %v2213_v18 = vpop.f32.mrb[5].mxu1 }
 0x1e3   : > { %vm2267_vm7 = vcmp.gt.f32.partialorder %v2933_v59, 0.0  ;;  %v2305_v11 = vmul.f32 %v2933_v59, %v4113_v20  ;;  %v2149_v31 = vpop.f32.mrb[5].mxu0  ;;  %vm2281_vm8 = vcmp.gt.f32.partialorder %v2213_v18, 0.0  ;;  %v2319_v32 = vmul.f32 %v4113_v20, %v2213_v18  ;;  %v2950_v21 = vpop.f32.mrb[6].mxu1 }
 0x1e4   : > { %v2353_v54 = vsel %vm2283_vm6, %v2949_v14, %v2321_v60  ;;  %vm2265_vm9 = vcmp.gt.f32.partialorder %v2149_v31, 0.0  ;;  %v2303_v26 = vmul.f32 %v4113_v20, %v2149_v31  ;;  %v2934_v0 = vpop.f32.mrb[6].mxu0  ;;  %vm2284_vm10 = vcmp.gt.f32.partialorder %v2950_v21, 0.0  ;;  %v2216_v33 = vpop.f32.mrb[7].mxu1 }
 0x1e5   : > { %v2337_v35 = vsel %vm2267_vm7, %v2933_v59, %v2305_v11  ;;  %v2892_v1 = vpack.c.bf16 %v2353_v54, %v2353_v54  ;;  %v2351_v39 = vsel %vm2281_vm8, %v2213_v18, %v2319_v32  ;;  %vm2268_vm11 = vcmp.gt.f32.partialorder %v2934_v0, 0.0  ;;  %v2152_v36 = vpop.f32.mrb[7].mxu0 }
 0x1e6   : > { %v2876_v41 = vpack.c.bf16 %v2337_v35, %v2337_v35  ;;  %v2335_v44 = vsel %vm2265_vm9, %v2149_v31, %v2303_v26  ;;  %v2890_v45 = vpack.c.bf16 %v2351_v39, %v2351_v39  ;;  %v2306_v46 = vmul.f32 %v2934_v0, %v4113_v20 }
 0x1e7   : > { %2514 = vst.msk [vmem:[%s4122_s16 + $0x58] sm:$0xf] %vm2491_vm13, %v2892_v1  ;;  %v2874_v47 = vpack.c.bf16 %v2335_v44, %v2335_v44  ;;  %v2322_v6 = vmul.f32 %v2950_v21, %v4113_v20  ;;  %vm2266_vm12 = vcmp.gt.f32.partialorder %v2152_v36, 0.0  ;;  %v2304_v34 = vmul.f32 %v4113_v20, %v2152_v36 }
 0x1e8   : > { %2498 = vst.msk [vmem:[%s4122_s16 + $0x18] sm:$0xf] %vm2491_vm13, %v2876_v41  ;;  %2512 = vst.msk [vmem:[%s4122_s16 + $0x50] sm:$0xf] %vm2491_vm13, %v2890_v45  ;;  %v2338_v50 = vsel %vm2268_vm11, %v2934_v0, %v2306_v46  ;;  %vm2282_vm14 = vcmp.gt.f32.partialorder %v2216_v33, 0.0  ;;  %v2320_v9 = vmul.f32 %v4113_v20, %v2216_v33 }
 0x1e9   : > { %2496 = vst.msk [vmem:[%s4122_s16 + $0x10] sm:$0xf] %vm2491_vm13, %v2874_v47  ;;  %v2877_v42 = vpack.c.bf16 %v2338_v50, %v2338_v50  ;;  %v2354_v51 = vsel %vm2284_vm10, %v2950_v21, %v2322_v6  ;;  %v2336_v61 = vsel %vm2266_vm12, %v2152_v36, %v2304_v34 }
 0x1ea   : > { %v2893_v3 = vpack.c.bf16 %v2354_v51, %v2354_v51  ;;  %v2875_v37 = vpack.c.bf16 %v2336_v61, %v2336_v61  ;;  %v2352_v52 = vsel %vm2282_vm14, %v2216_v33, %v2320_v9 }
 0x1eb   : > { %2499 = vst.msk [vmem:[%s4122_s16 + $0x1c] sm:$0xf] %vm2491_vm13, %v2877_v42  ;;  %v2891_v40 = vpack.c.bf16 %v2352_v52, %v2352_v52 }
 0x1ec   : > { %2515 = vst.msk [vmem:[%s4122_s16 + $0x5c] sm:$0xf] %vm2491_vm13, %v2893_v3  ;;  %2497 = vst.msk [vmem:[%s4122_s16 + $0x14] sm:$0xf] %vm2491_vm13, %v2875_v37 }
 0x1ed   : > { %2513 = vst.msk [vmem:[%s4122_s16 + $0x54] sm:$0xf] %vm2491_vm13, %v2891_v40 }
 0x221   : > { %v2953_v48 = vpop.f32.mrb[8].mxu1 }
 0x222   : > { %v2937_v5 = vpop.f32.mrb[8].mxu0  ;;  %vm2287_vm15 = vcmp.gt.f32.partialorder %v2953_v48, 0.0  ;;  %v2325_v43 = vmul.f32 %v2953_v48, %v4113_v20  ;;  %v2229_v53 = vpop.f32.mrb[9].mxu1 }
 0x223   : > { %vm2271_vm0 = vcmp.gt.f32.partialorder %v2937_v5, 0.0  ;;  %v2309_v13 = vmul.f32 %v2937_v5, %v4113_v20  ;;  %v2165_v55 = vpop.f32.mrb[9].mxu0  ;;  %vm2285_vm1 = vcmp.gt.f32.partialorder %v2229_v53, 0.0  ;;  %v2323_v56 = vmul.f32 %v4113_v20, %v2229_v53  ;;  %v2954_v49 = vpop.f32.mrb[10].mxu1 }
 0x224   : > { %v2357_v57 = vsel %vm2287_vm15, %v2953_v48, %v2325_v43  ;;  %vm2269_vm2 = vcmp.gt.f32.partialorder %v2165_v55, 0.0  ;;  %v2307_v38 = vmul.f32 %v4113_v20, %v2165_v55  ;;  %v2938_v58 = vpop.f32.mrb[10].mxu0  ;;  %vm2288_vm3 = vcmp.gt.f32.partialorder %v2954_v49, 0.0  ;;  %v2232_v62 = vpop.f32.mrb[11].mxu1 }
 0x225   : > { %v2341_v63 = vsel %vm2271_vm0, %v2937_v5, %v2309_v13  ;;  %v2896_v10 = vpack.c.bf16 %v2357_v57, %v2357_v57  ;;  %v2355_v12 = vsel %vm2285_vm1, %v2229_v53, %v2323_v56  ;;  %vm2272_vm4 = vcmp.gt.f32.partialorder %v2938_v58, 0.0  ;;  %v2168_v15 = vpop.f32.mrb[11].mxu0 }
 0x226   : > { %v2880_v2 = vpack.c.bf16 %v2341_v63, %v2341_v63  ;;  %v2339_v4 = vsel %vm2269_vm2, %v2165_v55, %v2307_v38  ;;  %v2894_v7 = vpack.c.bf16 %v2355_v12, %v2355_v12  ;;  %v2310_v8 = vmul.f32 %v2938_v58, %v4113_v20 }
 0x227   : > { %2518 = vst.msk [vmem:[%s4122_s16 + $0x68] sm:$0xf] %vm2491_vm13, %v2896_v10  ;;  %v2878_v16 = vpack.c.bf16 %v2339_v4, %v2339_v4  ;;  %v2326_v17 = vmul.f32 %v2954_v49, %v4113_v20  ;;  %vm2270_vm5 = vcmp.gt.f32.partialorder %v2168_v15, 0.0  ;;  %v2308_v19 = vmul.f32 %v4113_v20, %v2168_v15 }
 0x228   : > { %2502 = vst.msk [vmem:[%s4122_s16 + $0x28] sm:$0xf] %vm2491_vm13, %v2880_v2  ;;  %2516 = vst.msk [vmem:[%s4122_s16 + $0x60] sm:$0xf] %vm2491_vm13, %v2894_v7  ;;  %v2342_v22 = vsel %vm2272_vm4, %v2938_v58, %v2310_v8  ;;  %vm2286_vm6 = vcmp.gt.f32.partialorder %v2232_v62, 0.0  ;;  %v2324_v23 = vmul.f32 %v4113_v20, %v2232_v62 }
 0x229   : > { %2500 = vst.msk [vmem:[%s4122_s16 + $0x20] sm:$0xf] %vm2491_vm13, %v2878_v16  ;;  %v2881_v24 = vpack.c.bf16 %v2342_v22, %v2342_v22  ;;  %v2358_v25 = vsel %vm2288_vm3, %v2954_v49, %v2326_v17  ;;  %v2340_v27 = vsel %vm2270_vm5, %v2168_v15, %v2308_v19 }
 0x22a   : > { %v2897_v28 = vpack.c.bf16 %v2358_v25, %v2358_v25  ;;  %v2879_v29 = vpack.c.bf16 %v2340_v27, %v2340_v27  ;;  %v2356_v30 = vsel %vm2286_vm6, %v2232_v62, %v2324_v23 }
 0x22b   : > { %2503 = vst.msk [vmem:[%s4122_s16 + $0x2c] sm:$0xf] %vm2491_vm13, %v2881_v24  ;;  %v2895_v14 = vpack.c.bf16 %v2356_v30, %v2356_v30 }
 0x22c   : > { %2519 = vst.msk [vmem:[%s4122_s16 + $0x6c] sm:$0xf] %vm2491_vm13, %v2897_v28  ;;  %2501 = vst.msk [vmem:[%s4122_s16 + $0x24] sm:$0xf] %vm2491_vm13, %v2879_v29 }
 0x22d   : > { %2517 = vst.msk [vmem:[%s4122_s16 + $0x64] sm:$0xf] %vm2491_vm13, %v2895_v14 }
 0x25d   : > { %v2957_v59 = vpop.f32.mrb[12].mxu1 }
 0x25e   : > { %v2941_v60 = vpop.f32.mrb[12].mxu0  ;;  %vm2291_vm7 = vcmp.gt.f32.partialorder %v2957_v59, 0.0  ;;  %v2329_v18 = vmul.f32 %v2957_v59, %v4113_v20  ;;  %v2245_v11 = vpop.f32.mrb[13].mxu1 }
 0x25f   : > { %vm2275_vm8 = vcmp.gt.f32.partialorder %v2941_v60, 0.0  ;;  %v2313_v31 = vmul.f32 %v2941_v60, %v4113_v20  ;;  %v2181_v32 = vpop.f32.mrb[13].mxu0  ;;  %vm2289_vm9 = vcmp.gt.f32.partialorder %v2245_v11, 0.0  ;;  %v2327_v21 = vmul.f32 %v4113_v20, %v2245_v11  ;;  %v2958_v54 = vpop.f32.mrb[14].mxu1 }
 0x260   : > { %v2361_v26 = vsel %vm2291_vm7, %v2957_v59, %v2329_v18  ;;  %vm2273_vm10 = vcmp.gt.f32.partialorder %v2181_v32, 0.0  ;;  %v2311_v0 = vmul.f32 %v4113_v20, %v2181_v32  ;;  %v2942_v33 = vpop.f32.mrb[14].mxu0  ;;  %vm2292_vm11 = vcmp.gt.f32.partialorder %v2958_v54, 0.0  ;;  %v2248_v35 = vpop.f32.mrb[15].mxu1 }
 0x261   : > { %v2345_v1 = vsel %vm2275_vm8, %v2941_v60, %v2313_v31  ;;  %v2900_v39 = vpack.c.bf16 %v2361_v26, %v2361_v26  ;;  %v2359_v36 = vsel %vm2289_vm9, %v2245_v11, %v2327_v21  ;;  %vm2276_vm12 = vcmp.gt.f32.partialorder %v2942_v33, 0.0  ;;  %v2184_v41 = vpop.f32.mrb[15].mxu0 }
 0x262   : > { %v2884_v44 = vpack.c.bf16 %v2345_v1, %v2345_v1  ;;  %v2343_v45 = vsel %vm2273_vm10, %v2181_v32, %v2311_v0  ;;  %v2898_v46 = vpack.c.bf16 %v2359_v36, %v2359_v36  ;;  %v2314_v47 = vmul.f32 %v2942_v33, %v4113_v20 }
 0x263   : > { %2522 = vst.msk [vmem:[%s4122_s16 + $0x78] sm:$0xf] %vm2491_vm13, %v2900_v39  ;;  %v2882_v6 = vpack.c.bf16 %v2343_v45, %v2343_v45  ;;  %v2330_v34 = vmul.f32 %v2958_v54, %v4113_v20  ;;  %vm2274_vm14 = vcmp.gt.f32.partialorder %v2184_v41, 0.0  ;;  %v2312_v50 = vmul.f32 %v4113_v20, %v2184_v41 }
 0x264   : > { %2506 = vst.msk [vmem:[%s4122_s16 + $0x38] sm:$0xf] %vm2491_vm13, %v2884_v44  ;;  %2520 = vst.msk [vmem:[%s4122_s16 + $0x70] sm:$0xf] %vm2491_vm13, %v2898_v46  ;;  %v2346_v9 = vsel %vm2276_vm12, %v2942_v33, %v2314_v47  ;;  %vm2290_vm15 = vcmp.gt.f32.partialorder %v2248_v35, 0.0  ;;  %v2328_v42 = vmul.f32 %v4113_v20, %v2248_v35 }
 0x265   : > { %2504 = vst.msk [vmem:[%s4122_s16 + $0x30] sm:$0xf] %vm2491_vm13, %v2882_v6  ;;  %v2885_v51 = vpack.c.bf16 %v2346_v9, %v2346_v9  ;;  %v2362_v61 = vsel %vm2292_vm11, %v2958_v54, %v2330_v34  ;;  %v2344_v3 = vsel %vm2274_vm14, %v2184_v41, %v2312_v50 }
 0x266   : > { %v2901_v37 = vpack.c.bf16 %v2362_v61, %v2362_v61  ;;  %v2883_v52 = vpack.c.bf16 %v2344_v3, %v2344_v3  ;;  %v2360_v40 = vsel %vm2290_vm15, %v2248_v35, %v2328_v42 }
 0x267   : > { %2507 = vst.msk [vmem:[%s4122_s16 + $0x3c] sm:$0xf] %vm2491_vm13, %v2885_v51  ;;  %v2899_v48 = vpack.c.bf16 %v2360_v40, %v2360_v40 }
 0x268   : > { %2523 = vst.msk [vmem:[%s4122_s16 + $0x7c] sm:$0xf] %vm2491_vm13, %v2901_v37  ;;  %2505 = vst.msk [vmem:[%s4122_s16 + $0x34] sm:$0xf] %vm2491_vm13, %v2883_v52 }
 0x269   : > { %2521 = vst.msk [vmem:[%s4122_s16 + $0x74] sm:$0xf] %vm2491_vm13, %v2899_v48 }
 0x26a PF: > { %s13_s14 = sadd.s32 1, %s3121_s14   ;;  %s4234_s12 = smov %s3117_s13 }
 0x26b   : > { %p10_p5 = scmp.ge.s32.totalorder %s13_s14, 4   ;;  %s4235_s13 = smov %s4237_s15 }
 0x26d   :  { %12 = sbr.rel (!%p10_p5) target bundleno = 2 (0x2), region = 65 }

</bundles_post_ra>
